<compile_context>
chip_gen: v7x
topology: tpu7x:2x2x1
jax: 0.10.0
libtpu: 0.0.40
codegen_flags: <defaults>
</compile_context>

<pallas_src>
import functools

import numpy as np
import jax
import jax.numpy as jnp
from jax import lax
from jax.experimental import pallas as pl
from jax.experimental.pallas import tpu as pltpu


def _resblock_kernel(x_ref, wa_ref, ba_ref, w2_ref, b2_ref, eye_ref, out_ref, *,
                     H, W, K, pad, BH, WEp, fuse_taps, compute_dtype):
    """One (batch, row-band) tile per grid step.

    x_ref  : (1, H+4p, WEp+2p, Cin)  zero-padded NHWC input (2*pad halo)
    wa_ref : (K*K*Cin, Cmid+Cout)    fused conv1|identity weights (im2col)
    ba_ref : (1, Cmid+Cout)          fused biases
    w2_ref : (K*K*Cmid, Cout)        conv2 weights (im2col)
    b2_ref : (1, Cout)
    eye_ref: (Cout, Cout)            identity, used for an MXU transpose
    out_ref: (1, Cout, BH*W)         lane-dense NCHW-flat output band
    """
    BHE = BH + 2 * pad                       # extended band height (h1 domain)
    r0 = pl.program_id(1) * BH               # first output row of this band

    xb = x_ref[0, pl.ds(r0, BH + 4 * pad), :, :]     # (BH+4p, WEp+2p, Cin)
    Cin = xb.shape[-1]
    Cout = w2_ref.shape[-1]
    Cmid = wa_ref.shape[-1] - Cout
    rows_e = BHE * WEp

    # ---- im2col patches of x over the extended band domain -----------------
    cols = [xb[kh:kh + BHE, kw:kw + WEp, :].reshape(rows_e, Cin)
            for kh in range(K) for kw in range(K)]

    # ---- fused conv1 + identity conv (shared patches, one wide matmul) -----
    if fuse_taps:
        px = jnp.concatenate(cols, axis=-1).astype(compute_dtype)
        y = jnp.dot(px, wa_ref[...], preferred_element_type=jnp.float32)
    else:   # per-tap accumulating dots (fallback, identical math)
        wa = wa_ref[...]
        y = jnp.zeros((rows_e, Cmid + Cout), jnp.float32)
        for t, c in enumerate(cols):
            y = y + jnp.dot(c.astype(compute_dtype),
                            wa[t * Cin:(t + 1) * Cin, :],
                            preferred_element_type=jnp.float32)
    y = y + ba_ref[...]

    # ReLU branch; rows/cols outside the original image are exactly conv2's
    # zero 'same' padding, so mask them instead of building a padded scratch.
    h1 = jnp.maximum(y[:, :Cmid], 0.0).reshape(BHE, WEp, Cmid)
    e = lax.broadcasted_iota(jnp.int32, (BHE, WEp, 1), 0) + r0   # ext row
    f = lax.broadcasted_iota(jnp.int32, (BHE, WEp, 1), 1)        # ext col
    inside = (e >= pad) & (e < pad + H) & (f >= pad) & (f < pad + W)
    h1 = jnp.where(inside, h1, 0.0)

    # identity-conv branch: interior of the extended domain
    idn = y[:, Cmid:].reshape(BHE, WEp, Cout)[pad:pad + BH, pad:pad + W, :]
    idn = idn.reshape(BH * W, Cout)

    # ---- conv2 over the band (im2col on the masked h1) ---------------------
    cols2 = [h1[kh:kh + BH, kw:kw + W, :].reshape(BH * W, Cmid)
             for kh in range(K) for kw in range(K)]
    if fuse_taps:
        ph = jnp.concatenate(cols2, axis=-1).astype(compute_dtype)
        h2 = jnp.dot(ph, w2_ref[...], preferred_element_type=jnp.float32)
    else:
        w2 = w2_ref[...]
        h2 = jnp.zeros((BH * W, Cout), jnp.float32)
        for t, c in enumerate(cols2):
            h2 = h2 + jnp.dot(c.astype(compute_dtype),
                              w2[t * Cmid:(t + 1) * Cmid, :],
                              preferred_element_type=jnp.float32)
    h2 = h2 + b2_ref[...]

    out2d = idn + h2                                   # (BH*W, Cout), f32
    # Lane-dense (Cout, BH*W) writeback: transpose via the MXU (eye @ out2d^T).
    out_ref[0] = lax.dot_general(eye_ref[...], out2d,
                                 (((1,), (1,)), ((), ())),
                                 preferred_element_type=jnp.float32)


def _pick_band_rows(H, W):
    """Largest band height giving >=2 bands and a 128-multiple output block."""
    for b in (32, 16, 8):
        if H % b == 0 and (b * W) % 128 == 0 and H // b >= 2:
            return b
    return H


def my_res_block(x_nchw, params, kernel_size=3, band_rows=None,
                 compute_dtype=jnp.float32):
    """Pallas implementation of MyResBlock.forward. x_nchw: (N, Cin, H, W)."""
    W1, b1, W2, b2, Wid, bid = params        # HWIO weights, (C,) biases
    N, Cin, H, W = x_nchw.shape
    K = kernel_size
    pad = K // 2                             # 'same' padding (odd kernels)
    Cmid = W1.shape[-1]
    Cout = W2.shape[-1]

    if band_rows is None:
        band_rows = _pick_band_rows(H, W)
    if H % band_rows or (band_rows != H and (band_rows * W) % 128):
        band_rows = H
    BH = band_rows
    n_bands = H // BH

    WE = W + 2 * pad                         # extended (h1) width
    WEp = ((WE + 7) // 8) * 8                # round up to a sublane multiple
    Wx = WEp + 2 * pad                       # padded x width
    Hx = H + 4 * pad                         # padded x height (2*pad halo)

    # NHWC + 2*pad zero halo; XLA fuses transpose+pad into one HBM pass.
    x = jnp.transpose(x_nchw, (0, 2, 3, 1)).astype(jnp.float32)
    x_pad = jnp.pad(x, ((0, 0), (2 * pad, 2 * pad),
                        (2 * pad, Wx - W - 2 * pad), (0, 0)))

    # Fused conv1 | identity weights (they share the same x patches).
    w_a = jnp.concatenate([W1, Wid], axis=-1).reshape(K * K * Cin, Cmid + Cout)
    w_a = w_a.astype(compute_dtype)
    b_a = jnp.concatenate([b1, bid]).reshape(1, Cmid + Cout).astype(jnp.float32)
    w2r = W2.reshape(K * K * Cmid, Cout).astype(compute_dtype)
    b2r = b2.reshape(1, Cout).astype(jnp.float32)
    eye = jnp.eye(Cout, dtype=jnp.float32)

    def build(fuse_taps):
        kern = functools.partial(
            _resblock_kernel, H=H, W=W, K=K, pad=pad, BH=BH, WEp=WEp,
            fuse_taps=fuse_taps, compute_dtype=compute_dtype)
        return pl.pallas_call(
            kern,
            out_shape=jax.ShapeDtypeStruct((N, Cout, H * W), jnp.float32),
            grid_spec=pltpu.PrefetchScalarGridSpec(
                num_scalar_prefetch=0,
                grid=(N, n_bands),
                in_specs=[
                    pl.BlockSpec((1, Hx, Wx, Cin), lambda n, b: (n, 0, 0, 0)),
                    pl.BlockSpec((K * K * Cin, Cmid + Cout),
                                 lambda n, b: (0, 0)),
                    pl.BlockSpec((1, Cmid + Cout), lambda n, b: (0, 0)),
                    pl.BlockSpec((K * K * Cmid, Cout), lambda n, b: (0, 0)),
                    pl.BlockSpec((1, Cout), lambda n, b: (0, 0)),
                    pl.BlockSpec((Cout, Cout), lambda n, b: (0, 0)),
                ],
                out_specs=pl.BlockSpec((1, Cout, BH * W),
                                       lambda n, b: (n, 0, b)),
            ),
            compiler_params=pltpu.CompilerParams(
                dimension_semantics=("parallel", "parallel")),
        )(x_pad, w_a, b_a, w2r, b2r, eye)

    try:
        out = build(fuse_taps=True)           # single big-K matmul per conv
    except Exception:                          # unaligned lane concat rejected
        out = build(fuse_taps=False)           # per-tap accumulating matmuls

    return out.reshape(N, Cout, H, W)          # already NCHW (lane-dense write)


# ---------------- pure-JAX reference (for correctness check) ----------------
def _conv_same_ref(x_nhwc, w_hwio, b):
    y = lax.conv_general_dilated(
        x_nhwc, w_hwio, window_strides=(1, 1), padding="SAME",
        dimension_numbers=("NHWC", "HWIO", "NHWC"))
    return y + b.reshape(1, 1, 1, -1)


def my_res_block_ref(x_nchw, params, kernel_size=3):
    W1, b1, W2, b2, Wid, bid = params
    x = jnp.transpose(x_nchw, (0, 2, 3, 1)).astype(jnp.float32)
    h = jnp.maximum(_conv_same_ref(x, W1, b1), 0.0)
    res = _conv_same_ref(h, W2, b2)
    idn = _conv_same_ref(x, Wid, bid)
    return jnp.transpose(idn + res, (0, 3, 1, 2))


def _init_params(key, in_channels, out_channels, kernel_size):
    """Deterministic synthetic weights (HWIO layout), PyTorch Conv2d shapes."""
    ks = jax.random.split(key, 6)
    KH = KW = kernel_size

    def w(k, cin, cout):
        return jax.random.normal(k, (KH, KW, cin, cout), jnp.float32) * 0.1

    def b(k, cout):
        return jax.random.normal(k, (cout,), jnp.float32) * 0.05

    W1 = w(ks[0], in_channels, out_channels)
    b1 = b(ks[1], out_channels)
    W2 = w(ks[2], out_channels, out_channels)
    b2 = b(ks[3], out_channels)
    Wid = w(ks[4], in_channels, out_channels)
    bid = b(ks[5], out_channels)
    return (W1, b1, W2, b2, Wid, bid)


if __name__ == "__main__":
    # Small shapes consistent with the module: NCHW input, 3x3 'same' convs.
    N, Cin, Cout, H, W, K = 2, 4, 4, 16, 16, 3

    key = jax.random.PRNGKey(0)
    kx, kp = jax.random.split(key)
    x = jax.random.normal(kx, (N, Cin, H, W), jnp.float32)
    params = _init_params(kp, Cin, Cout, K)

    ref = jax.block_until_ready(my_res_block_ref(x, params, kernel_size=K))

    # f32 path: strict check against the f32 reference.
    out = jax.block_until_ready(my_res_block(x, params, kernel_size=K))
    np.testing.assert_allclose(np.asarray(out), np.asarray(ref),
                               rtol=1e-4, atol=1e-4)

    # bf16 MXU path: looser tolerance (bf16 operands, f32 accumulation).
    out_bf16 = jax.block_until_ready(
        my_res_block(x, params, kernel_size=K, compute_dtype=jnp.bfloat16))
    np.testing.assert_allclose(np.asarray(out_bf16), np.asarray(ref),
                               rtol=5e-2, atol=5e-2)

    print("KERNEL_OK")
</pallas_src>

<mosaic_0001>
module attributes {stable_mosaic.version = 11 : i64} {
  func.func @_resblock_kernel(%arg0: i32, %arg1: i32, %arg2: memref<1x20x26x4xf32, #tpu.memory_space<vmem>>, %arg3: memref<36x8xf32, #tpu.memory_space<vmem>>, %arg4: memref<1x8xf32, #tpu.memory_space<vmem>>, %arg5: memref<36x4xf32, #tpu.memory_space<vmem>>, %arg6: memref<1x4xf32, #tpu.memory_space<vmem>>, %arg7: memref<4x4xf32, #tpu.memory_space<vmem>>, %arg8: memref<1x4x128xf32, #tpu.memory_space<vmem>>) attributes {dimension_semantics = [#tpu.dimension_semantics<parallel>, #tpu.dimension_semantics<parallel>], iteration_bounds = array<i64: 2, 2>, scalar_prefetch = 0 : i64, scratch_operands = 0 : i64, tpu.core_type = #tpu.core_type<tc>, window_params = [{transform_indices = @transform_0, window_bounds = array<i64: 1, 20, 26, 4>}, {pipeline_mode = #tpu.pipeline_mode<synchronous>, transform_indices = @transform_1, window_bounds = array<i64: 36, 8>}, {pipeline_mode = #tpu.pipeline_mode<synchronous>, transform_indices = @transform_2, window_bounds = array<i64: 1, 8>}, {pipeline_mode = #tpu.pipeline_mode<synchronous>, transform_indices = @transform_3, window_bounds = array<i64: 36, 4>}, {pipeline_mode = #tpu.pipeline_mode<synchronous>, transform_indices = @transform_4, window_bounds = array<i64: 1, 4>}, {pipeline_mode = #tpu.pipeline_mode<synchronous>, transform_indices = @transform_5, window_bounds = array<i64: 4, 4>}, {transform_indices = @transform_6, window_bounds = array<i64: 1, 4, 128>}]} {
    %c8_i32 = arith.constant 8 : i32
    %0 = arith.muli %arg1, %c8_i32 : i32
    %c0 = arith.constant 0 : index
    %1 = arith.index_cast %0 : i32 to index
    %c0_0 = arith.constant 0 : index
    %c0_1 = arith.constant 0 : index
    %2 = vector.load %arg2[%c0, %1, %c0_0, %c0_1] : memref<1x20x26x4xf32, #tpu.memory_space<vmem>>, vector<1x12x26x4xf32>
    %3 = vector.shape_cast %2 : vector<1x12x26x4xf32> to vector<12x26x4xf32>
    %4 = vector.extract_strided_slice %3 {offsets = [0, 0, 0], sizes = [10, 24, 4], strides = [1, 1, 1]} : vector<12x26x4xf32> to vector<10x24x4xf32>
    %5 = vector.shape_cast %4 : vector<10x24x4xf32> to vector<240x4xf32>
    %6 = vector.extract_strided_slice %3 {offsets = [0, 1, 0], sizes = [10, 24, 4], strides = [1, 1, 1]} : vector<12x26x4xf32> to vector<10x24x4xf32>
    %7 = vector.shape_cast %6 : vector<10x24x4xf32> to vector<240x4xf32>
    %8 = vector.extract_strided_slice %3 {offsets = [0, 2, 0], sizes = [10, 24, 4], strides = [1, 1, 1]} : vector<12x26x4xf32> to vector<10x24x4xf32>
    %9 = vector.shape_cast %8 : vector<10x24x4xf32> to vector<240x4xf32>
    %10 = vector.extract_strided_slice %3 {offsets = [1, 0, 0], sizes = [10, 24, 4], strides = [1, 1, 1]} : vector<12x26x4xf32> to vector<10x24x4xf32>
    %11 = vector.shape_cast %10 : vector<10x24x4xf32> to vector<240x4xf32>
    %12 = vector.extract_strided_slice %3 {offsets = [1, 1, 0], sizes = [10, 24, 4], strides = [1, 1, 1]} : vector<12x26x4xf32> to vector<10x24x4xf32>
    %13 = vector.shape_cast %12 : vector<10x24x4xf32> to vector<240x4xf32>
    %14 = vector.extract_strided_slice %3 {offsets = [1, 2, 0], sizes = [10, 24, 4], strides = [1, 1, 1]} : vector<12x26x4xf32> to vector<10x24x4xf32>
    %15 = vector.shape_cast %14 : vector<10x24x4xf32> to vector<240x4xf32>
    %16 = vector.extract_strided_slice %3 {offsets = [2, 0, 0], sizes = [10, 24, 4], strides = [1, 1, 1]} : vector<12x26x4xf32> to vector<10x24x4xf32>
    %17 = vector.shape_cast %16 : vector<10x24x4xf32> to vector<240x4xf32>
    %18 = vector.extract_strided_slice %3 {offsets = [2, 1, 0], sizes = [10, 24, 4], strides = [1, 1, 1]} : vector<12x26x4xf32> to vector<10x24x4xf32>
    %19 = vector.shape_cast %18 : vector<10x24x4xf32> to vector<240x4xf32>
    %20 = vector.extract_strided_slice %3 {offsets = [2, 2, 0], sizes = [10, 24, 4], strides = [1, 1, 1]} : vector<12x26x4xf32> to vector<10x24x4xf32>
    %21 = vector.shape_cast %20 : vector<10x24x4xf32> to vector<240x4xf32>
    %22 = tpu.concatenate %5, %7, %9, %11, %13, %15, %17, %19, %21 in 1 : vector<240x4xf32>, vector<240x4xf32>, vector<240x4xf32>, vector<240x4xf32>, vector<240x4xf32>, vector<240x4xf32>, vector<240x4xf32>, vector<240x4xf32>, vector<240x4xf32> -> vector<240x36xf32>
    %c0_2 = arith.constant 0 : index
    %c0_3 = arith.constant 0 : index
    %23 = vector.load %arg3[%c0_2, %c0_3] : memref<36x8xf32, #tpu.memory_space<vmem>>, vector<36x8xf32>
    %cst = arith.constant dense<0.000000e+00> : vector<240x8xf32>
    %24 = tpu.matmul %22, %23, %cst {dimension_numbers = #tpu.dot_dimension_numbers<[1], [0], [0], [1], [0, 0, 1, 1], [], []>} : vector<240x36xf32>, vector<36x8xf32>, vector<240x8xf32> -> vector<240x8xf32>
    %c0_4 = arith.constant 0 : index
    %c0_5 = arith.constant 0 : index
    %25 = vector.load %arg4[%c0_4, %c0_5] : memref<1x8xf32, #tpu.memory_space<vmem>>, vector<1x8xf32>
    %26 = vector.broadcast %25 : vector<1x8xf32> to vector<240x8xf32>
    %27 = arith.addf %24, %26 : vector<240x8xf32>
    %28 = vector.extract_strided_slice %27 {offsets = [0, 0], sizes = [240, 4], strides = [1, 1]} : vector<240x8xf32> to vector<240x4xf32>
    %cst_6 = arith.constant 0.000000e+00 : f32
    %29 = vector.broadcast %cst_6 : f32 to vector<240x4xf32>
    %30 = arith.maximumf %28, %29 : vector<240x4xf32>
    %31 = vector.shape_cast %30 : vector<240x4xf32> to vector<10x24x4xf32>
    %32 = tpu.iota {dimensions = array<i32: 0>} : vector<10x24x1xi32>
    %33 = vector.broadcast %0 : i32 to vector<10x24x1xi32>
    %34 = arith.addi %32, %33 : vector<10x24x1xi32>
    %35 = tpu.iota {dimensions = array<i32: 1>} : vector<10x24x1xi32>
    %c1_i32 = arith.constant 1 : i32
    %36 = vector.broadcast %c1_i32 : i32 to vector<10x24x1xi32>
    %37 = arith.cmpi sge, %34, %36 : vector<10x24x1xi32>
    %c17_i32 = arith.constant 17 : i32
    %38 = vector.broadcast %c17_i32 : i32 to vector<10x24x1xi32>
    %39 = arith.cmpi slt, %34, %38 : vector<10x24x1xi32>
    %40 = arith.andi %37, %39 : vector<10x24x1xi1>
    %c1_i32_7 = arith.constant 1 : i32
    %41 = vector.broadcast %c1_i32_7 : i32 to vector<10x24x1xi32>
    %42 = arith.cmpi sge, %35, %41 : vector<10x24x1xi32>
    %43 = arith.andi %40, %42 : vector<10x24x1xi1>
    %c17_i32_8 = arith.constant 17 : i32
    %44 = vector.broadcast %c17_i32_8 : i32 to vector<10x24x1xi32>
    %45 = arith.cmpi slt, %35, %44 : vector<10x24x1xi32>
    %46 = arith.andi %43, %45 : vector<10x24x1xi1>
    %cst_9 = arith.constant 0.000000e+00 : f32
    %47 = vector.shape_cast %46 : vector<10x24x1xi1> to vector<10x24x1xi1>
    %48 = vector.broadcast %47 : vector<10x24x1xi1> to vector<10x24x4xi1>
    %49 = vector.broadcast %cst_9 : f32 to vector<10x24x4xf32>
    %50 = arith.select %48, %31, %49 : vector<10x24x4xi1>, vector<10x24x4xf32>
    %51 = vector.extract_strided_slice %27 {offsets = [0, 4], sizes = [240, 4], strides = [1, 1]} : vector<240x8xf32> to vector<240x4xf32>
    %52 = vector.shape_cast %51 : vector<240x4xf32> to vector<10x24x4xf32>
    %53 = vector.extract_strided_slice %52 {offsets = [1, 1, 0], sizes = [8, 16, 4], strides = [1, 1, 1]} : vector<10x24x4xf32> to vector<8x16x4xf32>
    %54 = vector.shape_cast %53 : vector<8x16x4xf32> to vector<128x4xf32>
    %55 = vector.extract_strided_slice %50 {offsets = [0, 0, 0], sizes = [8, 16, 4], strides = [1, 1, 1]} : vector<10x24x4xf32> to vector<8x16x4xf32>
    %56 = vector.shape_cast %55 : vector<8x16x4xf32> to vector<128x4xf32>
    %57 = vector.extract_strided_slice %50 {offsets = [0, 1, 0], sizes = [8, 16, 4], strides = [1, 1, 1]} : vector<10x24x4xf32> to vector<8x16x4xf32>
    %58 = vector.shape_cast %57 : vector<8x16x4xf32> to vector<128x4xf32>
    %59 = vector.extract_strided_slice %50 {offsets = [0, 2, 0], sizes = [8, 16, 4], strides = [1, 1, 1]} : vector<10x24x4xf32> to vector<8x16x4xf32>
    %60 = vector.shape_cast %59 : vector<8x16x4xf32> to vector<128x4xf32>
    %61 = vector.extract_strided_slice %50 {offsets = [1, 0, 0], sizes = [8, 16, 4], strides = [1, 1, 1]} : vector<10x24x4xf32> to vector<8x16x4xf32>
    %62 = vector.shape_cast %61 : vector<8x16x4xf32> to vector<128x4xf32>
    %63 = vector.extract_strided_slice %50 {offsets = [1, 1, 0], sizes = [8, 16, 4], strides = [1, 1, 1]} : vector<10x24x4xf32> to vector<8x16x4xf32>
    %64 = vector.shape_cast %63 : vector<8x16x4xf32> to vector<128x4xf32>
    %65 = vector.extract_strided_slice %50 {offsets = [1, 2, 0], sizes = [8, 16, 4], strides = [1, 1, 1]} : vector<10x24x4xf32> to vector<8x16x4xf32>
    %66 = vector.shape_cast %65 : vector<8x16x4xf32> to vector<128x4xf32>
    %67 = vector.extract_strided_slice %50 {offsets = [2, 0, 0], sizes = [8, 16, 4], strides = [1, 1, 1]} : vector<10x24x4xf32> to vector<8x16x4xf32>
    %68 = vector.shape_cast %67 : vector<8x16x4xf32> to vector<128x4xf32>
    %69 = vector.extract_strided_slice %50 {offsets = [2, 1, 0], sizes = [8, 16, 4], strides = [1, 1, 1]} : vector<10x24x4xf32> to vector<8x16x4xf32>
    %70 = vector.shape_cast %69 : vector<8x16x4xf32> to vector<128x4xf32>
    %71 = vector.extract_strided_slice %50 {offsets = [2, 2, 0], sizes = [8, 16, 4], strides = [1, 1, 1]} : vector<10x24x4xf32> to vector<8x16x4xf32>
    %72 = vector.shape_cast %71 : vector<8x16x4xf32> to vector<128x4xf32>
    %73 = tpu.concatenate %56, %58, %60, %62, %64, %66, %68, %70, %72 in 1 : vector<128x4xf32>, vector<128x4xf32>, vector<128x4xf32>, vector<128x4xf32>, vector<128x4xf32>, vector<128x4xf32>, vector<128x4xf32>, vector<128x4xf32>, vector<128x4xf32> -> vector<128x36xf32>
    %c0_10 = arith.constant 0 : index
    %c0_11 = arith.constant 0 : index
    %74 = vector.load %arg5[%c0_10, %c0_11] : memref<36x4xf32, #tpu.memory_space<vmem>>, vector<36x4xf32>
    %cst_12 = arith.constant dense<0.000000e+00> : vector<128x4xf32>
    %75 = tpu.matmul %73, %74, %cst_12 {dimension_numbers = #tpu.dot_dimension_numbers<[1], [0], [0], [1], [0, 0, 1, 1], [], []>} : vector<128x36xf32>, vector<36x4xf32>, vector<128x4xf32> -> vector<128x4xf32>
    %c0_13 = arith.constant 0 : index
    %c0_14 = arith.constant 0 : index
    %76 = vector.load %arg6[%c0_13, %c0_14] : memref<1x4xf32, #tpu.memory_space<vmem>>, vector<1x4xf32>
    %77 = vector.broadcast %76 : vector<1x4xf32> to vector<128x4xf32>
    %78 = arith.addf %75, %77 : vector<128x4xf32>
    %79 = arith.addf %54, %78 : vector<128x4xf32>
    %c0_15 = arith.constant 0 : index
    %c0_16 = arith.constant 0 : index
    %80 = vector.load %arg7[%c0_15, %c0_16] : memref<4x4xf32, #tpu.memory_space<vmem>>, vector<4x4xf32>
    %cst_17 = arith.constant dense<0.000000e+00> : vector<4x128xf32>
    %81 = tpu.matmul %80, %79, %cst_17 {dimension_numbers = #tpu.dot_dimension_numbers<[1], [1], [0], [0], [0, 0, 1, 0], [], []>} : vector<4x4xf32>, vector<128x4xf32>, vector<4x128xf32> -> vector<4x128xf32>
    %c0_18 = arith.constant 0 : index
    %c0_19 = arith.constant 0 : index
    %c0_20 = arith.constant 0 : index
    %82 = vector.load %arg8[%c0_18, %c0_19, %c0_20] : memref<1x4x128xf32, #tpu.memory_space<vmem>>, vector<1x4x128xf32>
    %83 = vector.shape_cast %82 : vector<1x4x128xf32> to vector<4x128xf32>
    %84 = vector.shape_cast %81 : vector<4x128xf32> to vector<1x4x128xf32>
    tpu.vector_store %arg8[%c0_18, %c0_19, %c0_20], %84 {strides = array<i32>} : memref<1x4x128xf32, #tpu.memory_space<vmem>>, vector<1x4x128xf32>,
    return
  }
  func.func @transform_0(%arg0: i32, %arg1: i32) -> (i32, i32, i32, i32) {
    %c0_i32 = arith.constant 0 : i32
    %c0_i32_0 = arith.constant 0 : i32
    %c0_i32_1 = arith.constant 0 : i32
    %c0_i32_2 = arith.constant 0 : i32
    return %arg0, %c0_i32, %c0_i32_0, %c0_i32_1 : i32, i32, i32, i32
  }
  func.func @transform_1(%arg0: i32, %arg1: i32) -> (i32, i32) {
    %c0_i32 = arith.constant 0 : i32
    %c0_i32_0 = arith.constant 0 : i32
    %c0_i32_1 = arith.constant 0 : i32
    return %c0_i32, %c0_i32_0 : i32, i32
  }
  func.func @transform_2(%arg0: i32, %arg1: i32) -> (i32, i32) {
    %c0_i32 = arith.constant 0 : i32
    %c0_i32_0 = arith.constant 0 : i32
    %c0_i32_1 = arith.constant 0 : i32
    return %c0_i32, %c0_i32_0 : i32, i32
  }
  func.func @transform_3(%arg0: i32, %arg1: i32) -> (i32, i32) {
    %c0_i32 = arith.constant 0 : i32
    %c0_i32_0 = arith.constant 0 : i32
    %c0_i32_1 = arith.constant 0 : i32
    return %c0_i32, %c0_i32_0 : i32, i32
  }
  func.func @transform_4(%arg0: i32, %arg1: i32) -> (i32, i32) {
    %c0_i32 = arith.constant 0 : i32
    %c0_i32_0 = arith.constant 0 : i32
    %c0_i32_1 = arith.constant 0 : i32
    return %c0_i32, %c0_i32_0 : i32, i32
  }
  func.func @transform_5(%arg0: i32, %arg1: i32) -> (i32, i32) {
    %c0_i32 = arith.constant 0 : i32
    %c0_i32_0 = arith.constant 0 : i32
    %c0_i32_1 = arith.constant 0 : i32
    return %c0_i32, %c0_i32_0 : i32, i32
  }
  func.func @transform_6(%arg0: i32, %arg1: i32) -> (i32, i32, i32) {
    %c0_i32 = arith.constant 0 : i32
    %c0_i32_0 = arith.constant 0 : i32
    return %arg0, %c0_i32, %arg1 : i32, i32, i32
  }
}

module attributes {stable_mosaic.version = 11 : i64} {
  func.func @_resblock_kernel(%arg0: i32, %arg1: i32, %arg2: memref<1x20x26x4xf32, #tpu.memory_space<vmem>>, %arg3: memref<36x8xf32, #tpu.memory_space<vmem>>, %arg4: memref<1x8xf32, #tpu.memory_space<vmem>>, %arg5: memref<36x4xf32, #tpu.memory_space<vmem>>, %arg6: memref<1x4xf32, #tpu.memory_space<vmem>>, %arg7: memref<4x4xf32, #tpu.memory_space<vmem>>, %arg8: memref<1x4x128xf32, #tpu.memory_space<vmem>>) attributes {dimension_semantics = [#tpu.dimension_semantics<parallel>, #tpu.dimension_semantics<parallel>], iteration_bounds = array<i64: 2, 2>, scalar_prefetch = 0 : i64, scratch_operands = 0 : i64, tpu.core_type = #tpu.core_type<tc>, window_params = [{transform_indices = @transform_0, window_bounds = array<i64: 1, 20, 26, 4>}, {pipeline_mode = #tpu.pipeline_mode<synchronous>, transform_indices = @transform_1, window_bounds = array<i64: 36, 8>}, {pipeline_mode = #tpu.pipeline_mode<synchronous>, transform_indices = @transform_2, window_bounds = array<i64: 1, 8>}, {pipeline_mode = #tpu.pipeline_mode<synchronous>, transform_indices = @transform_3, window_bounds = array<i64: 36, 4>}, {pipeline_mode = #tpu.pipeline_mode<synchronous>, transform_indices = @transform_4, window_bounds = array<i64: 1, 4>}, {pipeline_mode = #tpu.pipeline_mode<synchronous>, transform_indices = @transform_5, window_bounds = array<i64: 4, 4>}, {transform_indices = @transform_6, window_bounds = array<i64: 1, 4, 128>}]} {
    %c8_i32 = arith.constant 8 : i32
    %0 = arith.muli %arg1, %c8_i32 : i32
    %c0 = arith.constant 0 : index
    %1 = arith.index_cast %0 : i32 to index
    %c0_0 = arith.constant 0 : index
    %c0_1 = arith.constant 0 : index
    %2 = vector.load %arg2[%c0, %1, %c0_0, %c0_1] : memref<1x20x26x4xf32, #tpu.memory_space<vmem>>, vector<1x12x26x4xf32>
    %3 = vector.shape_cast %2 : vector<1x12x26x4xf32> to vector<12x26x4xf32>
    %4 = vector.extract_strided_slice %3 {offsets = [0, 0, 0], sizes = [10, 24, 4], strides = [1, 1, 1]} : vector<12x26x4xf32> to vector<10x24x4xf32>
    %5 = vector.shape_cast %4 : vector<10x24x4xf32> to vector<240x4xf32>
    %6 = vector.extract_strided_slice %3 {offsets = [0, 1, 0], sizes = [10, 24, 4], strides = [1, 1, 1]} : vector<12x26x4xf32> to vector<10x24x4xf32>
    %7 = vector.shape_cast %6 : vector<10x24x4xf32> to vector<240x4xf32>
    %8 = vector.extract_strided_slice %3 {offsets = [0, 2, 0], sizes = [10, 24, 4], strides = [1, 1, 1]} : vector<12x26x4xf32> to vector<10x24x4xf32>
    %9 = vector.shape_cast %8 : vector<10x24x4xf32> to vector<240x4xf32>
    %10 = vector.extract_strided_slice %3 {offsets = [1, 0, 0], sizes = [10, 24, 4], strides = [1, 1, 1]} : vector<12x26x4xf32> to vector<10x24x4xf32>
    %11 = vector.shape_cast %10 : vector<10x24x4xf32> to vector<240x4xf32>
    %12 = vector.extract_strided_slice %3 {offsets = [1, 1, 0], sizes = [10, 24, 4], strides = [1, 1, 1]} : vector<12x26x4xf32> to vector<10x24x4xf32>
    %13 = vector.shape_cast %12 : vector<10x24x4xf32> to vector<240x4xf32>
    %14 = vector.extract_strided_slice %3 {offsets = [1, 2, 0], sizes = [10, 24, 4], strides = [1, 1, 1]} : vector<12x26x4xf32> to vector<10x24x4xf32>
    %15 = vector.shape_cast %14 : vector<10x24x4xf32> to vector<240x4xf32>
    %16 = vector.extract_strided_slice %3 {offsets = [2, 0, 0], sizes = [10, 24, 4], strides = [1, 1, 1]} : vector<12x26x4xf32> to vector<10x24x4xf32>
    %17 = vector.shape_cast %16 : vector<10x24x4xf32> to vector<240x4xf32>
    %18 = vector.extract_strided_slice %3 {offsets = [2, 1, 0], sizes = [10, 24, 4], strides = [1, 1, 1]} : vector<12x26x4xf32> to vector<10x24x4xf32>
    %19 = vector.shape_cast %18 : vector<10x24x4xf32> to vector<240x4xf32>
    %20 = vector.extract_strided_slice %3 {offsets = [2, 2, 0], sizes = [10, 24, 4], strides = [1, 1, 1]} : vector<12x26x4xf32> to vector<10x24x4xf32>
    %21 = vector.shape_cast %20 : vector<10x24x4xf32> to vector<240x4xf32>
    %c0_2 = arith.constant 0 : index
    %c0_3 = arith.constant 0 : index
    %22 = vector.load %arg3[%c0_2, %c0_3] : memref<36x8xf32, #tpu.memory_space<vmem>>, vector<36x8xf32>
    %cst = arith.constant 0.000000e+00 : f32
    %23 = vector.broadcast %cst : f32 to vector<240x8xf32>
    %24 = vector.extract_strided_slice %22 {offsets = [0, 0], sizes = [4, 8], strides = [1, 1]} : vector<36x8xf32> to vector<4x8xf32>
    %cst_4 = arith.constant dense<0.000000e+00> : vector<240x8xf32>
    %25 = tpu.matmul %5, %24, %cst_4 {dimension_numbers = #tpu.dot_dimension_numbers<[1], [0], [0], [1], [0, 0, 1, 1], [], []>} : vector<240x4xf32>, vector<4x8xf32>, vector<240x8xf32> -> vector<240x8xf32>
    %26 = arith.addf %23, %25 : vector<240x8xf32>
    %27 = vector.extract_strided_slice %22 {offsets = [4, 0], sizes = [4, 8], strides = [1, 1]} : vector<36x8xf32> to vector<4x8xf32>
    %cst_5 = arith.constant dense<0.000000e+00> : vector<240x8xf32>
    %28 = tpu.matmul %7, %27, %cst_5 {dimension_numbers = #tpu.dot_dimension_numbers<[1], [0], [0], [1], [0, 0, 1, 1], [], []>} : vector<240x4xf32>, vector<4x8xf32>, vector<240x8xf32> -> vector<240x8xf32>
    %29 = arith.addf %26, %28 : vector<240x8xf32>
    %30 = vector.extract_strided_slice %22 {offsets = [8, 0], sizes = [4, 8], strides = [1, 1]} : vector<36x8xf32> to vector<4x8xf32>
    %cst_6 = arith.constant dense<0.000000e+00> : vector<240x8xf32>
    %31 = tpu.matmul %9, %30, %cst_6 {dimension_numbers = #tpu.dot_dimension_numbers<[1], [0], [0], [1], [0, 0, 1, 1], [], []>} : vector<240x4xf32>, vector<4x8xf32>, vector<240x8xf32> -> vector<240x8xf32>
    %32 = arith.addf %29, %31 : vector<240x8xf32>
    %33 = vector.extract_strided_slice %22 {offsets = [12, 0], sizes = [4, 8], strides = [1, 1]} : vector<36x8xf32> to vector<4x8xf32>
    %cst_7 = arith.constant dense<0.000000e+00> : vector<240x8xf32>
    %34 = tpu.matmul %11, %33, %cst_7 {dimension_numbers = #tpu.dot_dimension_numbers<[1], [0], [0], [1], [0, 0, 1, 1], [], []>} : vector<240x4xf32>, vector<4x8xf32>, vector<240x8xf32> -> vector<240x8xf32>
    %35 = arith.addf %32, %34 : vector<240x8xf32>
    %36 = vector.extract_strided_slice %22 {offsets = [16, 0], sizes = [4, 8], strides = [1, 1]} : vector<36x8xf32> to vector<4x8xf32>
    %cst_8 = arith.constant dense<0.000000e+00> : vector<240x8xf32>
    %37 = tpu.matmul %13, %36, %cst_8 {dimension_numbers = #tpu.dot_dimension_numbers<[1], [0], [0], [1], [0, 0, 1, 1], [], []>} : vector<240x4xf32>, vector<4x8xf32>, vector<240x8xf32> -> vector<240x8xf32>
    %38 = arith.addf %35, %37 : vector<240x8xf32>
    %39 = vector.extract_strided_slice %22 {offsets = [20, 0], sizes = [4, 8], strides = [1, 1]} : vector<36x8xf32> to vector<4x8xf32>
    %cst_9 = arith.constant dense<0.000000e+00> : vector<240x8xf32>
    %40 = tpu.matmul %15, %39, %cst_9 {dimension_numbers = #tpu.dot_dimension_numbers<[1], [0], [0], [1], [0, 0, 1, 1], [], []>} : vector<240x4xf32>, vector<4x8xf32>, vector<240x8xf32> -> vector<240x8xf32>
    %41 = arith.addf %38, %40 : vector<240x8xf32>
    %42 = vector.extract_strided_slice %22 {offsets = [24, 0], sizes = [4, 8], strides = [1, 1]} : vector<36x8xf32> to vector<4x8xf32>
    %cst_10 = arith.constant dense<0.000000e+00> : vector<240x8xf32>
    %43 = tpu.matmul %17, %42, %cst_10 {dimension_numbers = #tpu.dot_dimension_numbers<[1], [0], [0], [1], [0, 0, 1, 1], [], []>} : vector<240x4xf32>, vector<4x8xf32>, vector<240x8xf32> -> vector<240x8xf32>
    %44 = arith.addf %41, %43 : vector<240x8xf32>
    %45 = vector.extract_strided_slice %22 {offsets = [28, 0], sizes = [4, 8], strides = [1, 1]} : vector<36x8xf32> to vector<4x8xf32>
    %cst_11 = arith.constant dense<0.000000e+00> : vector<240x8xf32>
    %46 = tpu.matmul %19, %45, %cst_11 {dimension_numbers = #tpu.dot_dimension_numbers<[1], [0], [0], [1], [0, 0, 1, 1], [], []>} : vector<240x4xf32>, vector<4x8xf32>, vector<240x8xf32> -> vector<240x8xf32>
    %47 = arith.addf %44, %46 : vector<240x8xf32>
    %48 = vector.extract_strided_slice %22 {offsets = [32, 0], sizes = [4, 8], strides = [1, 1]} : vector<36x8xf32> to vector<4x8xf32>
    %cst_12 = arith.constant dense<0.000000e+00> : vector<240x8xf32>
    %49 = tpu.matmul %21, %48, %cst_12 {dimension_numbers = #tpu.dot_dimension_numbers<[1], [0], [0], [1], [0, 0, 1, 1], [], []>} : vector<240x4xf32>, vector<4x8xf32>, vector<240x8xf32> -> vector<240x8xf32>
    %50 = arith.addf %47, %49 : vector<240x8xf32>
    %c0_13 = arith.constant 0 : index
    %c0_14 = arith.constant 0 : index
    %51 = vector.load %arg4[%c0_13, %c0_14] : memref<1x8xf32, #tpu.memory_space<vmem>>, vector<1x8xf32>
    %52 = vector.broadcast %51 : vector<1x8xf32> to vector<240x8xf32>
    %53 = arith.addf %50, %52 : vector<240x8xf32>
    %54 = vector.extract_strided_slice %53 {offsets = [0, 0], sizes = [240, 4], strides = [1, 1]} : vector<240x8xf32> to vector<240x4xf32>
    %cst_15 = arith.constant 0.000000e+00 : f32
    %55 = vector.broadcast %cst_15 : f32 to vector<240x4xf32>
    %56 = arith.maximumf %54, %55 : vector<240x4xf32>
    %57 = vector.shape_cast %56 : vector<240x4xf32> to vector<10x24x4xf32>
    %58 = tpu.iota {dimensions = array<i32: 0>} : vector<10x24x1xi32>
    %59 = vector.broadcast %0 : i32 to vector<10x24x1xi32>
    %60 = arith.addi %58, %59 : vector<10x24x1xi32>
    %61 = tpu.iota {dimensions = array<i32: 1>} : vector<10x24x1xi32>
    %c1_i32 = arith.constant 1 : i32
    %62 = vector.broadcast %c1_i32 : i32 to vector<10x24x1xi32>
    %63 = arith.cmpi sge, %60, %62 : vector<10x24x1xi32>
    %c17_i32 = arith.constant 17 : i32
    %64 = vector.broadcast %c17_i32 : i32 to vector<10x24x1xi32>
    %65 = arith.cmpi slt, %60, %64 : vector<10x24x1xi32>
    %66 = arith.andi %63, %65 : vector<10x24x1xi1>
    %c1_i32_16 = arith.constant 1 : i32
    %67 = vector.broadcast %c1_i32_16 : i32 to vector<10x24x1xi32>
    %68 = arith.cmpi sge, %61, %67 : vector<10x24x1xi32>
    %69 = arith.andi %66, %68 : vector<10x24x1xi1>
    %c17_i32_17 = arith.constant 17 : i32
    %70 = vector.broadcast %c17_i32_17 : i32 to vector<10x24x1xi32>
    %71 = arith.cmpi slt, %61, %70 : vector<10x24x1xi32>
    %72 = arith.andi %69, %71 : vector<10x24x1xi1>
    %cst_18 = arith.constant 0.000000e+00 : f32
    %73 = vector.shape_cast %72 : vector<10x24x1xi1> to vector<10x24x1xi1>
    %74 = vector.broadcast %73 : vector<10x24x1xi1> to vector<10x24x4xi1>
    %75 = vector.broadcast %cst_18 : f32 to vector<10x24x4xf32>
    %76 = arith.select %74, %57, %75 : vector<10x24x4xi1>, vector<10x24x4xf32>
    %77 = vector.extract_strided_slice %53 {offsets = [0, 4], sizes = [240, 4], strides = [1, 1]} : vector<240x8xf32> to vector<240x4xf32>
    %78 = vector.shape_cast %77 : vector<240x4xf32> to vector<10x24x4xf32>
    %79 = vector.extract_strided_slice %78 {offsets = [1, 1, 0], sizes = [8, 16, 4], strides = [1, 1, 1]} : vector<10x24x4xf32> to vector<8x16x4xf32>
    %80 = vector.shape_cast %79 : vector<8x16x4xf32> to vector<128x4xf32>
    %81 = vector.extract_strided_slice %76 {offsets = [0, 0, 0], sizes = [8, 16, 4], strides = [1, 1, 1]} : vector<10x24x4xf32> to vector<8x16x4xf32>
    %82 = vector.shape_cast %81 : vector<8x16x4xf32> to vector<128x4xf32>
    %83 = vector.extract_strided_slice %76 {offsets = [0, 1, 0], sizes = [8, 16, 4], strides = [1, 1, 1]} : vector<10x24x4xf32> to vector<8x16x4xf32>
    %84 = vector.shape_cast %83 : vector<8x16x4xf32> to vector<128x4xf32>
    %85 = vector.extract_strided_slice %76 {offsets = [0, 2, 0], sizes = [8, 16, 4], strides = [1, 1, 1]} : vector<10x24x4xf32> to vector<8x16x4xf32>
    %86 = vector.shape_cast %85 : vector<8x16x4xf32> to vector<128x4xf32>
    %87 = vector.extract_strided_slice %76 {offsets = [1, 0, 0], sizes = [8, 16, 4], strides = [1, 1, 1]} : vector<10x24x4xf32> to vector<8x16x4xf32>
    %88 = vector.shape_cast %87 : vector<8x16x4xf32> to vector<128x4xf32>
    %89 = vector.extract_strided_slice %76 {offsets = [1, 1, 0], sizes = [8, 16, 4], strides = [1, 1, 1]} : vector<10x24x4xf32> to vector<8x16x4xf32>
    %90 = vector.shape_cast %89 : vector<8x16x4xf32> to vector<128x4xf32>
    %91 = vector.extract_strided_slice %76 {offsets = [1, 2, 0], sizes = [8, 16, 4], strides = [1, 1, 1]} : vector<10x24x4xf32> to vector<8x16x4xf32>
    %92 = vector.shape_cast %91 : vector<8x16x4xf32> to vector<128x4xf32>
    %93 = vector.extract_strided_slice %76 {offsets = [2, 0, 0], sizes = [8, 16, 4], strides = [1, 1, 1]} : vector<10x24x4xf32> to vector<8x16x4xf32>
    %94 = vector.shape_cast %93 : vector<8x16x4xf32> to vector<128x4xf32>
    %95 = vector.extract_strided_slice %76 {offsets = [2, 1, 0], sizes = [8, 16, 4], strides = [1, 1, 1]} : vector<10x24x4xf32> to vector<8x16x4xf32>
    %96 = vector.shape_cast %95 : vector<8x16x4xf32> to vector<128x4xf32>
    %97 = vector.extract_strided_slice %76 {offsets = [2, 2, 0], sizes = [8, 16, 4], strides = [1, 1, 1]} : vector<10x24x4xf32> to vector<8x16x4xf32>
    %98 = vector.shape_cast %97 : vector<8x16x4xf32> to vector<128x4xf32>
    %c0_19 = arith.constant 0 : index
    %c0_20 = arith.constant 0 : index
    %99 = vector.load %arg5[%c0_19, %c0_20] : memref<36x4xf32, #tpu.memory_space<vmem>>, vector<36x4xf32>
    %cst_21 = arith.constant 0.000000e+00 : f32
    %100 = vector.broadcast %cst_21 : f32 to vector<128x4xf32>
    %101 = vector.extract_strided_slice %99 {offsets = [0, 0], sizes = [4, 4], strides = [1, 1]} : vector<36x4xf32> to vector<4x4xf32>
    %cst_22 = arith.constant dense<0.000000e+00> : vector<128x4xf32>
    %102 = tpu.matmul %82, %101, %cst_22 {dimension_numbers = #tpu.dot_dimension_numbers<[1], [0], [0], [1], [0, 0, 1, 1], [], []>} : vector<128x4xf32>, vector<4x4xf32>, vector<128x4xf32> -> vector<128x4xf32>
    %103 = arith.addf %100, %102 : vector<128x4xf32>
    %104 = vector.extract_strided_slice %99 {offsets = [4, 0], sizes = [4, 4], strides = [1, 1]} : vector<36x4xf32> to vector<4x4xf32>
    %cst_23 = arith.constant dense<0.000000e+00> : vector<128x4xf32>
    %105 = tpu.matmul %84, %104, %cst_23 {dimension_numbers = #tpu.dot_dimension_numbers<[1], [0], [0], [1], [0, 0, 1, 1], [], []>} : vector<128x4xf32>, vector<4x4xf32>, vector<128x4xf32> -> vector<128x4xf32>
    %106 = arith.addf %103, %105 : vector<128x4xf32>
    %107 = vector.extract_strided_slice %99 {offsets = [8, 0], sizes = [4, 4], strides = [1, 1]} : vector<36x4xf32> to vector<4x4xf32>
    %cst_24 = arith.constant dense<0.000000e+00> : vector<128x4xf32>
    %108 = tpu.matmul %86, %107, %cst_24 {dimension_numbers = #tpu.dot_dimension_numbers<[1], [0], [0], [1], [0, 0, 1, 1], [], []>} : vector<128x4xf32>, vector<4x4xf32>, vector<128x4xf32> -> vector<128x4xf32>
    %109 = arith.addf %106, %108 : vector<128x4xf32>
    %110 = vector.extract_strided_slice %99 {offsets = [12, 0], sizes = [4, 4], strides = [1, 1]} : vector<36x4xf32> to vector<4x4xf32>
    %cst_25 = arith.constant dense<0.000000e+00> : vector<128x4xf32>
    %111 = tpu.matmul %88, %110, %cst_25 {dimension_numbers = #tpu.dot_dimension_numbers<[1], [0], [0], [1], [0, 0, 1, 1], [], []>} : vector<128x4xf32>, vector<4x4xf32>, vector<128x4xf32> -> vector<128x4xf32>
    %112 = arith.addf %109, %111 : vector<128x4xf32>
    %113 = vector.extract_strided_slice %99 {offsets = [16, 0], sizes = [4, 4], strides = [1, 1]} : vector<36x4xf32> to vector<4x4xf32>
    %cst_26 = arith.constant dense<0.000000e+00> : vector<128x4xf32>
    %114 = tpu.matmul %90, %113, %cst_26 {dimension_numbers = #tpu.dot_dimension_numbers<[1], [0], [0], [1], [0, 0, 1, 1], [], []>} : vector<128x4xf32>, vector<4x4xf32>, vector<128x4xf32> -> vector<128x4xf32>
    %115 = arith.addf %112, %114 : vector<128x4xf32>
    %116 = vector.extract_strided_slice %99 {offsets = [20, 0], sizes = [4, 4], strides = [1, 1]} : vector<36x4xf32> to vector<4x4xf32>
    %cst_27 = arith.constant dense<0.000000e+00> : vector<128x4xf32>
    %117 = tpu.matmul %92, %116, %cst_27 {dimension_numbers = #tpu.dot_dimension_numbers<[1], [0], [0], [1], [0, 0, 1, 1], [], []>} : vector<128x4xf32>, vector<4x4xf32>, vector<128x4xf32> -> vector<128x4xf32>
    %118 = arith.addf %115, %117 : vector<128x4xf32>
    %119 = vector.extract_strided_slice %99 {offsets = [24, 0], sizes = [4, 4], strides = [1, 1]} : vector<36x4xf32> to vector<4x4xf32>
    %cst_28 = arith.constant dense<0.000000e+00> : vector<128x4xf32>
    %120 = tpu.matmul %94, %119, %cst_28 {dimension_numbers = #tpu.dot_dimension_numbers<[1], [0], [0], [1], [0, 0, 1, 1], [], []>} : vector<128x4xf32>, vector<4x4xf32>, vector<128x4xf32> -> vector<128x4xf32>
    %121 = arith.addf %118, %120 : vector<128x4xf32>
    %122 = vector.extract_strided_slice %99 {offsets = [28, 0], sizes = [4, 4], strides = [1, 1]} : vector<36x4xf32> to vector<4x4xf32>
    %cst_29 = arith.constant dense<0.000000e+00> : vector<128x4xf32>
    %123 = tpu.matmul %96, %122, %cst_29 {dimension_numbers = #tpu.dot_dimension_numbers<[1], [0], [0], [1], [0, 0, 1, 1], [], []>} : vector<128x4xf32>, vector<4x4xf32>, vector<128x4xf32> -> vector<128x4xf32>
    %124 = arith.addf %121, %123 : vector<128x4xf32>
    %125 = vector.extract_strided_slice %99 {offsets = [32, 0], sizes = [4, 4], strides = [1, 1]} : vector<36x4xf32> to vector<4x4xf32>
    %cst_30 = arith.constant dense<0.000000e+00> : vector<128x4xf32>
    %126 = tpu.matmul %98, %125, %cst_30 {dimension_numbers = #tpu.dot_dimension_numbers<[1], [0], [0], [1], [0, 0, 1, 1], [], []>} : vector<128x4xf32>, vector<4x4xf32>, vector<128x4xf32> -> vector<128x4xf32>
    %127 = arith.addf %124, %126 : vector<128x4xf32>
    %c0_31 = arith.constant 0 : index
    %c0_32 = arith.constant 0 : index
    %128 = vector.load %arg6[%c0_31, %c0_32] : memref<1x4xf32, #tpu.memory_space<vmem>>, vector<1x4xf32>
    %129 = vector.broadcast %128 : vector<1x4xf32> to vector<128x4xf32>
    %130 = arith.addf %127, %129 : vector<128x4xf32>
    %131 = arith.addf %80, %130 : vector<128x4xf32>
    %c0_33 = arith.constant 0 : index
    %c0_34 = arith.constant 0 : index
    %132 = vector.load %arg7[%c0_33, %c0_34] : memref<4x4xf32, #tpu.memory_space<vmem>>, vector<4x4xf32>
    %cst_35 = arith.constant dense<0.000000e+00> : vector<4x128xf32>
    %133 = tpu.matmul %132, %131, %cst_35 {dimension_numbers = #tpu.dot_dimension_numbers<[1], [1], [0], [0], [0, 0, 1, 0], [], []>} : vector<4x4xf32>, vector<128x4xf32>, vector<4x128xf32> -> vector<4x128xf32>
    %c0_36 = arith.constant 0 : index
    %c0_37 = arith.constant 0 : index
    %c0_38 = arith.constant 0 : index
    %134 = vector.load %arg8[%c0_36, %c0_37, %c0_38] : memref<1x4x128xf32, #tpu.memory_space<vmem>>, vector<1x4x128xf32>
    %135 = vector.shape_cast %134 : vector<1x4x128xf32> to vector<4x128xf32>
    %136 = vector.shape_cast %133 : vector<4x128xf32> to vector<1x4x128xf32>
    tpu.vector_store %arg8[%c0_36, %c0_37, %c0_38], %136 {strides = array<i32>} : memref<1x4x128xf32, #tpu.memory_space<vmem>>, vector<1x4x128xf32>,
    return
  }
  func.func @transform_0(%arg0: i32, %arg1: i32) -> (i32, i32, i32, i32) {
    %c0_i32 = arith.constant 0 : i32
    %c0_i32_0 = arith.constant 0 : i32
    %c0_i32_1 = arith.constant 0 : i32
    %c0_i32_2 = arith.constant 0 : i32
    return %arg0, %c0_i32, %c0_i32_0, %c0_i32_1 : i32, i32, i32, i32
  }
  func.func @transform_1(%arg0: i32, %arg1: i32) -> (i32, i32) {
    %c0_i32 = arith.constant 0 : i32
    %c0_i32_0 = arith.constant 0 : i32
    %c0_i32_1 = arith.constant 0 : i32
    return %c0_i32, %c0_i32_0 : i32, i32
  }
  func.func @transform_2(%arg0: i32, %arg1: i32) -> (i32, i32) {
    %c0_i32 = arith.constant 0 : i32
    %c0_i32_0 = arith.constant 0 : i32
    %c0_i32_1 = arith.constant 0 : i32
    return %c0_i32, %c0_i32_0 : i32, i32
  }
  func.func @transform_3(%arg0: i32, %arg1: i32) -> (i32, i32) {
    %c0_i32 = arith.constant 0 : i32
    %c0_i32_0 = arith.constant 0 : i32
    %c0_i32_1 = arith.constant 0 : i32
    return %c0_i32, %c0_i32_0 : i32, i32
  }
  func.func @transform_4(%arg0: i32, %arg1: i32) -> (i32, i32) {
    %c0_i32 = arith.constant 0 : i32
    %c0_i32_0 = arith.constant 0 : i32
    %c0_i32_1 = arith.constant 0 : i32
    return %c0_i32, %c0_i32_0 : i32, i32
  }
  func.func @transform_5(%arg0: i32, %arg1: i32) -> (i32, i32) {
    %c0_i32 = arith.constant 0 : i32
    %c0_i32_0 = arith.constant 0 : i32
    %c0_i32_1 = arith.constant 0 : i32
    return %c0_i32, %c0_i32_0 : i32, i32
  }
  func.func @transform_6(%arg0: i32, %arg1: i32) -> (i32, i32, i32) {
    %c0_i32 = arith.constant 0 : i32
    %c0_i32_0 = arith.constant 0 : i32
    return %arg0, %c0_i32, %arg1 : i32, i32, i32
  }
}

</mosaic_0001>

<bundles_post_ra>
// kernel: tpu_custom_call.1
= control target key start
LH: loop header
LB: loop body
LE: loop exit
PB: predicated region body
PF: predicated region fallthrough
CT: control target
= control target key end

     0   :  { %s6343_s0 = inlined_call_operand.vmem [shape: f32[2,20,26,4], index: 0, kind: input, shape index: {}]   ;;  %s6344_s1 = inlined_call_operand.vmem [shape: f32[36,8], index: 1, kind: input, shape index: {}]   ;;  %s6345_s2 = inlined_call_operand.vmem [shape: f32[1,8], index: 2, kind: input, shape index: {}]   ;;  %s6346_s3 = inlined_call_operand.vmem [shape: f32[36,4], index: 3, kind: input, shape index: {}]   ;;  %s6347_s4 = inlined_call_operand.vmem [shape: f32[1,4], index: 4, kind: input, shape index: {}]   ;;  %s6348_s5 = inlined_call_operand.vmem [shape: f32[4,4], index: 5, kind: input, shape index: {}]   ;;  %s6349_s6 = inlined_call_operand.hbm [shape: f32[2,4,256], index: 6, kind: output, shape index: {}]  }
   0x1   :  { %6362 = sst [smem:[#allocation5_spill]] %s6343_s0 }
   0x2   :  { %11 = vsyncpa [#allocation3], 0 }
   0x3   :  { %13 = vsyncpa [#allocation3 + $0x1], 0  ;;  %s3912_s21 = smov 0   ;;  %s3914_s22 = smov 0  }
   0x4   :  { %s3916_s23 = smov 0   ;;  %s3918_s24 = smov 0  }
   0x5   :  { %s3920_s25 = smov 0   ;;  %s3922_s26 = smov 0  }
   0x6   :  { %s3924_s27 = smov 0   ;;  %s3926_s28 = smov 0  }
   0x7 LB: > { %s3308_s29 = sadd.s32 4294967295, %s3862_s28   ;;  %s3309_s30 = sadd.s32 4294967294, %s3862_s28   ;;  %s3862_s28 = sphi %s3926_s28, %s19_s28   ;;  %s3858_s27 = sphi %s3924_s27, %s6450_s27   ;;  %s3854_s26 = sphi %s3922_s26, %s6449_s26   ;;  %s3850_s25 = sphi %s3920_s25, %s6448_s25   ;;  %s3846_s24 = sphi %s3918_s24, %s6447_s24   ;;  %s3842_s23 = sphi %s3916_s23, %s6446_s23   ;;  %s3838_s22 = sphi %s3914_s22, %s6445_s22   ;;  %s3834_s21 = sphi %s3912_s21, %s6444_s21  }
   0x8   : > { %s28_s7 = sadd.s32 1, %s3854_s26  ;;  %s31_s8 = sadd.s32 1, %s3858_s27 }
   0x9   : > { %p29_p0 = scmp.ge.s32.totalorder %s28_s7, 2  ;;  %p181_p1 = scmp.ne.s32.totalorder %s3842_s23, %s3838_s22 }
   0xa   : > { %p182_p2 = scmp.eq.s32.totalorder %s3308_s29, 3  ;;  %p187_p5 = scmp.ne.s32.totalorder %s3838_s22, %s3834_s21 }
   0xb   : > { %s6452_s7 = smov (%p29_p0, %s28_s7), 0  ;;  %s6454_s8 = smov (!%p29_p0, %s31_s8), %s3858_s27 }
   0xc   : > { %s167_s9 = ssub.s32 %s3854_s26, %s6452_s7  ;;  %p3963_p3 = por %p182_p2, %p181_p1 }
   0xd   : > { %p33_p4 = scmp.ge.s32.totalorder %s6454_s8, 2  ;;  %p188_p6 = scmp.eq.s32.totalorder %s3309_s30, 3 }
   0xe   : > { %p3312_p7 = scmp.ge.s32.totalorder %s3862_s28, 1  ;;  %p229_p9 = scmp.lt.s32.totalorder %s3862_s28, 5 }
   0xf   : > { %s6456_s8 = smov (%p33_p4, %s6454_s8), 0  ;;  %p3972_p8 = por %p188_p6, %p187_p5 }
  0x10   : > { %s166_s12 = ssub.s32 %s3858_s27, %s6456_s8  ;;  %s171_s13 = sadd.s32 1, %s3842_s23 }
  0x11   : > { %s168_s14 = sor.u32 %s167_s9, %s166_s12  ;;  %p230_p10 = pnand %p3312_p7, %p229_p9 }
  0x12   : > { %p169_p11 = scmp.eq.s32.totalorder %s168_s14, 0  ;;  %p259_p12 = scmp.lt.s32.totalorder (!%p230_p10), %s3850_s25, 1  ;;  %vm426_vm0 = vcmask (!%p230_p10), 1045504   ;;  %vm355_vm1 = vcmask (!%p230_p10), 1046528   ;;  %v1501_v33 = vld [vmem:[%s6344_s1] sm:$0xff] (!%p230_p10)  ;;  %v1502_v34 = vld [vmem:[%s6344_s1 + $0x8] sm:$0xff] (!%p230_p10) }
  0x13   : > { %233 = sbr.rel (%p230_p10) target bundleno = 1660 (0x67c), region = 44  ;;  %s3389_s18 = sshll.u32 (!%p230_p10), %s3846_s24, 8  ;;  %v3587_v35 = vpack.c.bf16 (!%p230_p10), %v1502_v34, %v1501_v33  ;;  %v1503_v39 = vld [vmem:[%s6344_s1 + $0x10] sm:$0xff] (!%p230_p10)  ;;  %v1504_v40 = vld [vmem:[%s6344_s1 + $0x18] sm:$0xff] (!%p230_p10)  ;;  %v1505_v45 = vld [vmem:[%s6344_s1 + $0x20] sm:$0xf] (!%p230_p10) }
  0x14   : > { %s3981_s15 = scalar_select %p169_p11, %s3842_s23, %s171_s13  }
  0x15   : > { %s6365_s0 = sld [smem:[#allocation5_spill]] (!%p230_p10)  ;;  %s3864_s9 = smov (!%p230_p10), 12   ;;  %3588 = vmatprep.subr.bf16.mxu0 (!%p230_p10), %v3587_v35  ;;  %v3591_v43 = vpack.c.bf16 (!%p230_p10), %v1504_v40, %v1503_v39  ;;  %vm6354_vm2 = vcmask (!%p230_p10), 1043456   ;;  %vm1253_vm3 = vcmask (!%p230_p10), 31744   ;;  %vm1284_vm4 = vcmask (!%p230_p10), 64512  }
  0x16   : > { %s6352_s12 = smov (!%p230_p10), 8   ;;  %s6359_s13 = smov (!%p230_p10), 4   ;;  %3590 = vmatpush3.bf16.msra.mxu0 (!%p230_p10), %v3587_v35  ;;  %vm1315_vm5 = vcmask (!%p230_p10), 97280   ;;  %vm1346_vm6 = vcmask (!%p230_p10), 130048   ;;  %vm1377_vm7 = vcmask (!%p230_p10), 162816   ;;  %vm6361_vm8 = vcmask (!%p230_p10), 195584  }
  0x17   : > { %s3867_s14 = smov (!%p230_p10), 16   ;;  %3592 = vmatprep.subr.bf16.mxu0 (!%p230_p10), %v3591_v43  ;;  %s6367_s19 = smov (!%p230_p10), 8   ;;  %vm1439_vm9 = vcmask (!%p230_p10), 228352   ;;  %vm6356_vm10 = vcmask (!%p230_p10), 261120   ;;  %vm6355_vm11 = vcmask (!%p230_p10), 293888  }
  0x18   : > { %s3315_s20 = sshll.u32 (!%p230_p10), %s3846_s24, 3 }
  0x1a   : > { %s260_s16 = scalar_select %p259_p12, %s3850_s25, 1  ;;  %3594 = vmatpush3.bf16.msra.mxu0 %v3591_v43 }
  0x1b   : > { %3471 = vmatprep.subr.msk.mxu0 %vm6354_vm2, %v1505_v45 }
  0x1c   : > { %s3635_s17 = smul.u32 640, %s260_s16  ;;  %s6350_s16 = smov 20  }
  0x1e   : > { %s263_s29 = scalar_lea.vmem %s6365_s0, %s3635_s17  ;;  %3472 = vmatpush3.msk.msra.mxu0 %vm6354_vm2, %v1505_v45  ;;  %s6376_s17 = smov 4  }
  0x1f   : > { %s3989_s30 = scalar_lea.vmem %s263_s29, %s3389_s18  ;;  %s3869_s29 = smov 24  }
  0x20   : > { %v3992_v0 = vld [vmem:[%s3989_s30 + $0x28] sm:$0xff]  ;;  %v3995_v1 = vld [vmem:[%s3989_s30 + $0x20] sm:$0xff]  ;;  %v4010_v6 = vld [vmem:[%s3989_s30 + $0x10] sm:$0xff]  ;;  %s6366_s18 = smov 20  }
  0x21   : > { %v3998_v2 = vld [vmem:[%s3989_s30] sm:$0xff]  ;;  %715 = vrot.lane.b32.xlu1 %v3992_v0, %s3864_s9  ;;  %713 = vrot.lane.b32.xlu0 %v3995_v1, %s3864_s9  ;;  %v4005_v3 = vld [vmem:[%s3989_s30 + $0x8] sm:$0xff]  ;;  %v430_v9 = vrot.slane %v4010_v6, 2  ;;  %v359_v10 = vrot.slane %v4010_v6, 1  ;;  %v363_v14 = vrot.slane %v3995_v1, 1  ;;  %v364_v15 = vrot.slane %v3992_v0, 1 }
  0x22   : > { %v427_v4 = vrot.slane %v3998_v2, 2  ;;  %v356_v5 = vrot.slane %v3998_v2, 1  ;;  %v428_v7 = vrot.slane %v4005_v3, 2  ;;  %v357_v8 = vrot.slane %v4005_v3, 1  ;;  %v270_v11 = vld [vmem:[%s3989_s30 + $0x18] sm:$0x3] }
  0x23   : > { %v361_v18 = vrot.slane %v270_v11, 1  ;;  %v4026_v19 = vld [vmem:[%s3989_s30 + $0x30] sm:$0xff]  ;;  %v365_v20 = vsel %vm355_vm1, %v363_v14, %v364_v15  ;;  %v434_v22 = vrot.slane %v3995_v1, 2  ;;  %v435_v23 = vrot.slane %v3992_v0, 2  ;;  %v4046_v30 = vld [vmem:[%s3989_s30 + $0x40] sm:$0xff]  ;;  %v4050_v32 = vld [vmem:[%s3989_s30 + $0x48] sm:$0xff] }
  0x24   : > { %v429_v12 = vsel %vm426_vm0, %v427_v4, %v428_v7  ;;  %v358_v13 = vsel %vm355_vm1, %v356_v5, %v357_v8  ;;  %v431_v16 = vsel %vm426_vm0, %v428_v7, %v430_v9  ;;  %v360_v17 = vsel %vm355_vm1, %v357_v8, %v359_v10  ;;  %v274_v38 = vld [vmem:[%s3989_s30 + $0x38] sm:$0x3]  ;;  %v4075_v44 = vld [vmem:[%s3989_s30 + $0x50] sm:$0xff]  ;;  %v4114_v59 = vld [vmem:[%s3989_s30 + $0x60] sm:$0xff] }
  0x25   : > { %623 = vrot.lane.b32.xlu1 %v429_v12, %s6352_s12  ;;  %533 = vrot.lane.b32.xlu0 %v358_v13, %s6359_s13  ;;  %v362_v21 = vsel %vm355_vm1, %v359_v10, %v361_v18  ;;  %v366_v24 = vrot.slane %v4026_v19, 1  ;;  %v436_v25 = vsel %vm426_vm0, %v434_v22, %v435_v23  ;;  %v432_v27 = vrot.slane %v270_v11, 2  ;;  %v278_v56 = vld [vmem:[%s3989_s30 + $0x58] sm:$0x3]  ;;  %v4117_v60 = vld [vmem:[%s3989_s30 + $0x68] sm:$0xff] }
  0x26   : > { %v437_v29 = vrot.slane %v4026_v19, 2  ;;  %v370_v36 = vrot.slane %v4046_v30, 1  ;;  %v371_v37 = vrot.slane %v4050_v32, 1  ;;  %v368_v42 = vrot.slane %v274_v38, 1  ;;  %v4141_v10 = vld [vmem:[%s3989_s30 + $0x70] sm:$0xff] }
  0x27   : > { %v367_v26 = vsel %vm355_vm1, %v364_v15, %v366_v24  ;;  %v433_v28 = vsel %vm426_vm0, %v430_v9, %v432_v27  ;;  %v441_v47 = vrot.slane %v4046_v30, 2  ;;  %v442_v48 = vrot.slane %v4050_v32, 2  ;;  %v282_v13 = vld [vmem:[%s3989_s30 + $0x78] sm:$0x3] }
  0x28   : > { %v438_v31 = vsel %vm426_vm0, %v435_v23, %v437_v29  ;;  %v372_v41 = vsel %vm355_vm1, %v370_v36, %v371_v37  ;;  %v369_v46 = vsel %vm355_vm1, %v366_v24, %v368_v42  ;;  %v373_v49 = vrot.slane %v4075_v44, 1  ;;  %v4188_v23 = vld [vmem:[%s3989_s30 + $0x80] sm:$0xff]  ;;  %v4210_v36 = vld [vmem:[%s3989_s30 + $0x90] sm:$0xff] }
  0x29   : > { %625 = vrot.lane.b32.xlu1 %v431_v16, %s6352_s12  ;;  %535 = vrot.lane.b32.xlu0 %v360_v17, %s6359_s13  ;;  %v443_v50 = vsel %vm426_vm0, %v441_v47, %v442_v48  ;;  %v444_v52 = vrot.slane %v4075_v44, 2  ;;  %v439_v53 = vrot.slane %v274_v38, 2  ;;  %v375_v57 = vrot.slane %v278_v56, 1 }
  0x2a   : > { %v374_v51 = vsel %vm355_vm1, %v371_v37, %v373_v49  ;;  %v446_v61 = vrot.slane %v278_v56, 2  ;;  %v377_v62 = vrot.slane %v4114_v59, 1  ;;  %v378_v63 = vrot.slane %v4117_v60, 1 }
  0x2b   : > { %v445_v54 = vsel %vm426_vm0, %v442_v48, %v444_v52  ;;  %v440_v55 = vsel %vm426_vm0, %v437_v29, %v439_v53  ;;  %v376_v58 = vsel %vm355_vm1, %v373_v49, %v375_v57  ;;  %v448_v7 = vrot.slane %v4114_v59, 2  ;;  %v286_v53 = vld [vmem:[%s3989_s30 + $0x98] sm:$0x3] }
  0x2c   : > { %v447_v4 = vsel %vm426_vm0, %v444_v52, %v446_v61  ;;  %v379_v5 = vsel %vm355_vm1, %v377_v62, %v378_v63  ;;  %v449_v8 = vrot.slane %v4117_v60, 2  ;;  %v380_v11 = vrot.slane %v4141_v10, 1  ;;  %v4262_v61 = vld [vmem:[%s3989_s30 + $0xa8] sm:$0xff] }
  0x2d   : > { %537 = vrot.lane.b32.xlu1 %v362_v21, %s6359_s13  ;;  %803 = vrot.lane.b32.xlu0 %v365_v20, %s3867_s14  ;;  %v451_v14 = vrot.slane %v4141_v10, 2  ;;  %v382_v15 = vrot.slane %v282_v13, 1  ;;  %v453_v18 = vrot.slane %v282_v13, 2  ;;  %v384_v27 = vrot.slane %v4188_v23, 1 }
  0x2e   : > { %v450_v9 = vsel %vm426_vm0, %v448_v7, %v449_v8  ;;  %v4151_v12 = vsel %vm355_vm1, %v378_v63, %v380_v11  ;;  %v455_v37 = vrot.slane %v4188_v23, 2  ;;  %v387_v39 = vrot.slane %v4210_v36, 1 }
  0x2f   : > { %v4163_v16 = vsel %vm426_vm0, %v449_v8, %v451_v14  ;;  %v4166_v17 = vsel %vm355_vm1, %v380_v11, %v382_v15  ;;  %v458_v47 = vrot.slane %v4210_v36, 2  ;;  %v389_v56 = vrot.slane %v286_v53, 1 }
  0x30   : > { %v460_v63 = vrot.slane %v286_v53, 2 }
  0x31   : > { %893 = vrot.lane.b32.xlu1 %v436_v25, %s6350_s16  ;;  %805 = vrot.lane.b32.xlu0 %v367_v26, %s3867_s14 }
  0x35   : > { %627 = vrot.lane.b32.xlu1 %v433_v28, %s6352_s12  ;;  %539 = vrot.lane.b32.xlu0 %v365_v20, %s6359_s13  ;;  %v4176_v20 = vsel %vm426_vm0, %v451_v14, %v453_v18  ;;  %v4290_v18 = vsel %vm426_vm0, %v458_v47, %v460_v63  ;;  %v4356_v63 = vld [vmem:[%s3989_s30 + $0xb0] sm:$0xff] }
  0x39   : > { %983 = vrot.lane.b32.xlu1 %v4046_v30, %s3869_s29  ;;  %895 = vrot.lane.b32.xlu0 %v438_v31, %s6350_s16  ;;  %s3870_s16 = smov 28  }
  0x3d   : > { %717 = vrot.lane.b32.xlu1 %v4026_v19, %s3864_s9  ;;  %629 = vrot.lane.b32.xlu0 %v436_v25, %s6352_s12  ;;  %s6357_s12 = smov 32  }
  0x41   : > { %1073 = vrot.lane.b32.xlu1 %v372_v41, %s3870_s16  ;;  %985 = vrot.lane.b32.xlu0 %v4050_v32, %s3869_s29 }
  0x45   : > { %807 = vrot.lane.b32.xlu1 %v369_v46, %s3867_s14  ;;  %719 = vrot.lane.b32.xlu0 %v4046_v30, %s3864_s9 }
  0x49   : > { %1163 = vrot.lane.b32.xlu1 %v443_v50, %s6357_s12  ;;  %1075 = vrot.lane.b32.xlu0 %v374_v51, %s3870_s16 }
  0x4d   : > { %809 = vrot.lane.b32.xlu1 %v372_v41, %s3867_s14  ;;  %541 = vrot.lane.b32.xlu0 %v367_v26, %s6359_s13  ;;  %v4191_v26 = vld [vmem:[%s3989_s30 + $0x88] sm:$0xff] }
  0x4e   : > { %v385_v28 = vrot.slane %v4191_v26, 1  ;;  %v456_v38 = vrot.slane %v4191_v26, 2 }
  0x50   : > { %v4205_v33 = vsel %vm355_vm1, %v384_v27, %v385_v28  ;;  %v4226_v42 = vsel %vm426_vm0, %v455_v37, %v456_v38  ;;  %v4229_v43 = vsel %vm355_vm1, %v385_v28, %v387_v39 }
  0x51   : > { %1165 = vrot.lane.b32.xlu1 %v445_v54, %s6357_s12  ;;  %897 = vrot.lane.b32.xlu0 %v440_v55, %s6366_s18 }
  0x55   : > { %631 = vrot.lane.b32.xlu1 %v438_v31, %s6367_s19  ;;  %543 = vrot.lane.b32.xlu0 %v369_v46, %s6359_s13 }
  0x59   : > { %987 = vrot.lane.b32.xlu1 %v4075_v44, %s3869_s29  ;;  %899 = vrot.lane.b32.xlu0 %v443_v50, %s6366_s18 }
  0x5d   : > { %721 = vrot.lane.b32.xlu1 %v4050_v32, %s3864_s9  ;;  %633 = vrot.lane.b32.xlu0 %v440_v55, %s6367_s19  ;;  %v4259_v55 = vld [vmem:[%s3989_s30 + $0xa0] sm:$0xff] }
  0x5e   : > { %v462_v28 = vrot.slane %v4259_v55, 2 }
  0x61   : > { %1077 = vrot.lane.b32.xlu1 %v376_v58, %s3870_s16  ;;  %989 = vrot.lane.b32.xlu0 %v4114_v59, %s3869_s29 }
  0x65   : > { %811 = vrot.lane.b32.xlu1 %v374_v51, %s3867_s14  ;;  %723 = vrot.lane.b32.xlu0 %v4075_v44, %s3864_s9 }
  0x69   : > { %1167 = vrot.lane.b32.xlu1 %v447_v4, %s6357_s12  ;;  %1079 = vrot.lane.b32.xlu0 %v379_v5, %s3870_s16 }
  0x6d   : > { %813 = vrot.lane.b32.xlu1 %v376_v58, %s3867_s14  ;;  %545 = vrot.lane.b32.xlu0 %v372_v41, %s6359_s13 }
  0x71   : > { %1169 = vrot.lane.b32.xlu1 %v450_v9, %s6357_s12  ;;  %901 = vrot.lane.b32.xlu0 %v445_v54, %s6366_s18 }
  0x75   : > { %635 = vrot.lane.b32.xlu1 %v443_v50, %s6367_s19  ;;  %547 = vrot.lane.b32.xlu0 %v374_v51, %s6359_s13  ;;  %v4245_v50 = vsel %vm426_vm0, %v456_v38, %v458_v47 }
  0x79   : > { %991 = vrot.lane.b32.xlu1 %v4117_v60, %s3869_s29  ;;  %903 = vrot.lane.b32.xlu0 %v447_v4, %s6366_s18 }
  0x7d   : > { %725 = vrot.lane.b32.xlu1 %v4114_v59, %s3864_s9  ;;  %637 = vrot.lane.b32.xlu0 %v445_v54, %s6367_s19 }
  0x81   : > { %1081 = vrot.lane.b32.xlu1 %v4151_v12, %s3870_s16  ;;  %993 = vrot.lane.b32.xlu0 %v4141_v10, %s3869_s29 }
  0x85   : > { %815 = vrot.lane.b32.xlu1 %v379_v5, %s3867_s14  ;;  %727 = vrot.lane.b32.xlu0 %v4117_v60, %s3864_s9 }
  0x89   : > { %1171 = vrot.lane.b32.xlu1 %v4163_v16, %s6357_s12  ;;  %1083 = vrot.lane.b32.xlu0 %v4166_v17, %s3870_s16 }
  0x8d   : > { %817 = vrot.lane.b32.xlu1 %v4151_v12, %s3867_s14  ;;  %549 = vrot.lane.b32.xlu0 %v376_v58, %s6359_s13 }
  0x91   : > { %1173 = vrot.lane.b32.xlu1 %v4176_v20, %s6357_s12  ;;  %905 = vrot.lane.b32.xlu0 %v450_v9, %s6366_s18 }
  0x93   : > { %v4181_v21 = vpop.permute.xlu1 %715  ;;  %v4183_v22 = vpop.permute.xlu0 %713 }
  0x95   : > { %639 = vrot.lane.b32.xlu1 %v447_v4, %s6367_s19  ;;  %551 = vrot.lane.b32.xlu0 %v379_v5, %s6359_s13  ;;  %v391_v4 = vrot.slane %v4259_v55, 1  ;;  %v392_v5 = vrot.slane %v4262_v61, 1 }
  0x97   : > { %v624_v24 = vpop.permute.xlu1 %623  ;;  %v534_v25 = vpop.permute.xlu0 %533 }
  0x98   : > { %v1254_v54 = vsel %vm1253_vm3, %v3998_v2, %v534_v25  ;;  %v4270_v2 = vsel %vm355_vm1, %v387_v39, %v389_v56 }
  0x99   : > { %995 = vrot.lane.b32.xlu1 %v4188_v23, %s3869_s29  ;;  %907 = vrot.lane.b32.xlu0 %v4163_v16, %s6366_s18  ;;  %v1285_v62 = vsel %vm1284_vm4, %v1254_v54, %v624_v24 }
  0x9a   : > { %v1316_v7 = vsel %vm1315_vm5, %v1285_v62, %v4183_v22  ;;  %v4295_v22 = vsel %vm355_vm1, %v391_v4, %v392_v5  ;;  %v394_v4 = vrot.slane %v4356_v63, 1 }
  0x9b   : > { %v4199_v29 = vpop.permute.xlu1 %625  ;;  %v536_v31 = vpop.permute.xlu0 %535 }
  0x9c   : > { %v1255_v13 = vsel %vm1253_vm3, %v4005_v3, %v536_v31  ;;  %v463_v31 = vrot.slane %v4262_v61, 2 }
  0x9d   : > { %729 = vrot.lane.b32.xlu1 %v4141_v10, %s3864_s9  ;;  %641 = vrot.lane.b32.xlu0 %v450_v9, %s6367_s19 }
  0x9f   : > { %v4207_v34 = vpop.permute.xlu1 %537  ;;  %v804_v35 = vpop.permute.xlu0 %803 }
  0xa0   : > { %v1347_v11 = vsel %vm1346_vm6, %v1316_v7, %v804_v35 }
  0xa1   : > { %1085 = vrot.lane.b32.xlu1 %v4205_v33, %s3870_s16  ;;  %997 = vrot.lane.b32.xlu0 %v4191_v26, %s3869_s29 }
  0xa3   : > { %v894_v40 = vpop.permute.xlu1 %893  ;;  %v4219_v41 = vpop.permute.xlu0 %805 }
  0xa4   : > { %v1378_v14 = vsel %vm1377_vm7, %v1347_v11, %v894_v40 }
  0xa5   : > { %819 = vrot.lane.b32.xlu1 %v4166_v17, %s3867_s14  ;;  %731 = vrot.lane.b32.xlu0 %v4188_v23, %s3864_s9 }
  0xa7   : > { %v4231_v45 = vpop.permute.xlu1 %627  ;;  %v4233_v46 = vpop.permute.xlu0 %539 }
  0xa9   : > { %1175 = vrot.lane.b32.xlu1 %v4226_v42, %s6357_s12  ;;  %1087 = vrot.lane.b32.xlu0 %v4229_v43, %s3870_s16 }
  0xab   : > { %v984_v48 = vpop.permute.xlu1 %983  ;;  %v896_v49 = vpop.permute.xlu0 %895 }
  0xac   : > { %v1409_v15 = vsel %vm6361_vm8, %v1378_v14, %v984_v48 }
  0xad   : > { %909 = vrot.lane.b32.xlu1 %v4176_v20, %s6366_s18  ;;  %821 = vrot.lane.b32.xlu0 %v4205_v33, %s3867_s14 }
  0xaf   : > { %v4247_v51 = vpop.permute.xlu1 %717  ;;  %v4249_v52 = vpop.permute.xlu0 %629 }
  0xb1   : > { %911 = vrot.lane.b32.xlu1 %v4226_v42, %s6366_s18  ;;  %1177 = vrot.lane.b32.xlu0 %v4245_v50, %s6357_s12 }
  0xb3   : > { %v1074_v57 = vpop.permute.xlu1 %1073  ;;  %v986_v58 = vpop.permute.xlu0 %985 }
  0xb4   : > { %v1440_v3 = vsel %vm1439_vm9, %v1409_v15, %v1074_v57  ;;  %v1256_v57 = vsel %vm1253_vm3, %v4010_v6, %v4207_v34 }
  0xb5   : > { %1001 = vrot.lane.b32.xlu1 %v4259_v55, %s3869_s29  ;;  %999 = vrot.lane.b32.xlu0 %v4210_v36, %s3869_s29 }
  0xb7   : > { %v4276_v8 = vpop.permute.xlu1 %807  ;;  %v4278_v9 = vpop.permute.xlu0 %719 }
  0xb9   : > { %553 = vrot.lane.b32.xlu1 %v4151_v12, %s6359_s13  ;;  %1089 = vrot.lane.b32.xlu0 %v4270_v2, %s3870_s16  ;;  %v1286_v12 = vsel %vm1284_vm4, %v1255_v13, %v4199_v29 }
  0xba   : > { %v1317_v35 = vsel %vm1315_vm5, %v1286_v12, %v4181_v21  ;;  %v4323_v21 = vsel %vm426_vm0, %v462_v28, %v463_v31 }
  0xbb   : > { %v1164_v24 = vpop.permute.xlu1 %1163  ;;  %v1076_v25 = vpop.permute.xlu0 %1075  ;;  %v1348_v29 = vsel %vm1346_vm6, %v1317_v35, %v4219_v41 }
  0xbc   : > { %v1471_v27 = vsel %vm6356_vm10, %v1440_v3, %v1164_v24  ;;  %v1379_v39 = vsel %vm1377_vm7, %v1348_v29, %v896_v49 }
  0xbd   : > { %1179 = vrot.lane.b32.xlu1 %v4290_v18, %s6357_s12  ;;  %1091 = vrot.lane.b32.xlu0 %v4295_v22, %s3870_s16  ;;  %v1410_v40 = vsel %vm6361_vm8, %v1379_v39, %v986_v58 }
  0xbe   : > { %3473 = vmatprep.mubr.msk.f32.mxu0 %vm6355_vm11, %v1471_v27  ;;  %v1441_v47 = vsel %vm1439_vm9, %v1410_v40, %v1076_v25 }
  0xbf   : > { %v810_v37 = vpop.permute.xlu1 %809  ;;  %v4310_v38 = vpop.permute.xlu0 %541 }
  0xc1   : > { %643 = vrot.lane.b32.xlu1 %v4163_v16, %s6367_s19  ;;  %555 = vrot.lane.b32.xlu0 %v4166_v17, %s6359_s13 }
  0xc3   : > { %v1166_v48 = vpop.permute.xlu1 %1165  ;;  %v898_v53 = vpop.permute.xlu0 %897 }
  0xc4   : > { %v1472_v41 = vsel %vm6356_vm10, %v1441_v47, %v1166_v48 }
  0xc5   : > { %645 = vrot.lane.b32.xlu1 %v4176_v20, %s6367_s19  ;;  %1181 = vrot.lane.b32.xlu0 %v4323_v21, %s6357_s12 }
  0xc6   : > { %3474 = vmatmul.mubr.msk.f32.vlgmr.msra.gmra.mrb[0].mxu0 %vm6355_vm11, %v1472_v41 }
  0xc7   : > { %v4332_v16 = vpop.permute.xlu1 %631  ;;  %v4334_v17 = vpop.permute.xlu0 %543 }
  0xc9   : > { %735 = vrot.lane.b32.xlu1 %v4210_v36, %s3864_s9  ;;  %733 = vrot.lane.b32.xlu0 %v4191_v26, %s3864_s9 }
  0xcb   : > { %v988_v49 = vpop.permute.xlu1 %987  ;;  %v900_v54 = vpop.permute.xlu0 %899 }
  0xcd   : > { %825 = vrot.lane.b32.xlu1 %v4270_v2, %s3867_s14  ;;  %823 = vrot.lane.b32.xlu0 %v4229_v43, %s3867_s14 }
  0xcf   : > { %v4344_v20 = vpop.permute.xlu1 %721  ;;  %v4346_v56 = vpop.permute.xlu0 %633 }
  0xd1   : > { %557 = vrot.lane.b32.xlu1 %v4205_v33, %s6359_s13  ;;  %913 = vrot.lane.b32.xlu0 %v4245_v50, %s6366_s18  ;;  %v1287_v33 = vsel %vm1284_vm4, %v1256_v57, %v4231_v45 }
  0xd2   : > { %v1318_v7 = vsel %vm1315_vm5, %v1287_v33, %v4247_v51  ;;  %v4382_v51 = vsel %vm355_vm1, %v392_v5, %v394_v4  ;;  %v465_v5 = vrot.slane %v4356_v63, 2  ;;  %v4459_v33 = vld [vmem:[%s3989_s30 + $0xc0] sm:$0xff] }
  0xd3   : > { %v1078_v58 = vpop.permute.xlu1 %1077  ;;  %v990_v62 = vpop.permute.xlu0 %989  ;;  %v1349_v11 = vsel %vm1346_vm6, %v1318_v7, %v4276_v8  ;;  %v290_v8 = vld [vmem:[%s3989_s30 + $0xb8] sm:$0x3] }
  0xd4   : > { %v1380_v13 = vsel %vm1377_vm7, %v1349_v11, %v898_v53  ;;  %v396_v25 = vrot.slane %v290_v8, 1 }
  0xd5   : > { %1003 = vrot.lane.b32.xlu1 %v4262_v61, %s3869_s29  ;;  %915 = vrot.lane.b32.xlu0 %v4290_v18, %s6366_s18  ;;  %v1411_v45 = vsel %vm6361_vm8, %v1380_v13, %v988_v49  ;;  %v4468_v13 = vld [vmem:[%s3989_s30 + $0xc8] sm:$0xff] }
  0xd6   : > { %v1442_v14 = vsel %vm1439_vm9, %v1411_v45, %v1078_v58  ;;  %v4417_v35 = vsel %vm355_vm1, %v394_v4, %v396_v25 }
  0xd7   : > { %v4367_v6 = vpop.permute.xlu1 %811  ;;  %v4369_v34 = vpop.permute.xlu0 %723 }
  0xd9   : > { %647 = vrot.lane.b32.xlu1 %v4226_v42, %s6367_s19  ;;  %559 = vrot.lane.b32.xlu0 %v4229_v43, %s6359_s13  ;;  %v1257_v42 = vsel %vm1253_vm3, %v3995_v1, %v4233_v46 }
  0xda   : > { %v1288_v43 = vsel %vm1284_vm4, %v1257_v42, %v4249_v52 }
  0xdb   : > { %v1168_v15 = vpop.permute.xlu1 %1167  ;;  %v1080_v3 = vpop.permute.xlu0 %1079  ;;  %v1319_v12 = vsel %vm1315_vm5, %v1288_v43, %v4278_v9  ;;  %v4414_v9 = vsel %vm426_vm0, %v463_v31, %v465_v5 }
  0xdc   : > { %v1473_v24 = vsel %vm6356_vm10, %v1442_v14, %v1168_v15  ;;  %v1350_v46 = vsel %vm1346_vm6, %v1319_v12, %v810_v37  ;;  %v1259_v15 = vsel %vm1253_vm3, %v4026_v19, %v4334_v17  ;;  %v4502_v17 = vld [vmem:[%s3989_s30 + $0xd0] sm:$0xff] }
  0xdd   : > { %1093 = vrot.lane.b32.xlu1 %v4382_v51, %s3870_s16  ;;  %1005 = vrot.lane.b32.xlu0 %v4356_v63, %s3869_s29  ;;  %v1381_v28 = vsel %vm1377_vm7, %v1350_v46, %v900_v54  ;;  %v401_v25 = vrot.slane %v4502_v17, 1 }
  0xde   : > { %3476 = vmatprep.mubr.msk.f32.mxu0 %vm6355_vm11, %v1473_v24  ;;  %v1412_v52 = vsel %vm6361_vm8, %v1381_v28, %v990_v62 }
  0xdf   : > { %v4400_v27 = vpop.permute.xlu1 %813  ;;  %v4402_v1 = vpop.permute.xlu0 %545  ;;  %v1443_v37 = vsel %vm1439_vm9, %v1412_v52, %v1080_v3  ;;  %v1290_v3 = vsel %vm1284_vm4, %v1259_v15, %v4346_v56 }
  0xe0   : > { %v1321_v24 = vsel %vm1315_vm5, %v1290_v3, %v4369_v34  ;;  %v469_v34 = vrot.slane %v4459_v33, 2 }
  0xe1   : > { %737 = vrot.lane.b32.xlu1 %v4259_v55, %s3864_s9  ;;  %649 = vrot.lane.b32.xlu0 %v4245_v50, %s6367_s19  ;;  %v467_v50 = vrot.slane %v290_v8, 2 }
  0xe3   : > { %v1170_v29 = vpop.permute.xlu1 %1169  ;;  %v902_v39 = vpop.permute.xlu0 %901  ;;  %v4435_v48 = vsel %vm426_vm0, %v465_v5, %v467_v50  ;;  %v470_v5 = vrot.slane %v4468_v13, 2 }
  0xe4   : > { %v1474_v40 = vsel %vm6356_vm10, %v1443_v37, %v1170_v29 }
  0xe5   : > { %1183 = vrot.lane.b32.xlu1 %v4414_v9, %s6357_s12  ;;  %1095 = vrot.lane.b32.xlu0 %v4417_v35, %s3870_s16  ;;  %v4523_v52 = vsel %vm426_vm0, %v469_v34, %v470_v5 }
  0xe6   : > { %3477 = vmatmul.mubr.msk.f32.gmra.mrb[2].mxu0 %vm6355_vm11, %v1474_v40  ;;  %v472_v40 = vrot.slane %v4502_v17, 2 }
  0xe7   : > { %v4426_v31 = vpop.permute.xlu1 %635  ;;  %v4428_v47 = vpop.permute.xlu0 %547 }
  0xe9   : > { %827 = vrot.lane.b32.xlu1 %v4295_v22, %s3867_s14  ;;  %739 = vrot.lane.b32.xlu0 %v4262_v61, %s3864_s9 }
  0xeb   : > { %v992_v53 = vpop.permute.xlu1 %991  ;;  %v904_v41 = vpop.permute.xlu0 %903 }
  0xed   : > { %561 = vrot.lane.b32.xlu1 %v4270_v2, %s6359_s13  ;;  %1185 = vrot.lane.b32.xlu0 %v4435_v48, %s6357_s12  ;;  %v1258_v2 = vsel %vm1253_vm3, %v3992_v0, %v4310_v38  ;;  %v398_v38 = vrot.slane %v4459_v33, 1 }
  0xee   : > { %v1289_v62 = vsel %vm1284_vm4, %v1258_v2, %v4332_v16  ;;  %v399_v16 = vrot.slane %v4468_v13, 1 }
  0xef   : > { %v4441_v49 = vpop.permute.xlu1 %725  ;;  %v4443_v54 = vpop.permute.xlu0 %637  ;;  %v1320_v4 = vsel %vm1315_vm5, %v1289_v62, %v4344_v20 }
  0xf0   : > { %v1351_v0 = vsel %vm1346_vm6, %v1320_v4, %v4367_v6  ;;  %v4493_v8 = vsel %vm355_vm1, %v398_v38, %v399_v16  ;;  %v4526_v37 = vsel %vm355_vm1, %v399_v16, %v401_v25  ;;  %v4552_v4 = vld [vmem:[%s3989_s30 + $0xe0] sm:$0xff]  ;;  %v1260_v38 = vsel %vm1253_vm3, %v4046_v30, %v4402_v1 }
  0xf1   : > { %917 = vrot.lane.b32.xlu1 %v4323_v21, %s6366_s18  ;;  %829 = vrot.lane.b32.xlu0 %v4382_v51, %s3867_s14 }
  0xf3   : > { %v1082_v57 = vpop.permute.xlu1 %1081  ;;  %v994_v58 = vpop.permute.xlu0 %993 }
  0xf5   : > { %651 = vrot.lane.b32.xlu1 %v4290_v18, %s6367_s19  ;;  %563 = vrot.lane.b32.xlu0 %v4295_v22, %s6359_s13  ;;  %v1382_v18 = vsel %vm1377_vm7, %v1351_v0, %v902_v39 }
  0xf6   : > { %v1413_v22 = vsel %vm6361_vm8, %v1382_v18, %v992_v53 }
  0xf7   : > { %v4463_v7 = vpop.permute.xlu1 %815  ;;  %v4465_v11 = vpop.permute.xlu0 %727  ;;  %v1444_v20 = vsel %vm1439_vm9, %v1413_v22, %v1082_v57  ;;  %v294_v57 = vld [vmem:[%s3989_s30 + $0xd8] sm:$0x3]  ;;  %v4555_v22 = vld [vmem:[%s3989_s30 + $0xe8] sm:$0xff] }
  0xf8   : > { %v403_v62 = vrot.slane %v294_v57, 1 }
  0xf9   : > { %1007 = vrot.lane.b32.xlu1 %v4459_v33, %s3869_s29  ;;  %919 = vrot.lane.b32.xlu0 %v4414_v9, %s6366_s18 }
  0xfa   : > { %v4565_v16 = vsel %vm355_vm1, %v401_v25, %v403_v62  ;;  %v476_v25 = vrot.slane %v4552_v4, 2 }
  0xfb   : > { %v1172_v45 = vpop.permute.xlu1 %1171  ;;  %v1084_v14 = vpop.permute.xlu0 %1083 }
  0xfc   : > { %v1475_v6 = vsel %vm6356_vm10, %v1444_v20, %v1172_v45  ;;  %v1291_v20 = vsel %vm1284_vm4, %v1260_v38, %v4426_v31  ;;  %v474_v45 = vrot.slane %v294_v57, 2 }
  0xfd   : > { %741 = vrot.lane.b32.xlu1 %v4356_v63, %s3864_s9  ;;  %653 = vrot.lane.b32.xlu0 %v4323_v21, %s6367_s19  ;;  %v1352_v21 = vsel %vm1346_vm6, %v1321_v24, %v4400_v27  ;;  %v1322_v30 = vsel %vm1315_vm5, %v1291_v20, %v4441_v49 }
  0xfe   : > { %3479 = vmatprep.mubr.msk.f32.mxu0 %vm6355_vm11, %v1475_v6  ;;  %v1383_v43 = vsel %vm1377_vm7, %v1352_v21, %v904_v41  ;;  %v4542_v41 = vsel %vm426_vm0, %v470_v5, %v472_v40  ;;  %v406_v6 = vrot.slane %v4555_v22, 1  ;;  %v1353_v3 = vsel %vm1346_vm6, %v1322_v30, %v4463_v7 }
  0xff   : > { %v4497_v42 = vpop.permute.xlu1 %817  ;;  %v4499_v19 = vpop.permute.xlu0 %549  ;;  %v1414_v56 = vsel %vm6361_vm8, %v1383_v43, %v994_v58  ;;  %v4582_v21 = vsel %vm426_vm0, %v472_v40, %v474_v45 }
 0x100   : > { %v1445_v12 = vsel %vm1439_vm9, %v1414_v56, %v1084_v14  ;;  %v405_v14 = vrot.slane %v4552_v4, 1 }
 0x101   : > { %1097 = vrot.lane.b32.xlu1 %v4493_v8, %s3870_s16  ;;  %1009 = vrot.lane.b32.xlu0 %v4468_v13, %s3869_s29 }
 0x102   : > { %v4587_v49 = vsel %vm355_vm1, %v405_v14, %v406_v6 }
 0x103   : > { %v1174_v46 = vpop.permute.xlu1 %1173  ;;  %v906_v27 = vpop.permute.xlu0 %905 }
 0x104   : > { %v1476_v28 = vsel %vm6356_vm10, %v1445_v12, %v1174_v46  ;;  %v1384_v24 = vsel %vm1377_vm7, %v1353_v3, %v906_v27  ;;  %v477_v12 = vrot.slane %v4555_v22, 2 }
 0x105   : > { %831 = vrot.lane.b32.xlu1 %v4417_v35, %s3867_s14  ;;  %743 = vrot.lane.b32.xlu0 %v4459_v33, %s3864_s9 }
 0x106   : > { %3480 = vmatmul.mubr.msk.f32.gmra.mrb[4].mxu0 %vm6355_vm11, %v1476_v28  ;;  %v4616_v40 = vsel %vm426_vm0, %v476_v25, %v477_v12  ;;  %v298_v25 = vld [vmem:[%s3989_s30 + $0xf8] sm:$0x3] }
 0x107   : > { %v4528_v29 = vpop.permute.xlu1 %639  ;;  %v4530_v39 = vpop.permute.xlu0 %551 }
 0x108   : > { %v1263_v14 = vsel %vm1253_vm3, %v4114_v59, %v4530_v39 }
 0x109   : > { %1187 = vrot.lane.b32.xlu1 %v4523_v52, %s6357_s12  ;;  %1099 = vrot.lane.b32.xlu0 %v4526_v37, %s3870_s16 }
 0x10b   : > { %v996_v50 = vpop.permute.xlu1 %995  ;;  %v908_v53 = vpop.permute.xlu0 %907 }
 0x10c   : > { %v1415_v31 = vsel %vm6361_vm8, %v1384_v24, %v996_v50 }
 0x10d   : > { %921 = vrot.lane.b32.xlu1 %v4435_v48, %s6366_s18  ;;  %833 = vrot.lane.b32.xlu0 %v4493_v8, %s3867_s14 }
 0x10f   : > { %v730_v58 = vpop.permute.xlu1 %729  ;;  %v4545_v2 = vpop.permute.xlu0 %641 }
 0x110   : > { %v1294_v30 = vsel %vm1284_vm4, %v1263_v14, %v4545_v2 }
 0x111   : > { %923 = vrot.lane.b32.xlu1 %v4523_v52, %s6366_s18  ;;  %1189 = vrot.lane.b32.xlu0 %v4542_v41, %s6357_s12 }
 0x113   : > { %v1086_v0 = vpop.permute.xlu1 %1085  ;;  %v998_v18 = vpop.permute.xlu0 %997 }
 0x114   : > { %v1446_v7 = vsel %vm1439_vm9, %v1415_v31, %v1086_v0  ;;  %v4658_v31 = vld [vmem:[%s3989_s30 + $0xf0] sm:$0xff] }
 0x115   : > { %1013 = vrot.lane.b32.xlu1 %v4552_v4, %s3869_s29  ;;  %1011 = vrot.lane.b32.xlu0 %v4502_v17, %s3869_s29  ;;  %v408_v2 = vrot.slane %v4658_v31, 1 }
 0x117   : > { %v820_v1 = vpop.permute.xlu1 %819  ;;  %v732_v15 = vpop.permute.xlu0 %731 }
 0x119   : > { %565 = vrot.lane.b32.xlu1 %v4382_v51, %s6359_s13  ;;  %1101 = vrot.lane.b32.xlu0 %v4565_v16, %s3870_s16  ;;  %v1261_v51 = vsel %vm1253_vm3, %v4050_v32, %v4428_v47 }
 0x11a   : > { %v1292_v5 = vsel %vm1284_vm4, %v1261_v51, %v4443_v54 }
 0x11b   : > { %v1176_v43 = vpop.permute.xlu1 %1175  ;;  %v1088_v56 = vpop.permute.xlu0 %1087  ;;  %v1323_v46 = vsel %vm1315_vm5, %v1292_v5, %v4465_v11 }
 0x11c   : > { %v1477_v34 = vsel %vm6356_vm10, %v1446_v7, %v1176_v43  ;;  %v1354_v47 = vsel %vm1346_vm6, %v1323_v46, %v4497_v42  ;;  %v410_v46 = vrot.slane %v298_v25, 1 }
 0x11d   : > { %1191 = vrot.lane.b32.xlu1 %v4582_v21, %s6357_s12  ;;  %1103 = vrot.lane.b32.xlu0 %v4587_v49, %s3870_s16  ;;  %v1385_v28 = vsel %vm1377_vm7, %v1354_v47, %v908_v53  ;;  %v1262_v53 = vsel %vm1253_vm3, %v4075_v44, %v4499_v19 }
 0x11e   : > { %3482 = vmatprep.mubr.msk.f32.mxu0 %vm6355_vm11, %v1477_v34  ;;  %v1416_v54 = vsel %vm6361_vm8, %v1385_v28, %v998_v18  ;;  %v4678_v34 = vsel %vm355_vm1, %v406_v6, %v408_v2 }
 0x11f   : > { %v910_v27 = vpop.permute.xlu1 %909  ;;  %v822_v32 = vpop.permute.xlu0 %821  ;;  %v1447_v11 = vsel %vm1439_vm9, %v1416_v54, %v1088_v56  ;;  %v481_v54 = vrot.slane %v298_v25, 2 }
 0x121   : > { %655 = vrot.lane.b32.xlu1 %v4414_v9, %s6367_s19  ;;  %567 = vrot.lane.b32.xlu0 %v4417_v35, %s6359_s13 }
 0x123   : > { %v912_v50 = vpop.permute.xlu1 %911  ;;  %v1178_v57 = vpop.permute.xlu0 %1177 }
 0x124   : > { %v1478_v42 = vsel %vm6356_vm10, %v1447_v11, %v1178_v57 }
 0x125   : > { %657 = vrot.lane.b32.xlu1 %v4435_v48, %s6367_s19  ;;  %1193 = vrot.lane.b32.xlu0 %v4616_v40, %s6357_s12  ;;  %v1293_v48 = vsel %vm1284_vm4, %v1262_v53, %v4528_v29 }
 0x126   : > { %3483 = vmatmul.mubr.msk.f32.gmra.mrb[6].mxu0 %vm6355_vm11, %v1478_v42  ;;  %v1324_v62 = vsel %vm1315_vm5, %v1293_v48, %v730_v58 }
 0x127   : > { %v1002_v9 = vpop.permute.xlu1 %1001  ;;  %v1000_v35 = vpop.permute.xlu0 %999  ;;  %v1355_v38 = vsel %vm1346_vm6, %v1324_v62, %v820_v1  ;;  %v1325_v1 = vsel %vm1315_vm5, %v1294_v30, %v732_v15 }
 0x128   : > { %v1386_v20 = vsel %vm1377_vm7, %v1355_v38, %v910_v27  ;;  %v1356_v59 = vsel %vm1346_vm6, %v1325_v1, %v822_v32  ;;  %v4696_v32 = vsel %vm355_vm1, %v408_v2, %v410_v46 }
 0x129   : > { %747 = vrot.lane.b32.xlu1 %v4502_v17, %s3864_s9  ;;  %745 = vrot.lane.b32.xlu0 %v4468_v13, %s3864_s9  ;;  %v1417_v44 = vsel %vm6361_vm8, %v1386_v20, %v1000_v35 }
 0x12b   : > { %v554_v0 = vpop.permute.xlu1 %553  ;;  %v1090_v18 = vpop.permute.xlu0 %1089 }
 0x12c   : > { %v1448_v19 = vsel %vm1439_vm9, %v1417_v44, %v1090_v18  ;;  %v1264_v42 = vsel %vm1253_vm3, %v4117_v60, %v554_v0  ;;  %v299_v18 = vld [vmem:[%s3989_s30 + $0x100] sm:$0xff] }
 0x12d   : > { %837 = vrot.lane.b32.xlu1 %v4565_v16, %s3867_s14  ;;  %835 = vrot.lane.b32.xlu0 %v4526_v37, %s3867_s14 }
 0x12f   : > { %v1180_v29 = vpop.permute.xlu1 %1179  ;;  %v1092_v45 = vpop.permute.xlu0 %1091 }
 0x130   : > { %v1479_v58 = vsel %vm6356_vm10, %v1448_v19, %v1180_v29  ;;  %v4741_v19 = vld [vmem:[%s3989_s30 + $0x108] sm:$0xff] }
 0x131   : > { %569 = vrot.lane.b32.xlu1 %v4493_v8, %s6359_s13  ;;  %925 = vrot.lane.b32.xlu0 %v4542_v41, %s6366_s18  ;;  %v1387_v8 = vsel %vm1377_vm7, %v1356_v59, %v912_v50 }
 0x132   : > { %3485 = vmatprep.mubr.msk.f32.mxu0 %vm6355_vm11, %v1479_v58  ;;  %v1418_v39 = vsel %vm6361_vm8, %v1387_v8, %v1002_v9  ;;  %v413_v58 = vrot.slane %v4741_v19, 1 }
 0x133   : > { %v644_v3 = vpop.permute.xlu1 %643  ;;  %v4655_v24 = vpop.permute.xlu0 %555  ;;  %v1449_v15 = vsel %vm1439_vm9, %v1418_v39, %v1092_v45 }
 0x134   : > { %v1265_v45 = vsel %vm1253_vm3, %v4141_v10, %v4655_v24 }
 0x135   : > { %1015 = vrot.lane.b32.xlu1 %v4555_v22, %s3869_s29  ;;  %927 = vrot.lane.b32.xlu0 %v4582_v21, %s6366_s18 }
 0x137   : > { %v646_v7 = vpop.permute.xlu1 %645  ;;  %v1182_v43 = vpop.permute.xlu0 %1181 }
 0x138   : > { %v1480_v56 = vsel %vm6356_vm10, %v1449_v15, %v1182_v43  ;;  %v4770_v15 = vld [vmem:[%s3989_s30 + $0x110] sm:$0xff] }
 0x139   : > { %659 = vrot.lane.b32.xlu1 %v4523_v52, %s6367_s19  ;;  %571 = vrot.lane.b32.xlu0 %v4526_v37, %s6359_s13  ;;  %v479_v52 = vrot.slane %v4658_v31, 2  ;;  %v415_v43 = vrot.slane %v4770_v15, 1 }
 0x13a   : > { %3486 = vmatmul.mubr.msk.f32.gmra.mrb[8].mxu0 %vm6355_vm11, %v1480_v56 }
 0x13b   : > { %v736_v51 = vpop.permute.xlu1 %735  ;;  %v734_v5 = vpop.permute.xlu0 %733  ;;  %v4693_v6 = vsel %vm426_vm0, %v477_v12, %v479_v52  ;;  %v4709_v12 = vsel %vm426_vm0, %v479_v52, %v481_v54  ;;  %v4787_v25 = vsel %vm355_vm1, %v413_v58, %v415_v43 }
 0x13d   : > { %1105 = vrot.lane.b32.xlu1 %v4678_v34, %s3870_s16  ;;  %1017 = vrot.lane.b32.xlu0 %v4658_v31, %s3869_s29 }
 0x13f   : > { %v826_v37 = vpop.permute.xlu1 %825  ;;  %v824_v27 = vpop.permute.xlu0 %823 }
 0x141   : > { %749 = vrot.lane.b32.xlu1 %v4552_v4, %s3864_s9  ;;  %661 = vrot.lane.b32.xlu0 %v4542_v41, %s6367_s19 }
 0x143   : > { %v4698_v47 = vpop.permute.xlu1 %557  ;;  %v914_v28 = vpop.permute.xlu0 %913 }
 0x145   : > { %1195 = vrot.lane.b32.xlu1 %v4693_v6, %s6357_s12  ;;  %1107 = vrot.lane.b32.xlu0 %v4696_v32, %s3870_s16 }
 0x147   : > { %v1004_v11 = vpop.permute.xlu1 %1003  ;;  %v916_v41 = vpop.permute.xlu0 %915 }
 0x149   : > { %839 = vrot.lane.b32.xlu1 %v4587_v49, %s3867_s14  ;;  %751 = vrot.lane.b32.xlu0 %v4555_v22, %s3864_s9  ;;  %v1295_v22 = vsel %vm1284_vm4, %v1264_v42, %v644_v3 }
 0x14b   : > { %v4711_v50 = vpop.permute.xlu1 %647  ;;  %v4713_v57 = vpop.permute.xlu0 %559 }
 0x14d   : > { %573 = vrot.lane.b32.xlu1 %v4565_v16, %s6359_s13  ;;  %1197 = vrot.lane.b32.xlu0 %v4709_v12, %s6357_s12  ;;  %v1326_v16 = vsel %vm1315_vm5, %v1295_v22, %v734_v5  ;;  %v1266_v22 = vsel %vm1253_vm3, %v4188_v23, %v4698_v47 }
 0x14e   : > { %v1357_v62 = vsel %vm1346_vm6, %v1326_v16, %v824_v27 }
 0x14f   : > { %v1094_v9 = vpop.permute.xlu1 %1093  ;;  %v1006_v35 = vpop.permute.xlu0 %1005  ;;  %v1388_v60 = vsel %vm1377_vm7, %v1357_v62, %v914_v28 }
 0x150   : > { %v1419_v0 = vsel %vm6361_vm8, %v1388_v60, %v1004_v11  ;;  %v302_v11 = vld [vmem:[%s3989_s30 + $0x118] sm:$0x3]  ;;  %v4819_v60 = vld [vmem:[%s3989_s30 + $0x128] sm:$0xff] }
 0x151   : > { %929 = vrot.lane.b32.xlu1 %v4616_v40, %s6366_s18  ;;  %841 = vrot.lane.b32.xlu0 %v4678_v34, %s3867_s14  ;;  %v1450_v38 = vsel %vm1439_vm9, %v1419_v0, %v1094_v9  ;;  %v417_v9 = vrot.slane %v302_v11, 1  ;;  %v420_v23 = vrot.slane %v4819_v60, 1 }
 0x153   : > { %v4727_v53 = vpop.permute.xlu1 %737  ;;  %v4729_v48 = vpop.permute.xlu0 %649  ;;  %v4826_v0 = vsel %vm355_vm1, %v415_v43, %v417_v9 }
 0x155   : > { %663 = vrot.lane.b32.xlu1 %v4582_v21, %s6367_s19  ;;  %575 = vrot.lane.b32.xlu0 %v4587_v49, %s6359_s13  ;;  %v1296_v21 = vsel %vm1284_vm4, %v1265_v45, %v646_v7  ;;  %v412_v49 = vrot.slane %v299_v18, 1 }
 0x156   : > { %v1327_v14 = vsel %vm1315_vm5, %v1296_v21, %v736_v51 }
 0x157   : > { %v1184_v20 = vpop.permute.xlu1 %1183  ;;  %v1096_v44 = vpop.permute.xlu0 %1095  ;;  %v1358_v10 = vsel %vm1346_vm6, %v1327_v14, %v826_v37  ;;  %v4764_v59 = vsel %vm355_vm1, %v412_v49, %v413_v58  ;;  %v486_v37 = vrot.slane %v4770_v15, 2 }
 0x158   : > { %v1481_v29 = vsel %vm6356_vm10, %v1450_v38, %v1184_v20  ;;  %v1389_v3 = vsel %vm1377_vm7, %v1358_v10, %v916_v41  ;;  %v488_v38 = vrot.slane %v302_v11, 2 }
 0x159   : > { %1019 = vrot.lane.b32.xlu1 %v299_v18, %s3869_s29  ;;  %931 = vrot.lane.b32.xlu0 %v4693_v6, %s6366_s18  ;;  %v1420_v24 = vsel %vm6361_vm8, %v1389_v3, %v1006_v35  ;;  %v4813_v35 = vld [vmem:[%s3989_s30 + $0x120] sm:$0xff] }
 0x15a   : > { %3488 = vmatprep.mubr.msk.f32.mxu0 %vm6355_vm11, %v1481_v29  ;;  %v1451_v8 = vsel %vm1439_vm9, %v1420_v24, %v1096_v44  ;;  %v419_v20 = vrot.slane %v4813_v35, 1  ;;  %v4842_v49 = vsel %vm426_vm0, %v486_v37, %v488_v38  ;;  %v490_v24 = vrot.slane %v4813_v35, 2 }
 0x15b   : > { %v828_v30 = vpop.permute.xlu1 %827  ;;  %v4754_v1 = vpop.permute.xlu0 %739 }
 0x15d   : > { %753 = vrot.lane.b32.xlu1 %v4658_v31, %s3864_s9  ;;  %665 = vrot.lane.b32.xlu0 %v4616_v40, %s6367_s19  ;;  %v483_v40 = vrot.slane %v299_v18, 2  ;;  %v484_v31 = vrot.slane %v4741_v19, 2 }
 0x15f   : > { %v4767_v39 = vpop.permute.xlu1 %561  ;;  %v1186_v2 = vpop.permute.xlu0 %1185  ;;  %v4784_v5 = vsel %vm426_vm0, %v483_v40, %v484_v31  ;;  %v4803_v54 = vsel %vm426_vm0, %v484_v31, %v486_v37 }
 0x160   : > { %v1482_v7 = vsel %vm6356_vm10, %v1451_v8, %v1186_v2  ;;  %v491_v8 = vrot.slane %v4819_v60, 2 }
 0x161   : > { %1109 = vrot.lane.b32.xlu1 %v4764_v59, %s3870_s16  ;;  %1021 = vrot.lane.b32.xlu0 %v4741_v19, %s3869_s29 }
 0x162   : > { %3489 = vmatmul.mubr.msk.f32.gmra.mrb[10].mxu0 %vm6355_vm11, %v1482_v7  ;;  %v4875_v31 = vsel %vm426_vm0, %v490_v24, %v491_v8 }
 0x163   : > { %v918_v56 = vpop.permute.xlu1 %917  ;;  %v830_v51 = vpop.permute.xlu0 %829 }
 0x165   : > { %843 = vrot.lane.b32.xlu1 %v4696_v32, %s3867_s14  ;;  %755 = vrot.lane.b32.xlu0 %v299_v18, %s3864_s9  ;;  %v1297_v18 = vsel %vm1284_vm4, %v1266_v22, %v4711_v50 }
 0x166   : > { %v1328_v47 = vsel %vm1315_vm5, %v1297_v18, %v4727_v53  ;;  %v4847_v53 = vsel %vm355_vm1, %v419_v20, %v420_v23  ;;  %v4919_v20 = vld [vmem:[%s3989_s30 + $0x130] sm:$0xff] }
 0x167   : > { %v4789_v52 = vpop.permute.xlu1 %651  ;;  %v4791_v46 = vpop.permute.xlu0 %563  ;;  %v1359_v45 = vsel %vm1346_vm6, %v1328_v47, %v828_v30 }
 0x168   : > { %v1390_v21 = vsel %vm1377_vm7, %v1359_v45, %v918_v56  ;;  %v1269_v22 = vsel %vm1253_vm3, %v4259_v55, %v4791_v46 }
 0x169   : > { %1199 = vrot.lane.b32.xlu1 %v4784_v5, %s6357_s12  ;;  %1111 = vrot.lane.b32.xlu0 %v4787_v25, %s3870_s16 }
 0x16b   : > { %v1008_v27 = vpop.permute.xlu1 %1007  ;;  %v920_v28 = vpop.permute.xlu0 %919 }
 0x16c   : > { %v1421_v50 = vsel %vm6361_vm8, %v1390_v21, %v1008_v27 }
 0x16d   : > { %933 = vrot.lane.b32.xlu1 %v4709_v12, %s6366_s18  ;;  %845 = vrot.lane.b32.xlu0 %v4764_v59, %s3867_s14 }
 0x16f   : > { %v742_v41 = vpop.permute.xlu1 %741  ;;  %v4806_v42 = vpop.permute.xlu0 %653 }
 0x171   : > { %935 = vrot.lane.b32.xlu1 %v4784_v5, %s6366_s18  ;;  %1201 = vrot.lane.b32.xlu0 %v4803_v54, %s6357_s12 }
 0x173   : > { %v1098_v16 = vpop.permute.xlu1 %1097  ;;  %v1010_v62 = vpop.permute.xlu0 %1009 }
 0x174   : > { %v1452_v58 = vsel %vm1439_vm9, %v1421_v50, %v1098_v16  ;;  %v1300_v16 = vsel %vm1284_vm4, %v1269_v22, %v4806_v42  ;;  %v422_v42 = vrot.slane %v4919_v20, 1 }
 0x175   : > { %1025 = vrot.lane.b32.xlu1 %v4813_v35, %s3869_s29  ;;  %1023 = vrot.lane.b32.xlu0 %v4770_v15, %s3869_s29 }
 0x177   : > { %v832_v44 = vpop.permute.xlu1 %831  ;;  %v744_v29 = vpop.permute.xlu0 %743 }
 0x179   : > { %577 = vrot.lane.b32.xlu1 %v4678_v34, %s6359_s13  ;;  %1113 = vrot.lane.b32.xlu0 %v4826_v0, %s3870_s16  ;;  %v1267_v34 = vsel %vm1253_vm3, %v4191_v26, %v4713_v57 }
 0x17a   : > { %v1298_v3 = vsel %vm1284_vm4, %v1267_v34, %v4729_v48 }
 0x17b   : > { %v1188_v14 = vpop.permute.xlu1 %1187  ;;  %v1100_v30 = vpop.permute.xlu0 %1099  ;;  %v1329_v2 = vsel %vm1315_vm5, %v1298_v3, %v4754_v1 }
 0x17c   : > { %v1483_v10 = vsel %vm6356_vm10, %v1452_v58, %v1188_v14  ;;  %v1360_v57 = vsel %vm1346_vm6, %v1329_v2, %v830_v51  ;;  %v4943_v58 = vsel %vm355_vm1, %v420_v23, %v422_v42 }
 0x17d   : > { %1203 = vrot.lane.b32.xlu1 %v4842_v49, %s6357_s12  ;;  %1115 = vrot.lane.b32.xlu0 %v4847_v53, %s3870_s16  ;;  %v1391_v40 = vsel %vm1377_vm7, %v1360_v57, %v920_v28 }
 0x17e   : > { %3491 = vmatprep.mubr.msk.f32.mxu0 %vm6355_vm11, %v1483_v10  ;;  %v1422_v48 = vsel %vm6361_vm8, %v1391_v40, %v1010_v62  ;;  %v1331_v62 = vsel %vm1315_vm5, %v1300_v16, %v744_v29  ;;  %v306_v10 = vld [vmem:[%s3989_s30 + $0x138] sm:$0x3] }
 0x17f   : > { %v922_v7 = vpop.permute.xlu1 %921  ;;  %v834_v26 = vpop.permute.xlu0 %833  ;;  %v1453_v1 = vsel %vm1439_vm9, %v1422_v48, %v1100_v30 }
 0x180   : > { %v1362_v55 = vsel %vm1346_vm6, %v1331_v62, %v834_v26 }
 0x181   : > { %667 = vrot.lane.b32.xlu1 %v4693_v6, %s6367_s19  ;;  %579 = vrot.lane.b32.xlu0 %v4696_v32, %s6359_s13  ;;  %v1268_v6 = vsel %vm1253_vm3, %v4210_v36, %v4767_v39 }
 0x183   : > { %v924_v43 = vpop.permute.xlu1 %923  ;;  %v1190_v56 = vpop.permute.xlu0 %1189 }
 0x184   : > { %v1484_v51 = vsel %vm6356_vm10, %v1453_v1, %v1190_v56  ;;  %v1393_v46 = vsel %vm1377_vm7, %v1362_v55, %v924_v43 }
 0x185   : > { %669 = vrot.lane.b32.xlu1 %v4709_v12, %s6367_s19  ;;  %1205 = vrot.lane.b32.xlu0 %v4875_v31, %s6357_s12  ;;  %v1299_v12 = vsel %vm1284_vm4, %v1268_v6, %v4789_v52 }
 0x186   : > { %3492 = vmatmul.mubr.msk.f32.gmra.mrb[12].mxu0 %vm6355_vm11, %v1484_v51  ;;  %v1330_v27 = vsel %vm1315_vm5, %v1299_v12, %v742_v41 }
 0x187   : > { %v1014_v32 = vpop.permute.xlu1 %1013  ;;  %v1012_v37 = vpop.permute.xlu0 %1011  ;;  %v1361_v9 = vsel %vm1346_vm6, %v1330_v27, %v832_v44 }
 0x188   : > { %v1392_v36 = vsel %vm1377_vm7, %v1361_v9, %v922_v7 }
 0x189   : > { %759 = vrot.lane.b32.xlu1 %v4770_v15, %s3864_s9  ;;  %757 = vrot.lane.b32.xlu0 %v4741_v19, %s3864_s9  ;;  %v1423_v19 = vsel %vm6361_vm8, %v1392_v36, %v1012_v37  ;;  %v307_v37 = vld [vmem:[%s3989_s30 + $0x140] sm:$0xff] }
 0x18b   : > { %v4894_v28 = vpop.permute.xlu1 %565  ;;  %v1102_v11 = vpop.permute.xlu0 %1101 }
 0x18c   : > { %v1454_v39 = vsel %vm1439_vm9, %v1423_v19, %v1102_v11  ;;  %v1270_v48 = vsel %vm1253_vm3, %v4262_v61, %v4894_v28  ;;  %v5007_v11 = vld [vmem:[%s3989_s30 + $0x148] sm:$0xff] }
 0x18d   : > { %849 = vrot.lane.b32.xlu1 %v4826_v0, %s3867_s14  ;;  %847 = vrot.lane.b32.xlu0 %v4787_v25, %s3867_s14 }
 0x18f   : > { %v1192_v15 = vpop.permute.xlu1 %1191  ;;  %v1104_v52 = vpop.permute.xlu0 %1103 }
 0x190   : > { %v1485_v41 = vsel %vm6356_vm10, %v1454_v39, %v1192_v15  ;;  %v502_v15 = vrot.slane %v5007_v11, 1 }
 0x191   : > { %581 = vrot.lane.b32.xlu1 %v4764_v59, %s6359_s13  ;;  %937 = vrot.lane.b32.xlu0 %v4803_v54, %s6366_s18  ;;  %v1424_v59 = vsel %vm6361_vm8, %v1393_v46, %v1014_v32 }
 0x192   : > { %3494 = vmatprep.mubr.msk.f32.mxu0 %vm6355_vm11, %v1485_v41  ;;  %v1455_v47 = vsel %vm1439_vm9, %v1424_v59, %v1104_v52  ;;  %v5038_v59 = vld [vmem:[%s3989_s30 + $0x150] sm:$0xff] }
 0x193   : > { %v656_v18 = vpop.permute.xlu1 %655  ;;  %v4916_v38 = vpop.permute.xlu0 %567 }
 0x194   : > { %v1301_v43 = vsel %vm1284_vm4, %v1270_v48, %v656_v18  ;;  %v1271_v36 = vsel %vm1253_vm3, %v4356_v63, %v4916_v38 }
 0x195   : > { %1027 = vrot.lane.b32.xlu1 %v4819_v60, %s3869_s29  ;;  %939 = vrot.lane.b32.xlu0 %v4842_v49, %s6366_s18 }
 0x197   : > { %v658_v44 = vpop.permute.xlu1 %657  ;;  %v1194_v29 = vpop.permute.xlu0 %1193 }
 0x198   : > { %v1486_v45 = vsel %vm6356_vm10, %v1455_v47, %v1194_v29  ;;  %v504_v47 = vrot.slane %v5038_v59, 1 }
 0x199   : > { %v4931_v21 = vpop.f32.mrb[0].mxu0  ;;  %671 = vrot.lane.b32.xlu1 %v4784_v5, %s6367_s19  ;;  %583 = vrot.lane.b32.xlu0 %v4787_v25, %s6359_s13  ;;  %v493_v5 = vrot.slane %v4919_v20, 2  ;;  %v424_v25 = vrot.slane %v306_v10, 1 }
 0x19a   : > { %v4937_v50 = vpop.f32.mrb[1].mxu0  ;;  %3495 = vmatmul.mubr.msk.f32.gmra.mrb[14].mxu0 %vm6355_vm11, %v1486_v45 }
 0x19b   : > { %v748_v14 = vpop.permute.xlu1 %747  ;;  %v746_v30 = vpop.permute.xlu0 %745  ;;  %v4958_v23 = vsel %vm426_vm0, %v491_v8, %v493_v5  ;;  %v4961_v24 = vsel %vm355_vm1, %v422_v42, %v424_v25 }
 0x19d   : > { %1117 = vrot.lane.b32.xlu1 %v4943_v58, %s3870_s16  ;;  %1029 = vrot.lane.b32.xlu0 %v4919_v20, %s3869_s29 }
 0x19f   : > { %v838_v34 = vpop.permute.xlu1 %837  ;;  %v836_v3 = vpop.permute.xlu0 %835 }
 0x1a1   : > { %761 = vrot.lane.b32.xlu1 %v4813_v35, %s3864_s9  ;;  %673 = vrot.lane.b32.xlu0 %v4803_v54, %s6367_s19  ;;  %v495_v35 = vrot.slane %v306_v10, 2 }
 0x1a3   : > { %v4963_v2 = vpop.permute.xlu1 %569  ;;  %v926_v7 = vpop.permute.xlu0 %925  ;;  %v4974_v8 = vsel %vm426_vm0, %v493_v5, %v495_v35  ;;  %v511_v5 = vrot.slane %v5038_v59, 2 }
 0x1a5   : > { %1207 = vrot.lane.b32.xlu1 %v4958_v23, %s6357_s12  ;;  %1119 = vrot.lane.b32.xlu0 %v4961_v24, %s3870_s16 }
 0x1a7   : > { %v1016_v26 = vpop.permute.xlu1 %1015  ;;  %v928_v54 = vpop.permute.xlu0 %927 }
 0x1a9   : > { %851 = vrot.lane.b32.xlu1 %v4847_v53, %s3867_s14  ;;  %763 = vrot.lane.b32.xlu0 %v4819_v60, %s3864_s9 }
 0x1ab   : > { %v4976_v57 = vpop.permute.xlu1 %659  ;;  %v4978_v40 = vpop.permute.xlu0 %571 }
 0x1ad   : > { %585 = vrot.lane.b32.xlu1 %v4826_v0, %s6359_s13  ;;  %1209 = vrot.lane.b32.xlu0 %v4974_v8, %s6357_s12  ;;  %v1332_v0 = vsel %vm1315_vm5, %v1301_v43, %v746_v30 }
 0x1ae   : > { %v1363_v6 = vsel %vm1346_vm6, %v1332_v0, %v836_v3  ;;  %v5083_v0 = vld [vmem:[%s3989_s30 + $0x168] sm:$0xff] }
 0x1af   : > { %v1106_v1 = vpop.permute.xlu1 %1105  ;;  %v1018_v60 = vpop.permute.xlu0 %1017  ;;  %v1394_v61 = vsel %vm1377_vm7, %v1363_v6, %v926_v7 }
 0x1b0   : > { %v1425_v32 = vsel %vm6361_vm8, %v1394_v61, %v1016_v26  ;;  %v310_v26 = vld [vmem:[%s3989_s30 + $0x158] sm:$0x3] }
 0x1b1   : > { %941 = vrot.lane.b32.xlu1 %v4875_v31, %s6366_s18  ;;  %853 = vrot.lane.b32.xlu0 %v4943_v58, %s3867_s14  ;;  %v1456_v12 = vsel %vm1439_vm9, %v1425_v32, %v1106_v1  ;;  %v506_v48 = vrot.slane %v310_v26, 1  ;;  %v1272_v1 = vsel %vm1253_vm3, %v4459_v33, %v4963_v2 }
 0x1b2   : > { %v1303_v61 = vsel %vm1284_vm4, %v1272_v1, %v4976_v57 }
 0x1b3   : > { %v4993_v56 = vpop.permute.xlu1 %749  ;;  %v4995_v51 = vpop.permute.xlu0 %661  ;;  %v5091_v32 = vsel %vm355_vm1, %v504_v47, %v506_v48 }
 0x1b4   : > { %v1334_v33 = vsel %vm1315_vm5, %v1303_v61, %v4993_v56 }
 0x1b5   : > { %675 = vrot.lane.b32.xlu1 %v4842_v49, %s6367_s19  ;;  %587 = vrot.lane.b32.xlu0 %v4847_v53, %s6359_s13  ;;  %v1302_v49 = vsel %vm1284_vm4, %v1271_v36, %v658_v44  ;;  %v501_v53 = vrot.slane %v307_v37, 1 }
 0x1b6   : > { %v1333_v52 = vsel %vm1315_vm5, %v1302_v49, %v748_v14  ;;  %v5054_v14 = vsel %vm355_vm1, %v502_v15, %v504_v47 }
 0x1b7   : > { %v1196_v27 = vpop.permute.xlu1 %1195  ;;  %v1108_v28 = vpop.permute.xlu0 %1107  ;;  %v1364_v22 = vsel %vm1346_vm6, %v1333_v52, %v838_v34  ;;  %v503_v18 = vsel %vm355_vm1, %v501_v53, %v502_v15 }
 0x1b8   : > { %v1487_v9 = vsel %vm6356_vm10, %v1456_v12, %v1196_v27  ;;  %v1395_v16 = vsel %vm1377_vm7, %v1364_v22, %v928_v54  ;;  %v311_v54 = vld [vmem:[%s3989_s30 + $0x160] sm:$0xff]  ;;  %v520_v12 = vrot.slane %v5083_v0, 1 }
 0x1b9   : > { %v5013_v19 = vpop.f32.mrb[2].mxu0  ;;  %1031 = vrot.lane.b32.xlu1 %v307_v37, %s3869_s29  ;;  %943 = vrot.lane.b32.xlu0 %v4958_v23, %s6366_s18  ;;  %v1426_v62 = vsel %vm6361_vm8, %v1395_v16, %v1018_v60  ;;  %v519_v6 = vrot.slane %v311_v54, 1 }
 0x1ba   : > { %v5019_v39 = vpop.f32.mrb[3].mxu0  ;;  %3497 = vmatprep.mubr.msk.f32.mxu0 %vm6355_vm11, %v1487_v9  ;;  %v1457_v38 = vsel %vm1439_vm9, %v1426_v62, %v1108_v28  ;;  %v5102_v9 = vld [vmem:[%s6345_s2] ss:$0 sm:$0xff] }
 0x1bb   : > { %v840_v63 = vpop.permute.xlu1 %839  ;;  %v5024_v41 = vpop.permute.xlu0 %751  ;;  %v521_v52 = vsel %vm355_vm1, %v519_v6, %v520_v12 }
 0x1bc   : > { %v1365_v28 = vsel %vm1346_vm6, %v1334_v33, %v840_v63  ;;  %v5121_v63 = vadd.f32 %v5013_v19, %v5102_v9 }
 0x1bd   : > { %765 = vrot.lane.b32.xlu1 %v4919_v20, %s3864_s9  ;;  %677 = vrot.lane.b32.xlu0 %v4875_v31, %s6367_s19  ;;  %v508_v20 = vrot.slane %v307_v37, 2  ;;  %v509_v31 = vrot.slane %v5007_v11, 2 }
 0x1be   : > { %v2077_v47 = vrot.slane %v5121_v63, 1 }
 0x1bf   : > { %v5035_v55 = vpop.permute.xlu1 %573  ;;  %v1198_v46 = vpop.permute.xlu0 %1197  ;;  %v510_v45 = vsel %vm426_vm0, %v508_v20, %v509_v31  ;;  %v5068_v3 = vsel %vm426_vm0, %v509_v31, %v511_v5  ;;  %v526_v20 = vrot.slane %v311_v54, 2  ;;  %v527_v31 = vrot.slane %v5083_v0, 2 }
 0x1c0   : > { %v1488_v42 = vsel %vm6356_vm10, %v1457_v38, %v1198_v46  ;;  %v1273_v46 = vsel %vm1253_vm3, %v4468_v13, %v4978_v40 }
 0x1c1   : > { %1121 = vrot.lane.b32.xlu1 %v503_v18, %s3870_s16  ;;  %1033 = vrot.lane.b32.xlu0 %v5007_v11, %s3869_s29  ;;  %v1304_v19 = vsel %vm1284_vm4, %v1273_v46, %v4995_v51 }
 0x1c2   : > { %3498 = vmatmul.mubr.msk.f32.gmra.mrb[16].mxu0 %vm6355_vm11, %v1488_v42  ;;  %v1335_v13 = vsel %vm1315_vm5, %v1304_v19, %v5024_v41 }
 0x1c3   : > { %v930_v44 = vpop.permute.xlu1 %929  ;;  %v5047_v29 = vpop.permute.xlu0 %841 }
 0x1c4   : > { %v1396_v57 = vsel %vm1377_vm7, %v1365_v28, %v930_v44  ;;  %v313_v28 = vld [vmem:[%s3989_s30 + $0x170] sm:$0xff] }
 0x1c5   : > { %855 = vrot.lane.b32.xlu1 %v4961_v24, %s3867_s14  ;;  %767 = vrot.lane.b32.xlu0 %v307_v37, %s3864_s9  ;;  %v513_v37 = vrot.slane %v310_v26, 2  ;;  %v528_v26 = vsel %vm426_vm0, %v526_v20, %v527_v31 }
 0x1c7   : > { %v5056_v30 = vpop.permute.xlu1 %663  ;;  %v5058_v10 = vpop.permute.xlu0 %575  ;;  %v5114_v15 = vsel %vm426_vm0, %v511_v5, %v513_v37  ;;  %v1366_v5 = vsel %vm1346_vm6, %v1335_v13, %v5047_v29 }
 0x1c9   : > { %1211 = vrot.lane.b32.xlu1 %v510_v45, %s6357_s12  ;;  %1123 = vrot.lane.b32.xlu0 %v5054_v14, %s3870_s16 }
 0x1cb   : > { %v1020_v25 = vpop.permute.xlu1 %1019  ;;  %v932_v34 = vpop.permute.xlu0 %931 }
 0x1cc   : > { %v1427_v56 = vsel %vm6361_vm8, %v1396_v57, %v1020_v25  ;;  %v1397_v51 = vsel %vm1377_vm7, %v1366_v5, %v932_v34  ;;  %v314_v57 = vld [vmem:[%s3989_s30 + $0x178] sm:$0x3] }
 0x1cd   : > { %945 = vrot.lane.b32.xlu1 %v4974_v8, %s6366_s18  ;;  %857 = vrot.lane.b32.xlu0 %v503_v18, %s3867_s14 }
 0x1cf   : > { %v5070_v7 = vpop.permute.xlu1 %753  ;;  %v5072_v35 = vpop.permute.xlu0 %665 }
 0x1d1   : > { %947 = vrot.lane.b32.xlu1 %v510_v45, %s6366_s18  ;;  %1213 = vrot.lane.b32.xlu0 %v5068_v3, %s6357_s12 }
 0x1d3   : > { %v1110_v60 = vpop.permute.xlu1 %1109  ;;  %v1022_v43 = vpop.permute.xlu0 %1021 }
 0x1d4   : > { %v1428_v41 = vsel %vm6361_vm8, %v1397_v51, %v1022_v43 }
 0x1d5   : > { %1037 = vrot.lane.b32.xlu1 %v311_v54, %s3869_s29  ;;  %1035 = vrot.lane.b32.xlu0 %v5038_v59, %s3869_s29 }
 0x1d7   : > { %v844_v2 = vpop.permute.xlu1 %843  ;;  %v5096_v27 = vpop.permute.xlu0 %755 }
 0x1d9   : > { %v3481_v36 = vpop.f32.mrb[4].mxu0  ;;  %589 = vrot.lane.b32.xlu1 %v4943_v58, %s6359_s13  ;;  %1125 = vrot.lane.b32.xlu0 %v5091_v32, %s3870_s16  ;;  %v1458_v58 = vsel %vm1439_vm9, %v1427_v56, %v1110_v60  ;;  %v1863_v60 = vlaneseq  ;;  %v1685_v56 = vadd.f32 %v5102_v9, %v5019_v39  ;;  %v524_v39 = vrot.slane %v314_v57, 1 }
 0x1da   : > { %v5111_v49 = vadd.f32 %v3481_v36, %v5102_v9  ;;  %v1694_v53 = vpop.f32.mrb[5].mxu0  ;;  %v1675_v36 = vadd.f32 %v5102_v9, %v4937_v50 }
 0x1db   : > { %v5125_v22 = vadd.f32 %v5102_v9, %v1694_v53  ;;  %v1200_v16 = vpop.permute.xlu1 %1199  ;;  %v1112_v62 = vpop.permute.xlu0 %1111  ;;  %v5183_v37 = vshrl.u32 %v1863_v60, 7  ;;  %v1275_v53 = vsel %vm1253_vm3, %v4552_v4, %v5058_v10  ;;  %v522_v4 = vrot.slane %v313_v28, 1 }
 0x1dc   : > { %v2080_v18 = vrot.slane %v5111_v49, 1  ;;  %v1489_v38 = vsel %vm6356_vm10, %v1458_v58, %v1200_v16  ;;  %v1459_v29 = vsel %vm1439_vm9, %v1428_v41, %v1112_v62  ;;  %v1306_v50 = vsel %vm1284_vm4, %v1275_v53, %v5072_v35 }
 0x1dd   : > { %v2078_v42 = vrot.slane %v5125_v22, 1  ;;  %1215 = vrot.lane.b32.xlu1 %v5114_v15, %s6357_s12  ;;  %1127 = vrot.lane.b32.xlu0 %v521_v52, %s3870_s16  ;;  %vm1897_vm15 = vcmp.ge.s32.totalorder %v5183_v37, 1  ;;  %v1337_v10 = vsel %vm1315_vm5, %v1306_v50, %v5096_v27  ;;  %v529_v58 = vrot.slane %v313_v28, 2 }
 0x1de   : > { %3500 = vmatprep.mubr.msk.f32.mxu0 %vm6355_vm11, %v1489_v38  ;;  %v1823_v62 = vmax.f32 %v1675_v36, 0.0  ;;  %v1825_v35 = vmax.f32 %v1685_v56, 0.0  ;;  %v525_v38 = vsel %vm355_vm1, %v522_v4, %v524_v39  ;;  %v523_v46 = vsel %vm355_vm1, %v520_v12, %v522_v4 }
 0x1df   : > { %v934_v40 = vpop.permute.xlu1 %933  ;;  %v846_v44 = vpop.permute.xlu0 %845  ;;  %v5144_v45 = vsel %vm355_vm1, %v2078_v42, %v2080_v18  ;;  %v5154_v25 = vsel %vm355_vm1, %v2077_v47, %v2078_v42  ;;  %v531_v42 = vrot.slane %v314_v57, 2  ;;  %v1826_v57 = vmax.f32 %v5121_v63, 0.0 }
 0x1e0   : > { %v1368_v52 = vsel %vm1346_vm6, %v1337_v10, %v846_v44  ;;  %v2775_v10 = vld [vmem:[%s6346_s3] sm:$0xff] }
 0x1e1   : > { %679 = vrot.lane.b32.xlu1 %v4958_v23, %s6367_s19  ;;  %591 = vrot.lane.b32.xlu0 %v4961_v24, %s6359_s13  ;;  %v1274_v23 = vsel %vm1253_vm3, %v4502_v17, %v5035_v55  ;;  %v5180_v55 = vstv %s3315_s20  ;;  %s6377_s20 = smov 32  }
 0x1e2   : > { %vm1867_vm12 = vcmp.ge.s32.totalorder %v5180_v55, 1  ;;  %vm1877_vm13 = vcmp.lt.s32.totalorder %v5180_v55, 17  ;;  %v1854_v12 = vadd.s32 1, %v5180_v55  ;;  %v1855_v36 = vadd.s32 2, %v5180_v55 }
 0x1e3   : > { %v936_v54 = vpop.permute.xlu1 %935  ;;  %v1202_v34 = vpop.permute.xlu0 %1201  ;;  %vm5215_vm14 = vmand %vm1867_vm12, %vm1877_vm13 }
 0x1e4   : > { %v1490_v48 = vsel %vm6356_vm10, %v1459_v29, %v1202_v34  ;;  %vm1900_vm12 = vmand %vm5215_vm14, %vm1897_vm15  ;;  %v1399_v18 = vsel %vm1377_vm7, %v1368_v52, %v936_v54  ;;  %v532_v29 = vsel %vm426_vm0, %v529_v58, %v531_v42  ;;  %v530_v54 = vsel %vm426_vm0, %v527_v31, %v529_v58  ;;  %v2776_v52 = vld [vmem:[%s6346_s3 + $0x8] sm:$0xff] }
 0x1e5   : > { %681 = vrot.lane.b32.xlu1 %v4974_v8, %s6367_s19  ;;  %1217 = vrot.lane.b32.xlu0 %v528_v26, %s6357_s12  ;;  %v1305_v8 = vsel %vm1284_vm4, %v1274_v23, %v5056_v30  ;;  %v5194_v30 = vadd.s32 16, %v5183_v37  ;;  %v5256_v44 = vsel %vm1900_vm12, %v1823_v62, 0.0  ;;  %vm1878_vm12 = vcmp.lt.s32.totalorder %v1854_v12, 17 }
 0x1e6   : > { %3501 = vmatmul.mubr.msk.f32.gmra.mrb[18].mxu0 %vm6355_vm11, %v1490_v48  ;;  %v1336_v43 = vsel %vm1315_vm5, %v1305_v8, %v5070_v7 }
 0x1e7   : > { %v1026_v24 = vpop.permute.xlu1 %1025  ;;  %v1024_v1 = vpop.permute.xlu0 %1023  ;;  %v1367_v61 = vsel %vm1346_vm6, %v1336_v43, %v844_v2  ;;  %vm1932_vm2 = vcmp.lt.s32.totalorder %v5194_v30, 17 }
 0x1e8   : > { %vm1935_vm13 = vmand %vm5215_vm14, %vm1932_vm2  ;;  %v1430_v27 = vsel %vm6361_vm8, %v1399_v18, %v1026_v24 }
 0x1e9   : > { %771 = vrot.lane.b32.xlu1 %v5038_v59, %s3864_s9  ;;  %769 = vrot.lane.b32.xlu0 %v5007_v11, %s3864_s9  ;;  %v1398_v59 = vsel %vm1377_vm7, %v1367_v61, %v934_v40  ;;  %v2025_v5 = vsel %vm1935_vm13, %v1825_v35, 0.0 }
 0x1ea   : > { %v1429_v11 = vsel %vm6361_vm8, %v1398_v59, %v1024_v1  ;;  %v2157_v1 = vrot.slane %v5256_v44, 1  ;;  %v2160_v60 = vrot.slane %v2025_v5, 1  ;;  %v2197_v59 = vrot.slane %v5256_v44, 2 }
 0x1eb   : > { %v5178_v6 = vpop.permute.xlu1 %577  ;;  %v1114_v17 = vpop.permute.xlu0 %1113 }
 0x1ec   : > { %v1460_v7 = vsel %vm1439_vm9, %v1429_v11, %v1114_v17  ;;  %v2200_v11 = vrot.slane %v2025_v5, 2  ;;  %v2777_v5 = vld [vmem:[%s6346_s3 + $0x10] sm:$0xff] }
 0x1ed   : > { %861 = vrot.lane.b32.xlu1 %v5091_v32, %s3867_s14  ;;  %859 = vrot.lane.b32.xlu0 %v5054_v14, %s3867_s14  ;;  %v1680_v32 = vadd.f32 %v4931_v21, %v5102_v9 }
 0x1ef   : > { %v1204_v33 = vpop.permute.xlu1 %1203  ;;  %v1116_v2 = vpop.permute.xlu0 %1115  ;;  %v1824_v16 = vmax.f32 %v1680_v32, 0.0 }
 0x1f0   : > { %v1491_v14 = vsel %vm6356_vm10, %v1460_v7, %v1204_v33  ;;  %v1461_v19 = vsel %vm1439_vm9, %v1430_v27, %v1116_v2  ;;  %v1828_v2 = vmax.f32 %v5111_v49, 0.0 }
 0x1f1   : > { %951 = vrot.lane.b32.xlu1 %v5114_v15, %s6366_s18  ;;  %949 = vrot.lane.b32.xlu0 %v5068_v3, %s6366_s18  ;;  %v5254_v40 = vsel %vm5215_vm14, %v1824_v16, 0.0  ;;  %vm1868_vm14 = vcmp.ge.s32.totalorder %v1854_v12, 1  ;;  %v3595_v16 = vpack.c.bf16 %v2776_v52, %v2775_v10 }
 0x1f2   : > { %3503 = vmatprep.mubr.msk.f32.mxu0 %vm6355_vm11, %v1491_v14  ;;  %v2158_v24 = vrot.slane %v5254_v40, 1  ;;  %vm1888_vm13 = vmand %vm1868_vm14, %vm1878_vm12  ;;  %vm1869_vm12 = vcmp.ge.s32.totalorder %v1855_v36, 1 }
 0x1f3   : > { %v5226_v3 = vpop.permute.xlu1 %667  ;;  %v5228_v15 = vpop.permute.xlu0 %579  ;;  %vm1903_vm14 = vmand %vm1888_vm13, %vm1897_vm15  ;;  %3596 = vmatprep.subr.bf16.mxu1 %v3595_v16 }
 0x1f4   : > { %v2161_v7 = vsel %vm355_vm1, %v2158_v24, %v2160_v60  ;;  %v2159_v33 = vsel %vm355_vm1, %v2157_v1, %v2158_v24  ;;  %v5319_v50 = vsel %vm1903_vm14, %v1826_v57, 0.0  ;;  %3598 = vmatpush3.bf16.msra.mxu1 %v3595_v16  ;;  %vm6372_vm14 = vcmask 1043456  }
 0x1f5   : > { %1041 = vrot.lane.b32.xlu1 %v313_v28, %s3869_s29  ;;  %1039 = vrot.lane.b32.xlu0 %v5083_v0, %s3869_s29  ;;  %v2198_v0 = vrot.slane %v5254_v40, 2  ;;  %v1827_v28 = vmax.f32 %v5125_v22, 0.0  ;;  %v2162_v58 = vrot.slane %v5319_v50, 1  ;;  %v2202_v12 = vrot.slane %v5319_v50, 2 }
 0x1f7   : > { %v5249_v20 = vpop.permute.xlu1 %669  ;;  %v1206_v47 = vpop.permute.xlu0 %1205  ;;  %v2201_v49 = vsel %vm426_vm0, %v2198_v0, %v2200_v11  ;;  %v2199_v56 = vsel %vm426_vm0, %v2197_v59, %v2198_v0  ;;  %v5313_v53 = vsel %vm1888_vm13, %v1827_v28, 0.0 }
 0x1f8   : > { %v1492_v13 = vsel %vm6356_vm10, %v1461_v19, %v1206_v47  ;;  %vm1879_vm10 = vcmp.lt.s32.totalorder %v1855_v36, 17  ;;  %v2163_v39 = vrot.slane %v5313_v53, 1 }
 0x1f9   : > { %v3484_v51 = vpop.f32.mrb[6].mxu0  ;;  %1131 = vrot.lane.b32.xlu1 %v525_v38, %s3870_s16  ;;  %1129 = vrot.lane.b32.xlu0 %v523_v46, %s3870_s16  ;;  %v2203_v38 = vrot.slane %v5313_v53, 2 }
 0x1fa   : > { %v5262_v41 = vadd.f32 %v3484_v51, %v5102_v9  ;;  %v1704_v26 = vpop.f32.mrb[7].mxu0  ;;  %3504 = vmatmul.mubr.msk.f32.gmra.mrb[20].mxu0 %vm6355_vm11, %v1492_v13  ;;  %vm1938_vm11 = vmand %vm1888_vm13, %vm1932_vm2  ;;  %v5346_v42 = vsel %vm355_vm1, %v2162_v58, %v2163_v39  ;;  %v2778_v51 = vld [vmem:[%s6346_s3 + $0x18] sm:$0xff] }
 0x1fb   : > { %v5270_v34 = vadd.f32 %v5102_v9, %v1704_v26  ;;  %v5272_v48 = vpop.permute.xlu1 %759  ;;  %v5274_v23 = vpop.permute.xlu0 %757  ;;  %v2028_v22 = vsel %vm1938_vm11, %v1828_v2, 0.0  ;;  %vm5333_vm11 = vmand %vm1869_vm12, %vm1879_vm10  ;;  %v2204_v0 = vsel %vm426_vm0, %v2202_v12, %v2203_v38 }
 0x1fc   : > { %v2083_v8 = vrot.slane %v5262_v41, 1  ;;  %v2165_v4 = vrot.slane %v2028_v22, 1  ;;  %v2205_v27 = vrot.slane %v2028_v22, 2  ;;  %v1830_v19 = vmax.f32 %v5262_v41, 0.0  ;;  %vm1906_vm10 = vmand %vm5333_vm11, %vm1897_vm15 }
 0x1fd   : > { %v2082_v43 = vrot.slane %v5270_v34, 1  ;;  %1221 = vrot.lane.b32.xlu1 %v532_v29, %s6357_s12  ;;  %1219 = vrot.lane.b32.xlu0 %v530_v54, %s6357_s12  ;;  %v1829_v47 = vmax.f32 %v5270_v34, 0.0  ;;  %v3599_v29 = vpack.c.bf16 %v2778_v51, %v2777_v5  ;;  %v3759_v54 = vld [vmem:[%s3989_s30 + $0xe8] sm:$0xff]  ;;  %vm1941_vm13 = vmand %vm5333_vm11, %vm1932_vm2 }
 0x1fe   : > { %v5343_v46 = vsel %vm355_vm1, %v2163_v39, %v2165_v4  ;;  %v1276_v34 = vsel %vm1253_vm3, %v3759_v54, %v5178_v6  ;;  %v5379_v59 = vsel %vm5333_vm11, %v1830_v19, 0.0  ;;  %vm6373_vm12 = vmmov %vm6372_vm14  ;;  %vm6374_vm11 = vcmask 261120  }
 0x1ff   : > { %v5283_v31 = vpop.permute.xlu1 %849  ;;  %v5285_v17 = vpop.permute.xlu0 %847  ;;  %v5290_v61 = vsel %vm355_vm1, %v2082_v43, %v2083_v8  ;;  %v2206_v43 = vsel %vm426_vm0, %v2203_v38, %v2205_v27  ;;  %3600 = vmatprep.subr.bf16.mxu1 %v3599_v29  ;;  %v5381_v11 = vsel %vm1906_vm10, %v1829_v47, 0.0  ;;  %v1307_v2 = vsel %vm1284_vm4, %v1276_v34, %v5226_v3  ;;  %v3760_v27 = vld [vmem:[%s3989_s30 + $0xf0] sm:$0xff] }
 0x200   : > { %3602 = vmatpush3.bf16.msra.mxu1 %v3599_v29  ;;  %v1338_v28 = vsel %vm1315_vm5, %v1307_v2, %v5274_v23  ;;  %v2168_v4 = vrot.slane %v5379_v59, 1  ;;  %v2167_v23 = vrot.slane %v5381_v11, 1  ;;  %v2208_v52 = vrot.slane %v5379_v59, 2 }
 0x201   : > { %2265 = vrot.lane.b32.xlu1 %v2161_v7, %s6359_s13  ;;  %2263 = vrot.lane.b32.xlu0 %v2159_v33, %s6359_s13  ;;  %v2779_v33 = vld [vmem:[%s6346_s3 + $0x20] sm:$0xf]  ;;  %v1369_v22 = vsel %vm1346_vm6, %v1338_v28, %v5285_v17  ;;  %v2207_v62 = vrot.slane %v5381_v11, 2  ;;  %vm6375_vm10 = vcmask 293888  }
 0x202   : > { %3526 = vmatprep.subr.msk.mxu1 %vm6372_vm14, %v2779_v33  ;;  %v5422_v16 = vsel %vm355_vm1, %v2167_v23, %v2168_v4  ;;  %vm6379_vm14 = vmmov %vm6375_vm10 }
 0x203   : > { %v5302_v32 = vpop.permute.xlu1 %581  ;;  %v5304_v14 = vpop.permute.xlu0 %937  ;;  %v5442_v12 = vsel %vm426_vm0, %v2207_v62, %v2208_v52 }
 0x204   : > { %v1400_v39 = vsel %vm1377_vm7, %v1369_v22, %v5304_v14  ;;  %3527 = vmatpush3.msk.msra.mxu1 %vm6373_vm12, %v2779_v33 }
 0x205   : > { %2313 = vrot.lane.b32.xlu1 %v2201_v49, %s6367_s19  ;;  %2311 = vrot.lane.b32.xlu0 %v2199_v56, %s6367_s19 }
 0x207   : > { %v5315_v63 = vpop.permute.xlu1 %1027  ;;  %v5317_v21 = vpop.permute.xlu0 %939 }
 0x208   : > { %v1431_v41 = vsel %vm6361_vm8, %v1400_v39, %v5315_v63  ;;  %v1277_v63 = vsel %vm1253_vm3, %v3760_v27, %v5228_v15 }
 0x209   : > { %2361 = vrot.lane.b32.xlu1 %v5313_v53, %s3864_s9  ;;  %2359 = vrot.lane.b32.xlu0 %v5319_v50, %s3864_s9  ;;  %v1308_v38 = vsel %vm1284_vm4, %v1277_v63, %v5249_v20 }
 0x20a   : > { %v1339_v19 = vsel %vm1315_vm5, %v1308_v38, %v5272_v48 }
 0x20b   : > { %v5337_v35 = vpop.permute.xlu1 %671  ;;  %v5339_v18 = vpop.permute.xlu0 %583  ;;  %v1370_v15 = vsel %vm1346_vm6, %v1339_v19, %v5283_v31 }
 0x20d   : > { %v5350_v13 = vpop.f32.mrb[8].mxu0  ;;  %2409 = vrot.lane.b32.xlu1 %v5343_v46, %s3867_s14  ;;  %2407 = vrot.lane.b32.xlu0 %v5346_v42, %s3867_s14 }
 0x20e   : > { %v1714_v26 = vpop.f32.mrb[9].mxu0 }
 0x20f   : > { %v1715_v24 = vadd.f32 %v5102_v9, %v1714_v26  ;;  %v1118_v1 = vpop.permute.xlu1 %1117  ;;  %v1030_v60 = vpop.permute.xlu0 %1029  ;;  %v1401_v26 = vsel %vm1377_vm7, %v1370_v15, %v5317_v21 }
 0x210   : > { %v1432_v20 = vsel %vm6361_vm8, %v1401_v26, %v1030_v60 }
 0x211   : > { %v1831_v6 = vmax.f32 %v1715_v24, 0.0  ;;  %v2085_v7 = vrot.slane %v1715_v24, 1  ;;  %2457 = vrot.lane.b32.xlu1 %v2206_v43, %s6366_s18  ;;  %2455 = vrot.lane.b32.xlu0 %v2204_v0, %s6366_s18  ;;  %v1856_v24 = vadd.s32 3, %v5180_v55 }
 0x213   : > { %v2031_v57 = vsel %vm1941_vm13, %v1831_v6, 0.0  ;;  %v5392_v36 = vpop.permute.xlu1 %761  ;;  %v5394_v49 = vpop.permute.xlu0 %673  ;;  %v5400_v56 = vsel %vm355_vm1, %v2083_v8, %v2085_v7  ;;  %v1462_v8 = vsel %vm1439_vm9, %v1431_v41, %v1118_v1  ;;  %vm6378_vm13 = vmmov %vm6374_vm11  ;;  %vm1870_vm12 = vcmp.ge.s32.totalorder %v1856_v24, 1 }
 0x214   : > { %v2170_v3 = vrot.slane %v2031_v57, 1  ;;  %v2210_v51 = vrot.slane %v2031_v57, 2 }
 0x215   : > { %2505 = vrot.lane.b32.xlu1 %v5379_v59, %s3869_s29  ;;  %2503 = vrot.lane.b32.xlu0 %v5381_v11, %s3869_s29 }
 0x216   : > { %v5419_v14 = vsel %vm355_vm1, %v2168_v4, %v2170_v3  ;;  %v5456_v34 = vsel %vm426_vm0, %v2208_v52, %v2210_v51 }
 0x217   : > { %v1208_v17 = vpop.permute.xlu1 %1207  ;;  %v1120_v10 = vpop.permute.xlu0 %1119 }
 0x218   : > { %v1493_v58 = vsel %vm6374_vm11, %v1462_v8, %v1208_v17  ;;  %v1463_v48 = vsel %vm1439_vm9, %v1432_v20, %v1120_v10  ;;  %vm1880_vm11 = vcmp.lt.s32.totalorder %v1856_v24, 17  ;;  %v3762_v24 = vld [vmem:[%s3989_s30 + $0x108] sm:$0xff] }
 0x219   : > { %2553 = vrot.lane.b32.xlu1 %v5419_v14, %s3870_s16  ;;  %2551 = vrot.lane.b32.xlu0 %v5422_v16, %s3870_s16 }
 0x21a   : > { %3506 = vmatprep.mubr.msk.f32.mxu0 %vm6375_vm10, %v1493_v58  ;;  %vm5482_vm10 = vmand %vm1870_vm12, %vm1880_vm11  ;;  %vm6382_vm12 = vcmask 261120   ;;  %vm6383_vm11 = vcmask 293888  }
 0x21b   : > { %v852_v47 = vpop.permute.xlu1 %851  ;;  %v5437_v5 = vpop.permute.xlu0 %763 }
 0x21d   : > { %2267 = vrot.lane.b32.xlu1 %v5346_v42, %s6376_s17  ;;  %2599 = vrot.lane.b32.xlu0 %v5442_v12, %s6377_s20 }
 0x21f   : > { %v5452_v29 = vpop.permute.xlu1 %585  ;;  %v1210_v31 = vpop.permute.xlu0 %1209 }
 0x220   : > { %v1494_v54 = vsel %vm6378_vm13, %v1463_v48, %v1210_v31  ;;  %vm1909_vm13 = vmand %vm5482_vm10, %vm1897_vm15 }
 0x221   : > { %2269 = vrot.lane.b32.xlu1 %v5343_v46, %s6376_s17  ;;  %2601 = vrot.lane.b32.xlu0 %v5456_v34, %s6377_s20 }
 0x222   : > { %3507 = vmatmul.mubr.msk.f32.gmra.mrb[22].mxu0 %vm6379_vm14, %v1494_v54  ;;  %vm1944_vm14 = vmand %vm5482_vm10, %vm1932_vm2 }
 0x223   : > { %v942_v21 = vpop.permute.xlu1 %941  ;;  %v5463_v42 = vpop.permute.xlu0 %853 }
 0x225   : > { %2317 = vrot.lane.b32.xlu1 %v2206_v43, %s6367_s19  ;;  %2315 = vrot.lane.b32.xlu0 %v2204_v0, %s6367_s19  ;;  %v1720_v43 = vadd.f32 %v5350_v13, %v5102_v9  ;;  %v3761_v13 = vld [vmem:[%s3989_s30 + $0x100] sm:$0xff] }
 0x226   : > { %v1278_v28 = vsel %vm1253_vm3, %v3761_v13, %v5302_v32 }
 0x227   : > { %v5468_v1 = vpop.permute.xlu1 %675  ;;  %v5470_v60 = vpop.permute.xlu0 %587  ;;  %v1832_v2 = vmax.f32 %v1720_v43, 0.0  ;;  %v1309_v23 = vsel %vm1284_vm4, %v1278_v28, %v5337_v35 }
 0x228   : > { %v1340_v8 = vsel %vm1315_vm5, %v1309_v23, %v5392_v36  ;;  %v2087_v36 = vrot.slane %v1720_v43, 1 }
 0x229   : > { %2365 = vrot.lane.b32.xlu1 %v5379_v59, %s3864_s9  ;;  %2363 = vrot.lane.b32.xlu0 %v5381_v11, %s3864_s9  ;;  %v5501_v3 = vsel %vm1909_vm13, %v1832_v2, 0.0  ;;  %v1371_v52 = vsel %vm1346_vm6, %v1340_v8, %v852_v47  ;;  %vm6385_vm13 = vmmov %vm6383_vm11 }
 0x22a   : > { %v1402_v62 = vsel %vm1377_vm7, %v1371_v52, %v942_v21  ;;  %v2172_v54 = vrot.slane %v5501_v3, 1  ;;  %v2212_v23 = vrot.slane %v5501_v3, 2 }
 0x22b   : > { %v1032_v46 = vpop.permute.xlu1 %1031  ;;  %v944_v6 = vpop.permute.xlu0 %943 }
 0x22c   : > { %v1433_v38 = vsel %vm6361_vm8, %v1402_v62, %v1032_v46  ;;  %v1279_v46 = vsel %vm1253_vm3, %v3762_v24, %v5339_v18 }
 0x22d   : > { %2413 = vrot.lane.b32.xlu1 %v5419_v14, %s3867_s14  ;;  %2411 = vrot.lane.b32.xlu0 %v5422_v16, %s3867_s14  ;;  %v1310_v0 = vsel %vm1284_vm4, %v1279_v46, %v5394_v49 }
 0x22f   : > { %v5486_v7 = vpop.permute.xlu1 %765  ;;  %v5488_v33 = vpop.permute.xlu0 %677 }
 0x231   : > { %2461 = vrot.lane.b32.xlu1 %v5456_v34, %s6366_s18  ;;  %2459 = vrot.lane.b32.xlu0 %v5442_v12, %s6366_s18 }
 0x233   : > { %v1122_v57 = vpop.permute.xlu1 %1121  ;;  %v1034_v22 = vpop.permute.xlu0 %1033 }
 0x234   : > { %v1464_v15 = vsel %vm1439_vm9, %v1433_v38, %v1122_v57  ;;  %v1341_v57 = vsel %vm1315_vm5, %v1310_v0, %v5437_v5 }
 0x235   : > { %v3490_v4 = vpop.f32.mrb[10].mxu0  ;;  %2507 = vrot.lane.b32.xlu0 %v5501_v3, %s3869_s29  ;;  %v1372_v49 = vsel %vm1346_vm6, %v1341_v57, %v5463_v42 }
 0x236   : > { %v1730_v39 = vadd.f32 %v3490_v4, %v5102_v9  ;;  %v1724_v41 = vpop.f32.mrb[11].mxu0 }
 0x237   : > { %v1725_v32 = vadd.f32 %v5102_v9, %v1724_v41  ;;  %v856_v17 = vpop.permute.xlu1 %855  ;;  %v5515_v10 = vpop.permute.xlu0 %767 }
 0x238   : > { %v1834_v58 = vmax.f32 %v1730_v39, 0.0  ;;  %v2090_v35 = vrot.slane %v1730_v39, 1  ;;  %v1403_v39 = vsel %vm1377_vm7, %v1372_v49, %v944_v6 }
 0x239   : > { %v1833_v27 = vmax.f32 %v1725_v32, 0.0  ;;  %v2088_v63 = vrot.slane %v1725_v32, 1  ;;  %v1434_v41 = vsel %vm6361_vm8, %v1403_v39, %v1034_v22  ;;  %v3763_v22 = vld [vmem:[%s3989_s30 + $0x110] sm:$0xff] }
 0x23a   : > { %v2034_v19 = vsel %vm1944_vm14, %v1834_v58, 0.0 }
 0x23b   : > { %v2175_v51 = vrot.slane %v2034_v19, 1  ;;  %v5523_v26 = vsel %vm5482_vm10, %v1833_v27, 0.0  ;;  %v1212_v20 = vpop.permute.xlu1 %1211  ;;  %v1124_v47 = vpop.permute.xlu0 %1123  ;;  %v5526_v48 = vsel %vm355_vm1, %v2088_v63, %v2090_v35  ;;  %v5538_v43 = vsel %vm355_vm1, %v2087_v36, %v2088_v63  ;;  %vm6384_vm10 = vmmov %vm6382_vm12 }
 0x23c   : > { %v1495_v31 = vsel %vm6382_vm12, %v1464_v15, %v1212_v20  ;;  %2509 = vrot.lane.b32.xlu1 %v5523_v26, %s3869_s29  ;;  %v2173_v21 = vrot.slane %v5523_v26, 1  ;;  %v2213_v28 = vrot.slane %v5523_v26, 2  ;;  %v2215_v8 = vrot.slane %v2034_v19, 2  ;;  %vm6386_vm14 = vmmov %vm6384_vm10 }
 0x23d   : > { %3509 = vmatprep.mubr.msk.f32.mxu0 %vm6383_vm11, %v1495_v31  ;;  %v1465_v32 = vsel %vm1439_vm9, %v1434_v41, %v1124_v47  ;;  %v1280_v35 = vsel %vm1253_vm3, %v3763_v22, %v5452_v29  ;;  %vm6387_vm12 = vmmov %vm6383_vm11  ;;  %v1857_v20 = vadd.s32 4, %v5180_v55 }
 0x23e   : > { %v5543_v2 = vsel %vm355_vm1, %v2172_v54, %v2173_v21  ;;  %v5546_v13 = vsel %vm355_vm1, %v2173_v21, %v2175_v51  ;;  %v5561_v5 = vsel %vm426_vm0, %v2212_v23, %v2213_v28  ;;  %v5571_v6 = vsel %vm426_vm0, %v2213_v28, %v2215_v8 }
 0x23f   : > { %2555 = vrot.lane.b32.xlu0 %v5543_v2, %s3870_s16  ;;  %v946_v18 = vpop.permute.xlu1 %945  ;;  %v858_v4 = vpop.permute.xlu0 %857  ;;  %vm1871_vm11 = vcmp.ge.s32.totalorder %v1857_v20, 1 }
 0x240   : > { %2557 = vrot.lane.b32.xlu1 %v5546_v13, %s3870_s16 }
 0x243   : > { %2603 = vrot.lane.b32.xlu0 %v5561_v5, %s6377_s20  ;;  %v948_v52 = vpop.permute.xlu1 %947  ;;  %v1214_v42 = vpop.permute.xlu0 %1213 }
 0x244   : > { %2271 = vrot.lane.b32.xlu1 %v5422_v16, %s6376_s17  ;;  %v1496_v58 = vsel %vm6384_vm10, %v1465_v32, %v1214_v42  ;;  %v1311_v16 = vsel %vm1284_vm4, %v1280_v35, %v5468_v1  ;;  %vm1881_vm10 = vcmp.lt.s32.totalorder %v1857_v20, 17 }
 0x245   : > { %3510 = vmatmul.mubr.msk.f32.gmra.mrb[24].mxu0 %vm6385_vm13, %v1496_v58  ;;  %v1342_v63 = vsel %vm1315_vm5, %v1311_v16, %v5486_v7  ;;  %vm6388_vm13 = vmmov %vm6386_vm14 }
 0x246   : > { %v1373_v38 = vsel %vm1346_vm6, %v1342_v63, %v856_v17  ;;  %v3764_v17 = vld [vmem:[%s3989_s30 + $0x120] sm:$0xff] }
 0x247   : > { %2605 = vrot.lane.b32.xlu0 %v5571_v6, %s6377_s20  ;;  %v1038_v62 = vpop.permute.xlu1 %1037  ;;  %v1036_v27 = vpop.permute.xlu0 %1035 }
 0x248   : > { %2273 = vrot.lane.b32.xlu1 %v5419_v14, %s6376_s17  ;;  %v1404_v14 = vsel %vm1377_vm7, %v1373_v38, %v946_v18 }
 0x249   : > { %v1435_v19 = vsel %vm6361_vm8, %v1404_v14, %v1036_v27 }
 0x24b   : > { %2319 = vrot.lane.b32.xlu0 %v5442_v12, %s6367_s19  ;;  %v5586_v36 = vpop.permute.xlu1 %589  ;;  %v1126_v29 = vpop.permute.xlu0 %1125 }
 0x24c   : > { %2321 = vrot.lane.b32.xlu1 %v5456_v34, %s6367_s19  ;;  %v1466_v1 = vsel %vm1439_vm9, %v1435_v19, %v1126_v29  ;;  %v1281_v34 = vsel %vm1253_vm3, %v3764_v17, %v5470_v60 }
 0x24d   : > { %v1312_v51 = vsel %vm1284_vm4, %v1281_v34, %v5488_v33  ;;  %v3766_v34 = vld [vmem:[%s3989_s30 + $0x130] sm:$0xff] }
 0x24e   : > { %v1343_v47 = vsel %vm1315_vm5, %v1312_v51, %v5515_v10 }
 0x24f   : > { %2367 = vrot.lane.b32.xlu0 %v5501_v3, %s3864_s9  ;;  %v1216_v7 = vpop.permute.xlu1 %1215  ;;  %v1128_v15 = vpop.permute.xlu0 %1127  ;;  %v1374_v21 = vsel %vm1346_vm6, %v1343_v47, %v858_v4 }
 0x250   : > { %v1497_v12 = vsel %vm6386_vm14, %v1466_v1, %v1216_v7  ;;  %2369 = vrot.lane.b32.xlu1 %v5523_v26, %s3864_s9  ;;  %v1405_v60 = vsel %vm1377_vm7, %v1374_v21, %v948_v52  ;;  %vm5621_vm14 = vmand %vm1871_vm11, %vm1881_vm10  ;;  %v3765_v1 = vld [vmem:[%s3989_s30 + $0x128] sm:$0xff] }
 0x251   : > { %3512 = vmatprep.mubr.msk.f32.mxu0 %vm6387_vm12, %v1497_v12  ;;  %v1436_v24 = vsel %vm6361_vm8, %v1405_v60, %v1038_v62  ;;  %vm1912_vm11 = vmand %vm5621_vm14, %vm1897_vm15  ;;  %v1282_v7 = vsel %vm1253_vm3, %v3765_v1, %v5586_v36 }
 0x252   : > { %v1467_v33 = vsel %vm1439_vm9, %v1436_v24, %v1128_v15  ;;  %vm1947_vm10 = vmand %vm5621_vm14, %vm1932_vm2 }
 0x253   : > { %2415 = vrot.lane.b32.xlu0 %v5543_v2, %s3867_s14  ;;  %v680_v31 = vpop.permute.xlu1 %679  ;;  %v592_v54 = vpop.permute.xlu0 %591 }
 0x254   : > { %2417 = vrot.lane.b32.xlu1 %v5546_v13, %s3867_s14  ;;  %v1283_v51 = vsel %vm1253_vm3, %v3766_v34, %v592_v54  ;;  %v1313_v20 = vsel %vm1284_vm4, %v1282_v7, %v680_v31 }
 0x257   : > { %2463 = vrot.lane.b32.xlu0 %v5561_v5, %s6366_s18  ;;  %v682_v10 = vpop.permute.xlu1 %681  ;;  %v1218_v46 = vpop.permute.xlu0 %1217 }
 0x258   : > { %2465 = vrot.lane.b32.xlu1 %v5571_v6, %s6366_s18  ;;  %v1498_v0 = vsel %vm6388_vm13, %v1467_v33, %v1218_v46  ;;  %v1314_v47 = vsel %vm1284_vm4, %v1283_v51, %v682_v10  ;;  %v1858_v51 = vadd.s32 5, %v5180_v55 }
 0x259   : > { %v3493_v28 = vpop.f32.mrb[12].mxu0  ;;  %3513 = vmatmul.mubr.msk.f32.gmra.mrb[26].mxu0 %vm6387_vm12, %v1498_v0  ;;  %vm6391_vm12 = vmmov %vm6388_vm13 }
 0x25a   : > { %v5627_v18 = vadd.f32 %v3493_v28, %v5102_v9  ;;  %v1734_v4 = vpop.f32.mrb[13].mxu0 }
 0x25b   : > { %v1735_v49 = vadd.f32 %v5102_v9, %v1734_v4  ;;  %v772_v23 = vpop.permute.xlu1 %771  ;;  %v770_v39 = vpop.permute.xlu0 %769 }
 0x25c   : > { %v1836_v41 = vmax.f32 %v5627_v18, 0.0  ;;  %v2093_v8 = vrot.slane %v5627_v18, 1  ;;  %v1345_v21 = vsel %vm1315_vm5, %v1314_v47, %v772_v23  ;;  %v1344_v60 = vsel %vm1315_vm5, %v1313_v20, %v770_v39 }
 0x25d   : > { %v1835_v32 = vmax.f32 %v1735_v49, 0.0  ;;  %v2092_v52 = vrot.slane %v1735_v49, 1 }
 0x25e   : > { %v5638_v42 = vsel %vm5621_vm14, %v1836_v41, 0.0  ;;  %vm1882_vm14 = vcmp.lt.s32.totalorder %v1858_v51, 17 }
 0x25f   : > { %v5640_v58 = vsel %vm1912_vm11, %v1835_v32, 0.0  ;;  %2513 = vrot.lane.b32.xlu1 %v5638_v42, %s3869_s29  ;;  %v862_v22 = vpop.permute.xlu1 %861  ;;  %v860_v35 = vpop.permute.xlu0 %859  ;;  %v2178_v62 = vrot.slane %v5638_v42, 1  ;;  %v5646_v27 = vsel %vm355_vm1, %v2092_v52, %v2093_v8  ;;  %v2218_v19 = vrot.slane %v5638_v42, 2 }
 0x260   : > { %2511 = vrot.lane.b32.xlu0 %v5640_v58, %s3869_s29  ;;  %v2177_v16 = vrot.slane %v5640_v58, 1  ;;  %v2217_v14 = vrot.slane %v5640_v58, 2  ;;  %v1376_v33 = vsel %vm1346_vm6, %v1345_v21, %v862_v22  ;;  %v1375_v46 = vsel %vm1346_vm6, %v1344_v60, %v860_v35 }
 0x261   : > { %vm6392_vm11 = vcmask 293888  }
 0x262   : > { %v5652_v63 = vsel %vm355_vm1, %v2177_v16, %v2178_v62  ;;  %v5662_v12 = vsel %vm426_vm0, %v2217_v14, %v2218_v19 }
 0x263   : > { %v952_v29 = vpop.permute.xlu1 %951  ;;  %v950_v38 = vpop.permute.xlu0 %949 }
 0x264   : > { %2559 = vrot.lane.b32.xlu0 %v5652_v63, %s3870_s16  ;;  %v1407_v0 = vsel %vm1377_vm7, %v1376_v33, %v952_v29  ;;  %v1406_v28 = vsel %vm1377_vm7, %v1375_v46, %v950_v38 }
 0x267   : > { %v1042_v15 = vpop.permute.xlu1 %1041  ;;  %v1040_v17 = vpop.permute.xlu0 %1039 }
 0x268   : > { %2607 = vrot.lane.b32.xlu0 %v5662_v12, %s6377_s20  ;;  %v1438_v54 = vsel %vm6361_vm8, %v1407_v0, %v1042_v15  ;;  %v1437_v31 = vsel %vm6361_vm8, %v1406_v28, %v1040_v17  ;;  %vm6393_vm8 = vmmov %vm6392_vm11 }
 0x26b   : > { %v1132_v36 = vpop.permute.xlu1 %1131  ;;  %v1130_v24 = vpop.permute.xlu0 %1129 }
 0x26c   : > { %v1469_v4 = vsel %vm1439_vm9, %v1438_v54, %v1132_v36  ;;  %v1468_v49 = vsel %vm1439_vm9, %v1437_v31, %v1130_v24 }
 0x26d   : > { %v3496_v18 = vpop.f32.mrb[14].mxu0 }
 0x26e   : > { %v1744_v10 = vpop.f32.mrb[15].mxu0  ;;  %v1750_v47 = vadd.f32 %v3496_v18, %v5102_v9 }
 0x26f   : > { %v1745_v23 = vadd.f32 %v5102_v9, %v1744_v10  ;;  %v1222_v39 = vpop.permute.xlu1 %1221  ;;  %v1220_v41 = vpop.permute.xlu0 %1219 }
 0x270   : > { %v1500_v32 = vsel %vm6388_vm13, %v1469_v4, %v1222_v39  ;;  %v1499_v52 = vsel %vm6391_vm12, %v1468_v49, %v1220_v41  ;;  %vm6396_vm12 = vcmask 195584  }
 0x271   : > { %v1837_v22 = vmax.f32 %v1745_v23, 0.0  ;;  %v2095_v35 = vrot.slane %v1745_v23, 1  ;;  %3515 = vmatprep.mubr.msk.f32.mxu0 %vm6392_vm11, %v1499_v52  ;;  %vm6397_vm11 = vcmask 261120  }
 0x272   : > { %3516 = vmatmul.mubr.msk.f32.gmra.mrb[28].mxu0 %vm6393_vm8, %v1500_v32  ;;  %vm1872_vm8 = vcmp.ge.s32.totalorder %v1858_v51, 1 }
 0x273   : > { %v2037_v16 = vsel %vm1947_vm10, %v1837_v22, 0.0  ;;  %v2266_v29 = vpop.permute.xlu1 %2265  ;;  %v2264_v38 = vpop.permute.xlu0 %2263  ;;  %v5690_v14 = vsel %vm355_vm1, %v2093_v8, %v2095_v35  ;;  %vm5716_vm10 = vmand %vm1872_vm8, %vm1882_vm14  ;;  %vm6398_vm8 = vcmask 293888  }
 0x274   : > { %v2180_v1 = vrot.slane %v2037_v16, 1  ;;  %v2220_v7 = vrot.slane %v2037_v16, 2  ;;  %vm1915_vm13 = vmand %vm5716_vm10, %vm1897_vm15  ;;  %v2647_v36 = vsel %vm1253_vm3, %v5256_v44, %v2264_v38  ;;  %v2648_v54 = vsel %vm1253_vm3, %v5254_v40, %v2266_v29 }
 0x275   : > { %vm6399_vm14 = vmmov %vm6396_vm12 }
 0x276   : > { %v5693_v57 = vsel %vm355_vm1, %v2178_v62, %v2180_v1  ;;  %v5696_v15 = vsel %vm426_vm0, %v2218_v19, %v2220_v7 }
 0x277   : > { %2561 = vrot.lane.b32.xlu1 %v5693_v57, %s3870_s16  ;;  %2609 = vrot.lane.b32.xlu0 %v5696_v15, %s6377_s20  ;;  %v2314_v17 = vpop.permute.xlu1 %2313  ;;  %v2312_v34 = vpop.permute.xlu0 %2311 }
 0x278   : > { %v2663_v33 = vsel %vm1284_vm4, %v2647_v36, %v2312_v34  ;;  %v2664_v31 = vsel %vm1284_vm4, %v2648_v54, %v2314_v17 }
 0x27b   : > { %2275 = vrot.lane.b32.xlu1 %v5543_v2, %s6376_s17  ;;  %2323 = vrot.lane.b32.xlu0 %v5561_v5, %s6367_s19  ;;  %v2362_v8 = vpop.permute.xlu1 %2361  ;;  %v2360_v62 = vpop.permute.xlu0 %2359 }
 0x27c   : > { %v2679_v46 = vsel %vm1315_vm5, %v2663_v33, %v2360_v62  ;;  %v2680_v4 = vsel %vm1315_vm5, %v2664_v31, %v2362_v8 }
 0x27f   : > { %2277 = vrot.lane.b32.xlu1 %v5546_v13, %s6376_s17  ;;  %2371 = vrot.lane.b32.xlu0 %v5640_v58, %s3864_s9  ;;  %v2410_v19 = vpop.permute.xlu1 %2409  ;;  %v2408_v20 = vpop.permute.xlu0 %2407  ;;  %v1838_v13 = vmax.f32 %v1750_v47, 0.0 }
 0x280   : > { %v2695_v18 = vsel %vm1346_vm6, %v2679_v46, %v2408_v20  ;;  %v2696_v41 = vsel %vm1346_vm6, %v2680_v4, %v2410_v19 }
 0x281   : > { %v5730_v24 = vsel %vm1915_vm13, %v1838_v13, 0.0  ;;  %vm6400_vm13 = vmmov %vm6397_vm11 }
 0x282   : > { %v2182_v36 = vrot.slane %v5730_v24, 1 }
 0x283   : > { %2325 = vrot.lane.b32.xlu1 %v5571_v6, %s6367_s19  ;;  %2419 = vrot.lane.b32.xlu0 %v5652_v63, %s3867_s14  ;;  %v2458_v2 = vpop.permute.xlu1 %2457  ;;  %v2456_v5 = vpop.permute.xlu0 %2455 }
 0x284   : > { %v2711_v44 = vsel %vm1377_vm7, %v2695_v18, %v2456_v5  ;;  %v2712_v40 = vsel %vm1377_vm7, %v2696_v41, %v2458_v2  ;;  %v2097_v5 = vrot.slane %v1750_v47, 1  ;;  %v2222_v18 = vrot.slane %v5730_v24, 2 }
 0x287   : > { %2373 = vrot.lane.b32.xlu1 %v5638_v42, %s3864_s9  ;;  %2467 = vrot.lane.b32.xlu0 %v5662_v12, %s6366_s18  ;;  %v2506_v6 = vpop.permute.xlu1 %2505  ;;  %v2504_v60 = vpop.permute.xlu0 %2503 }
 0x288   : > { %v2727_v10 = vsel %vm6396_vm12, %v2711_v44, %v2504_v60  ;;  %v2728_v52 = vsel %vm6399_vm14, %v2712_v40, %v2506_v6  ;;  %vm6401_vm12 = vmmov %vm6398_vm8 }
 0x28b   : > { %2421 = vrot.lane.b32.xlu1 %v5693_v57, %s3867_s14  ;;  %2515 = vrot.lane.b32.xlu0 %v5730_v24, %s3869_s29  ;;  %v2554_v0 = vpop.permute.xlu1 %2553  ;;  %v2552_v28 = vpop.permute.xlu0 %2551 }
 0x28c   : > { %v2743_v49 = vsel %vm1439_vm9, %v2727_v10, %v2552_v28  ;;  %v2744_v22 = vsel %vm1439_vm9, %v2728_v52, %v2554_v0 }
 0x28f   : > { %2469 = vrot.lane.b32.xlu1 %v5696_v15, %s6366_s18  ;;  %v2268_v23 = vpop.permute.xlu1 %2267  ;;  %v2600_v39 = vpop.permute.xlu0 %2599 }
 0x290   : > { %v2759_v32 = vsel %vm6397_vm11, %v2743_v49, %v2600_v39  ;;  %vm1950_vm11 = vmand %vm5716_vm10, %vm1932_vm2 }
 0x291   : > { %3528 = vmatprep.mubr.msk.f32.mxu1 %vm6398_vm8, %v2759_v32  ;;  %vm6403_vm8 = vmmov %vm6400_vm13 }
 0x293   : > { %v2602_v35 = vpop.permute.xlu0 %2601  ;;  %v2270_v16 = vpop.permute.xlu1 %2269 }
 0x294   : > { %v2760_v29 = vsel %vm6400_vm13, %v2744_v22, %v2602_v35  ;;  %v2650_v22 = vsel %vm1253_vm3, %v5313_v53, %v2270_v16 }
 0x295   : > { %v3499_v38 = vpop.f32.mrb[16].mxu0  ;;  %3529 = vmatmul.mubr.msk.f32.vlgmr.msra.gmra.mrb[0].mxu1 %vm6401_vm12, %v2760_v29 }
 0x296   : > { %v1760_v1 = vadd.f32 %v3499_v38, %v5102_v9  ;;  %v1754_v7 = vpop.f32.mrb[17].mxu0 }
 0x297   : > { %v1755_v17 = vadd.f32 %v5102_v9, %v1754_v7  ;;  %v2316_v34 = vpop.permute.xlu0 %2315  ;;  %v2318_v2 = vpop.permute.xlu1 %2317 }
 0x298   : > { %v1840_v8 = vmax.f32 %v1760_v1, 0.0  ;;  %v2100_v62 = vrot.slane %v1760_v1, 1 }
 0x299   : > { %v1839_v51 = vmax.f32 %v1755_v17, 0.0  ;;  %v2098_v19 = vrot.slane %v1755_v17, 1 }
 0x29a   : > { %v2040_v20 = vsel %vm1950_vm11, %v1840_v8, 0.0 }
 0x29b   : > { %v2185_v13 = vrot.slane %v2040_v20, 1  ;;  %v5764_v6 = vsel %vm5716_vm10, %v1839_v51, 0.0  ;;  %v2364_v60 = vpop.permute.xlu0 %2363  ;;  %v5771_v33 = vsel %vm355_vm1, %v2098_v19, %v2100_v62  ;;  %v5774_v46 = vsel %vm355_vm1, %v2097_v5, %v2098_v19  ;;  %v2366_v28 = vpop.permute.xlu1 %2365  ;;  %vm6402_vm10 = vmmov %vm6399_vm14 }
 0x29c   : > { %2517 = vrot.lane.b32.xlu1 %v5764_v6, %s3869_s29  ;;  %v2183_v9 = vrot.slane %v5764_v6, 1  ;;  %v2223_v0 = vrot.slane %v5764_v6, 2  ;;  %v2225_v44 = vrot.slane %v2040_v20, 2  ;;  %vm6404_vm11 = vmmov %vm6402_vm10  ;;  %v5844_v20 = vld [vmem:[%s6345_s2] ss:$0 sm:$0xff] }
 0x29e   : > { %v5777_v47 = vsel %vm355_vm1, %v2182_v36, %v2183_v9  ;;  %v5780_v21 = vsel %vm355_vm1, %v2183_v9, %v2185_v13  ;;  %v5789_v31 = vsel %vm426_vm0, %v2222_v18, %v2223_v0  ;;  %v5796_v4 = vsel %vm426_vm0, %v2223_v0, %v2225_v44 }
 0x29f   : > { %2563 = vrot.lane.b32.xlu0 %v5777_v47, %s3870_s16  ;;  %v2412_v54 = vpop.permute.xlu0 %2411  ;;  %v2414_v10 = vpop.permute.xlu1 %2413 }
 0x2a0   : > { %2565 = vrot.lane.b32.xlu1 %v5780_v21, %s3870_s16 }
 0x2a3   : > { %2611 = vrot.lane.b32.xlu0 %v5789_v31, %s6377_s20  ;;  %v2460_v49 = vpop.permute.xlu0 %2459  ;;  %v2462_v39 = vpop.permute.xlu1 %2461 }
 0x2a4   : > { %2279 = vrot.lane.b32.xlu1 %v5652_v63, %s6376_s17  ;;  %v2649_v63 = vsel %vm1253_vm3, %v5319_v50, %v2268_v23  ;;  %v2666_v23 = vsel %vm1284_vm4, %v2650_v22, %v2318_v2 }
 0x2a5   : > { %v2665_v32 = vsel %vm1284_vm4, %v2649_v63, %v2316_v34  ;;  %v2682_v29 = vsel %vm1315_vm5, %v2666_v23, %v2366_v28 }
 0x2a6   : > { %v2698_v7 = vsel %vm1346_vm6, %v2682_v29, %v2414_v10 }
 0x2a7   : > { %2613 = vrot.lane.b32.xlu0 %v5796_v4, %s6377_s20  ;;  %v2508_v41 = vpop.permute.xlu0 %2507  ;;  %v2714_v17 = vsel %vm1377_vm7, %v2698_v7, %v2462_v39 }
 0x2a8   : > { %2281 = vrot.lane.b32.xlu1 %v5693_v57, %s6376_s17  ;;  %v2681_v57 = vsel %vm1315_vm5, %v2665_v32, %v2364_v60 }
 0x2a9   : > { %v2697_v52 = vsel %vm1346_vm6, %v2681_v57, %v2412_v54 }
 0x2aa   : > { %v2713_v50 = vsel %vm1377_vm7, %v2697_v52, %v2460_v49 }
 0x2ab   : > { %2327 = vrot.lane.b32.xlu0 %v5662_v12, %s6367_s19  ;;  %v2729_v35 = vsel %vm6402_vm10, %v2713_v50, %v2508_v41 }
 0x2ac   : > { %2329 = vrot.lane.b32.xlu1 %v5696_v15, %s6367_s19  ;;  %v1859_v15 = vadd.s32 6, %v5180_v55 }
 0x2ae   : > { %v2510_v40 = vpop.permute.xlu1 %2509  ;;  %vm1873_vm14 = vcmp.ge.s32.totalorder %v1859_v15, 1  ;;  %vm1883_vm13 = vcmp.lt.s32.totalorder %v1859_v15, 17 }
 0x2af   : > { %2375 = vrot.lane.b32.xlu0 %v5730_v24, %s3864_s9  ;;  %v2730_v34 = vsel %vm6404_vm11, %v2714_v17, %v2510_v40  ;;  %vm5837_vm10 = vmand %vm1873_vm14, %vm1883_vm13 }
 0x2b0   : > { %2377 = vrot.lane.b32.xlu1 %v5764_v6, %s3864_s9  ;;  %vm1918_vm14 = vmand %vm5837_vm10, %vm1897_vm15 }
 0x2b1   : > { %v2556_v12 = vpop.permute.xlu0 %2555  ;;  %vm1953_vm13 = vmand %vm5837_vm10, %vm1932_vm2 }
 0x2b2   : > { %v2745_v38 = vsel %vm1439_vm9, %v2729_v35, %v2556_v12  ;;  %v2558_v53 = vpop.permute.xlu1 %2557 }
 0x2b3   : > { %2423 = vrot.lane.b32.xlu0 %v5777_v47, %s3867_s14  ;;  %v2746_v8 = vsel %vm1439_vm9, %v2730_v34, %v2558_v53 }
 0x2b4   : > { %2425 = vrot.lane.b32.xlu1 %v5780_v21, %s3867_s14 }
 0x2b5   : > { %v2604_v1 = vpop.permute.xlu0 %2603 }
 0x2b6   : > { %v2761_v16 = vsel %vm6403_vm8, %v2745_v38, %v2604_v1  ;;  %v2272_v32 = vpop.permute.xlu1 %2271 }
 0x2b7   : > { %2471 = vrot.lane.b32.xlu0 %v5789_v31, %s6366_s18  ;;  %3531 = vmatprep.mubr.msk.f32.mxu1 %vm6401_vm12, %v2761_v16  ;;  %v2651_v16 = vsel %vm1253_vm3, %v5381_v11, %v2272_v32 }
 0x2b8   : > { %2473 = vrot.lane.b32.xlu1 %v5796_v4, %s6366_s18 }
 0x2b9   : > { %v3502_v62 = vpop.f32.mrb[18].mxu0  ;;  %v2606_v19 = vpop.permute.xlu0 %2605 }
 0x2ba   : > { %v1770_v2 = vadd.f32 %v5844_v20, %v3502_v62  ;;  %v2762_v5 = vsel %vm6403_vm8, %v2746_v8, %v2606_v19  ;;  %v1764_v13 = vpop.f32.mrb[19].mxu0  ;;  %v2274_v15 = vpop.permute.xlu1 %2273 }
 0x2bb   : > { %v1765_v60 = vadd.f32 %v5844_v20, %v1764_v13  ;;  %3532 = vmatmul.mubr.msk.f32.gmra.mrb[2].mxu1 %vm6401_vm12, %v2762_v5 }
 0x2bc   : > { %v1842_v36 = vmax.f32 %v1770_v2, 0.0  ;;  %v2103_v9 = vrot.slane %v1770_v2, 1 }
 0x2bd   : > { %v1841_v0 = vmax.f32 %v1765_v60, 0.0  ;;  %v2102_v28 = vrot.slane %v1765_v60, 1  ;;  %v2320_v18 = vpop.permute.xlu0 %2319 }
 0x2be   : > { %v5856_v54 = vsel %vm5837_vm10, %v1842_v36, 0.0  ;;  %v2322_v35 = vpop.permute.xlu1 %2321  ;;  %v2667_v62 = vsel %vm1284_vm4, %v2651_v16, %v2320_v18  ;;  %vm6407_vm10 = vmmov %vm6403_vm8 }
 0x2bf   : > { %v5858_v44 = vsel %vm1918_vm14, %v1841_v0, 0.0  ;;  %2521 = vrot.lane.b32.xlu1 %v5856_v54, %s3869_s29  ;;  %v2188_v10 = vrot.slane %v5856_v54, 1  ;;  %v5867_v39 = vsel %vm355_vm1, %v2102_v28, %v2103_v9  ;;  %v2228_v57 = vrot.slane %v5856_v54, 2  ;;  %vm6408_vm8 = vmmov %vm6401_vm12 }
 0x2c0   : > { %2519 = vrot.lane.b32.xlu0 %v5858_v44, %s3869_s29  ;;  %v2187_v49 = vrot.slane %v5858_v44, 1  ;;  %v2227_v40 = vrot.slane %v5858_v44, 2 }
 0x2c1   : > { %v2368_v41 = vpop.permute.xlu0 %2367 }
 0x2c2   : > { %v5870_v63 = vsel %vm355_vm1, %v2187_v49, %v2188_v10  ;;  %v5877_v12 = vsel %vm426_vm0, %v2227_v40, %v2228_v57  ;;  %v2370_v19 = vpop.permute.xlu1 %2369  ;;  %v2683_v2 = vsel %vm1315_vm5, %v2667_v62, %v2368_v41 }
 0x2c4   : > { %2567 = vrot.lane.b32.xlu0 %v5870_v63, %s3870_s16 }
 0x2c5   : > { %v2416_v52 = vpop.permute.xlu0 %2415 }
 0x2c6   : > { %v2699_v60 = vsel %vm1346_vm6, %v2683_v2, %v2416_v52  ;;  %v2418_v28 = vpop.permute.xlu1 %2417 }
 0x2c8   : > { %2615 = vrot.lane.b32.xlu0 %v5877_v12, %s6377_s20 }
 0x2c9   : > { %v2464_v50 = vpop.permute.xlu0 %2463 }
 0x2ca   : > { %v2715_v11 = vsel %vm1377_vm7, %v2699_v60, %v2464_v50  ;;  %v2466_v49 = vpop.permute.xlu1 %2465 }
 0x2cd   : > { %v3505_v22 = vpop.f32.mrb[20].mxu0 }
 0x2ce   : > { %v1774_v23 = vpop.f32.mrb[21].mxu0  ;;  %v1780_v41 = vadd.f32 %v5844_v20, %v3505_v22 }
 0x2cf   : > { %v1775_v29 = vadd.f32 %v5844_v20, %v1774_v23 }
 0x2d1   : > { %v1843_v38 = vmax.f32 %v1775_v29, 0.0  ;;  %v2105_v1 = vrot.slane %v1775_v29, 1  ;;  %v2514_v32 = vpop.permute.xlu1 %2513 }
 0x2d2   : > { %v2512_v7 = vpop.permute.xlu0 %2511 }
 0x2d3   : > { %v2043_v53 = vsel %vm1953_vm13, %v1843_v38, 0.0  ;;  %v5889_v8 = vsel %vm355_vm1, %v2103_v9, %v2105_v1  ;;  %v2731_v36 = vsel %vm6404_vm11, %v2715_v11, %v2512_v7 }
 0x2d4   : > { %v2190_v17 = vrot.slane %v2043_v53, 1  ;;  %v2230_v34 = vrot.slane %v2043_v53, 2 }
 0x2d6   : > { %v2560_v5 = vpop.permute.xlu0 %2559  ;;  %v5894_v51 = vsel %vm355_vm1, %v2188_v10, %v2190_v17  ;;  %v5897_v13 = vsel %vm426_vm0, %v2228_v57, %v2230_v34  ;;  %v1860_v10 = vadd.s32 7, %v5180_v55  ;;  %v1844_v57 = vmax.f32 %v1780_v41, 0.0 }
 0x2d7   : > { %2569 = vrot.lane.b32.xlu1 %v5894_v51, %s3870_s16  ;;  %2617 = vrot.lane.b32.xlu0 %v5897_v13, %s6377_s20  ;;  %v2747_v9 = vsel %vm1439_vm9, %v2731_v36, %v2560_v5  ;;  %v2107_v5 = vrot.slane %v1780_v41, 1 }
 0x2d8   : > { %vm1874_vm12 = vcmp.ge.s32.totalorder %v1860_v10, 1  ;;  %vm1884_vm14 = vcmp.lt.s32.totalorder %v1860_v10, 17 }
 0x2d9   : > { %vm5925_vm13 = vmand %vm1874_vm12, %vm1884_vm14  ;;  %vm6413_vm12 = vcmask 293888  }
 0x2da   : > { %v2608_v0 = vpop.permute.xlu0 %2607  ;;  %vm1921_vm11 = vmand %vm5925_vm13, %vm1897_vm15 }
 0x2db   : > { %v2763_v18 = vsel %vm6407_vm10, %v2747_v9, %v2608_v0  ;;  %2283 = vrot.lane.b32.xlu1 %v5777_v47, %s6376_s17  ;;  %2331 = vrot.lane.b32.xlu0 %v5789_v31, %s6367_s19  ;;  %v2652_v47 = vsel %vm1253_vm3, %v5379_v59, %v2274_v15  ;;  %vm6411_vm10 = vcmask 195584   ;;  %v5942_v50 = vsel %vm1921_vm11, %v1844_v57, 0.0  ;;  %vm1956_vm14 = vmand %vm5925_vm13, %vm1932_vm2 }
 0x2dc   : > { %3534 = vmatprep.mubr.msk.f32.mxu1 %vm6408_vm8, %v2763_v18  ;;  %vm6412_vm8 = vcmask 261120  }
 0x2df   : > { %2285 = vrot.lane.b32.xlu1 %v5780_v21, %s6376_s17  ;;  %2379 = vrot.lane.b32.xlu0 %v5858_v44, %s3864_s9  ;;  %v2668_v21 = vsel %vm1284_vm4, %v2652_v47, %v2322_v35 }
 0x2e0   : > { %v2684_v40 = vsel %vm1315_vm5, %v2668_v21, %v2370_v19 }
 0x2e1   : > { %v2700_v52 = vsel %vm1346_vm6, %v2684_v40, %v2418_v28  ;;  %v2192_v28 = vrot.slane %v5942_v50, 1 }
 0x2e2   : > { %v2716_v59 = vsel %vm1377_vm7, %v2700_v52, %v2466_v49 }
 0x2e3   : > { %2333 = vrot.lane.b32.xlu1 %v5796_v4, %s6367_s19  ;;  %2427 = vrot.lane.b32.xlu0 %v5870_v63, %s3867_s14  ;;  %v2732_v4 = vsel %vm6411_vm10, %v2716_v59, %v2514_v32  ;;  %v2232_v32 = vrot.slane %v5942_v50, 2 }
 0x2e7   : > { %2381 = vrot.lane.b32.xlu1 %v5856_v54, %s3864_s9  ;;  %2475 = vrot.lane.b32.xlu0 %v5877_v12, %s6366_s18 }
 0x2e9   : > { %v2562_v15 = vpop.permute.xlu1 %2561  ;;  %v2610_v22 = vpop.permute.xlu0 %2609 }
 0x2ea   : > { %v2748_v23 = vsel %vm1439_vm9, %v2732_v4, %v2562_v15 }
 0x2eb   : > { %v2764_v35 = vsel %vm6412_vm8, %v2748_v23, %v2610_v22  ;;  %2429 = vrot.lane.b32.xlu1 %v5894_v51, %s3867_s14  ;;  %2523 = vrot.lane.b32.xlu0 %v5942_v50, %s3869_s29 }
 0x2ec   : > { %3535 = vmatmul.mubr.msk.f32.gmra.mrb[4].mxu1 %vm6413_vm12, %v2764_v35 }
 0x2ed   : > { %v2276_v29 = vpop.permute.xlu1 %2275  ;;  %v2324_v1 = vpop.permute.xlu0 %2323 }
 0x2ef   : > { %2477 = vrot.lane.b32.xlu1 %v5897_v13, %s6366_s18 }
 0x2f1   : > { %v2278_v38 = vpop.permute.xlu1 %2277  ;;  %v2372_v36 = vpop.permute.xlu0 %2371 }
 0x2f5   : > { %v3508_v7 = vpop.f32.mrb[22].mxu0  ;;  %v2326_v60 = vpop.permute.xlu1 %2325 }
 0x2f6   : > { %v1790_v53 = vadd.f32 %v5844_v20, %v3508_v7  ;;  %v1784_v16 = vpop.f32.mrb[23].mxu0  ;;  %v2420_v40 = vpop.permute.xlu0 %2419 }
 0x2f7   : > { %v1785_v17 = vadd.f32 %v5844_v20, %v1784_v16 }
 0x2f8   : > { %v1846_v34 = vmax.f32 %v1790_v53, 0.0  ;;  %v2110_v62 = vrot.slane %v1790_v53, 1  ;;  %v1861_v53 = vadd.s32 8, %v5180_v55 }
 0x2f9   : > { %v1845_v19 = vmax.f32 %v1785_v17, 0.0  ;;  %v2108_v2 = vrot.slane %v1785_v17, 1  ;;  %v2374_v21 = vpop.permute.xlu1 %2373 }
 0x2fa   : > { %v2046_v11 = vsel %vm1956_vm14, %v1846_v34, 0.0  ;;  %v2468_v15 = vpop.permute.xlu0 %2467  ;;  %vm1875_vm11 = vcmp.ge.s32.totalorder %v1861_v53, 1 }
 0x2fb   : > { %v2195_v9 = vrot.slane %v2046_v11, 1  ;;  %v5961_v0 = vsel %vm5925_vm13, %v1845_v19, 0.0  ;;  %v5968_v10 = vsel %vm355_vm1, %v2108_v2, %v2110_v62  ;;  %v5971_v49 = vsel %vm355_vm1, %v2107_v5, %v2108_v2  ;;  %vm6414_vm13 = vmmov %vm6411_vm10 }
 0x2fc   : > { %2525 = vrot.lane.b32.xlu1 %v5961_v0, %s3869_s29  ;;  %v2193_v18 = vrot.slane %v5961_v0, 1  ;;  %v2233_v31 = vrot.slane %v5961_v0, 2  ;;  %v2235_v57 = vrot.slane %v2046_v11, 2  ;;  %vm1885_vm10 = vcmp.lt.s32.totalorder %v1861_v53, 17  ;;  %vm6415_vm14 = vmmov %vm6414_vm13 }
 0x2fd   : > { %v2422_v59 = vpop.permute.xlu1 %2421 }
 0x2fe   : > { %v5974_v41 = vsel %vm355_vm1, %v2192_v28, %v2193_v18  ;;  %v5977_v47 = vsel %vm355_vm1, %v2193_v18, %v2195_v9  ;;  %v5986_v52 = vsel %vm426_vm0, %v2232_v32, %v2233_v31  ;;  %v5993_v4 = vsel %vm426_vm0, %v2233_v31, %v2235_v57  ;;  %v2516_v23 = vpop.permute.xlu0 %2515 }
 0x2ff   : > { %2571 = vrot.lane.b32.xlu0 %v5974_v41, %s3870_s16 }
 0x300   : > { %2573 = vrot.lane.b32.xlu1 %v5977_v47, %s3870_s16 }
 0x301   : > { %v2470_v22 = vpop.permute.xlu1 %2469 }
 0x303   : > { %2619 = vrot.lane.b32.xlu0 %v5986_v52, %s6377_s20 }
 0x304   : > { %2287 = vrot.lane.b32.xlu1 %v5870_v63, %s6376_s17  ;;  %v2653_v63 = vsel %vm1253_vm3, %v5501_v3, %v2276_v29  ;;  %v2654_v3 = vsel %vm1253_vm3, %v5523_v26, %v2278_v38 }
 0x305   : > { %v2669_v35 = vsel %vm1284_vm4, %v2653_v63, %v2324_v1  ;;  %v2670_v1 = vsel %vm1284_vm4, %v2654_v3, %v2326_v60 }
 0x306   : > { %v2686_v17 = vsel %vm1315_vm5, %v2670_v1, %v2374_v21 }
 0x307   : > { %2621 = vrot.lane.b32.xlu0 %v5993_v4, %s6377_s20  ;;  %v2702_v26 = vsel %vm1346_vm6, %v2686_v17, %v2422_v59 }
 0x308   : > { %2289 = vrot.lane.b32.xlu1 %v5894_v51, %s6376_s17  ;;  %v2685_v51 = vsel %vm1315_vm5, %v2669_v35, %v2372_v36  ;;  %v2718_v2 = vsel %vm1377_vm7, %v2702_v26, %v2470_v22 }
 0x30b   : > { %2335 = vrot.lane.b32.xlu0 %v5877_v12, %s6367_s19 }
 0x30c   : > { %2337 = vrot.lane.b32.xlu1 %v5897_v13, %s6367_s19  ;;  %v2701_v13 = vsel %vm1346_vm6, %v2685_v51, %v2420_v40 }
 0x30d   : > { %v2717_v29 = vsel %vm1377_vm7, %v2701_v13, %v2468_v15 }
 0x30e   : > { %v2518_v7 = vpop.permute.xlu1 %2517  ;;  %v2733_v16 = vsel %vm6414_vm13, %v2717_v29, %v2516_v23  ;;  %vm6033_vm13 = vmand %vm1875_vm11, %vm1885_vm10 }
 0x30f   : > { %2383 = vrot.lane.b32.xlu0 %v5942_v50, %s3864_s9  ;;  %v2734_v5 = vsel %vm6415_vm14, %v2718_v2, %v2518_v7  ;;  %vm1924_vm11 = vmand %vm6033_vm13, %vm1897_vm15 }
 0x310   : > { %2385 = vrot.lane.b32.xlu1 %v5961_v0, %s3864_s9  ;;  %vm1959_vm10 = vmand %vm6033_vm13, %vm1932_vm2 }
 0x311   : > { %v2564_v12 = vpop.permute.xlu0 %2563 }
 0x312   : > { %v2749_v34 = vsel %vm1439_vm9, %v2733_v16, %v2564_v12  ;;  %v2566_v38 = vpop.permute.xlu1 %2565 }
 0x313   : > { %2431 = vrot.lane.b32.xlu0 %v5974_v41, %s3867_s14  ;;  %v2750_v36 = vsel %vm1439_vm9, %v2734_v5, %v2566_v38 }
 0x314   : > { %2433 = vrot.lane.b32.xlu1 %v5977_v47, %s3867_s14 }
 0x315   : > { %v2612_v62 = vpop.permute.xlu0 %2611 }
 0x316   : > { %v2765_v19 = vsel %vm6412_vm8, %v2749_v34, %v2612_v62  ;;  %v2280_v29 = vpop.permute.xlu1 %2279 }
 0x317   : > { %2479 = vrot.lane.b32.xlu0 %v5986_v52, %s6366_s18  ;;  %3537 = vmatprep.mubr.msk.f32.mxu1 %vm6413_vm12, %v2765_v19 }
 0x318   : > { %2481 = vrot.lane.b32.xlu1 %v5993_v4, %s6366_s18  ;;  %v3511_v60 = vpop.f32.mrb[24].mxu0 }
 0x319   : > { %v1800_v9 = vadd.f32 %v5844_v20, %v3511_v60  ;;  %v2614_v28 = vpop.permute.xlu0 %2613  ;;  %v1794_v18 = vpop.f32.mrb[25].mxu0 }
 0x31a   : > { %v2766_v31 = vsel %vm6412_vm8, %v2750_v36, %v2614_v28  ;;  %v1795_v21 = vadd.f32 %v5844_v20, %v1794_v18  ;;  %v2282_v16 = vpop.permute.xlu1 %2281  ;;  %v2655_v18 = vsel %vm1253_vm3, %v5640_v58, %v2280_v29 }
 0x31b   : > { %v1848_v32 = vmax.f32 %v1800_v9, 0.0  ;;  %v2113_v40 = vrot.slane %v1800_v9, 1  ;;  %3538 = vmatmul.mubr.msk.f32.gmra.mrb[6].mxu1 %vm6413_vm12, %v2766_v31 }
 0x31c   : > { %v1847_v57 = vmax.f32 %v1795_v21, 0.0  ;;  %v2112_v59 = vrot.slane %v1795_v21, 1 }
 0x31d   : > { %v2328_v15 = vpop.permute.xlu0 %2327  ;;  %v6048_v22 = vsel %vm6033_vm13, %v1848_v32, 0.0  ;;  %vm6418_vm13 = vmmov %vm6412_vm8 }
 0x31e   : > { %2529 = vrot.lane.b32.xlu1 %v6048_v22, %s3869_s29  ;;  %v2241_v63 = vrot.slane %v6048_v22, 1  ;;  %v2246_v23 = vrot.slane %v6048_v22, 2  ;;  %v2047_v35 = vsel %vm1924_vm11, %v1847_v57, 0.0  ;;  %v6056_v12 = vsel %vm355_vm1, %v2112_v59, %v2113_v40  ;;  %v2330_v38 = vpop.permute.xlu1 %2329  ;;  %vm6419_vm8 = vmmov %vm6413_vm12 }
 0x31f   : > { %v2240_v7 = vrot.slane %v2047_v35, 1  ;;  %v2245_v51 = vrot.slane %v2047_v35, 2  ;;  %2527 = vrot.lane.b32.xlu0 %v2047_v35, %s3869_s29  ;;  %v2671_v31 = vsel %vm1284_vm4, %v2655_v18, %v2328_v15 }
 0x321   : > { %v2242_v53 = vsel %vm355_vm1, %v2240_v7, %v2241_v63  ;;  %v2247_v13 = vsel %vm426_vm0, %v2245_v51, %v2246_v23  ;;  %v2376_v3 = vpop.permute.xlu0 %2375 }
 0x322   : > { %v2378_v21 = vpop.permute.xlu1 %2377  ;;  %v2687_v57 = vsel %vm1315_vm5, %v2671_v31, %v2376_v3  ;;  %v1862_v3 = vadd.s32 9, %v5180_v55  ;;  %v2656_v55 = vsel %vm1253_vm3, %v5638_v42, %v2282_v16 }
 0x323   : > { %2575 = vrot.lane.b32.xlu0 %v2242_v53, %s3870_s16 }
 0x324   : > { %vm1876_vm12 = vcmp.ge.s32.totalorder %v1862_v3, 1  ;;  %vm1886_vm11 = vcmp.lt.s32.totalorder %v1862_v3, 17 }
 0x325   : > { %v2424_v1 = vpop.permute.xlu0 %2423 }
 0x327   : > { %2623 = vrot.lane.b32.xlu0 %v2247_v13, %s6377_s20 }
 0x329   : > { %v2472_v62 = vpop.permute.xlu0 %2471 }
 0x32c   : > { %v3514_v17 = vpop.f32.mrb[26].mxu0 }
 0x32d   : > { %v1804_v34 = vpop.f32.mrb[27].mxu0 }
 0x32e   : > { %v1805_v26 = vadd.f32 %v5844_v20, %v1804_v34 }
 0x330   : > { %v1849_v19 = vmax.f32 %v1805_v26, 0.0  ;;  %v2115_v2 = vrot.slane %v1805_v26, 1 }
 0x332   : > { %v2049_v5 = vsel %vm1959_vm10, %v1849_v19, 0.0  ;;  %v2520_v60 = vpop.permute.xlu0 %2519  ;;  %v6068_v28 = vsel %vm355_vm1, %v2113_v40, %v2115_v2  ;;  %v2703_v40 = vsel %vm1346_vm6, %v2687_v57, %v2424_v1  ;;  %vm6096_vm10 = vmand %vm1876_vm12, %vm1886_vm11 }
 0x333   : > { %v2243_v36 = vrot.slane %v2049_v5, 1  ;;  %v2248_v9 = vrot.slane %v2049_v5, 2  ;;  %v2719_v7 = vsel %vm1377_vm7, %v2703_v40, %v2472_v62  ;;  %vm6426_vm12 = vmmov %vm6419_vm8 }
 0x334   : > { %v2735_v58 = vsel %vm6415_vm14, %v2719_v7, %v2520_v60  ;;  %vm1927_vm14 = vmand %vm6096_vm10, %vm1897_vm15  ;;  %vm6422_vm15 = vcmask 195584  }
 0x335   : > { %v2244_v32 = vsel %vm355_vm1, %v2241_v63, %v2243_v36  ;;  %v2249_v11 = vsel %vm426_vm0, %v2246_v23, %v2248_v9  ;;  %v2426_v63 = vpop.permute.xlu1 %2425 }
 0x336   : > { %v2568_v59 = vpop.permute.xlu0 %2567  ;;  %2577 = vrot.lane.b32.xlu1 %v2244_v32, %s3870_s16  ;;  %2625 = vrot.lane.b32.xlu0 %v2249_v11, %s6377_s20 }
 0x337   : > { %v2751_v15 = vsel %vm1439_vm9, %v2735_v58, %v2568_v59 }
 0x339   : > { %v2474_v29 = vpop.permute.xlu1 %2473 }
 0x33a   : > { %v2616_v51 = vpop.permute.xlu0 %2615  ;;  %2291 = vrot.lane.b32.xlu1 %v5974_v41, %s6376_s17  ;;  %2339 = vrot.lane.b32.xlu0 %v5986_v52, %s6367_s19  ;;  %v1810_v41 = vadd.f32 %v5844_v20, %v3514_v17 }
 0x33b   : > { %v2767_v23 = vsel %vm6418_vm13, %v2751_v15, %v2616_v51  ;;  %vm1962_vm13 = vmand %vm6096_vm10, %vm1932_vm2  ;;  %vm6423_vm2 = vcmask 261120  }
 0x33c   : > { %3540 = vmatprep.mubr.msk.f32.mxu1 %vm6419_vm8, %v2767_v23 }
 0x33d   : > { %v2522_v1 = vpop.permute.xlu1 %2521 }
 0x33e   : > { %2293 = vrot.lane.b32.xlu1 %v5977_v47, %s6376_s17  ;;  %2387 = vrot.lane.b32.xlu0 %v2047_v35, %s3864_s9  ;;  %v2672_v47 = vsel %vm1284_vm4, %v2656_v55, %v2330_v38  ;;  %v1850_v35 = vmax.f32 %v1810_v41, 0.0 }
 0x33f   : > { %v2688_v62 = vsel %vm1315_vm5, %v2672_v47, %v2378_v21 }
 0x340   : > { %v2704_v42 = vsel %vm1346_vm6, %v2688_v62, %v2426_v63  ;;  %v2050_v26 = vsel %vm1927_vm14, %v1850_v35, 0.0  ;;  %vm6429_vm14 = vmmov %vm6419_vm8 }
 0x341   : > { %v2720_v16 = vsel %vm1377_vm7, %v2704_v42, %v2474_v29  ;;  %v2253_v9 = vrot.slane %v2050_v26, 1  ;;  %v2258_v18 = vrot.slane %v2050_v26, 2  ;;  %v6140_v29 = vld [vmem:[%s6347_s4] ss:$0 sm:$0xff] }
 0x342   : > { %2341 = vrot.lane.b32.xlu1 %v5993_v4, %s6367_s19  ;;  %2435 = vrot.lane.b32.xlu0 %v2242_v53, %s3867_s14  ;;  %v2736_v38 = vsel %vm6422_vm15, %v2720_v16, %v2522_v1  ;;  %s256_s19 = sand.u32 1, %s3838_s22  }
 0x343   : > { %s3313_s12 = sshll.u32 %s256_s19, 2 }
 0x344   : > { %s258_s30 = scalar_lea.vmem [#allocation2], %s3313_s12 }
 0x345   : > { %v3517_v34 = vpop.f32.mrb[28].mxu0  ;;  %s3234_s13 = sshll.u32 %s258_s30, 4  ;;  %s6287_s13 = int_to_ptr.vmem [resolvable:$true] %s3234_s13 }
 0x346   : > { %v1820_v4 = vadd.f32 %v5844_v20, %v3517_v34  ;;  %2389 = vrot.lane.b32.xlu1 %v6048_v22, %s3864_s9  ;;  %v1814_v53 = vpop.f32.mrb[29].mxu0  ;;  %2483 = vrot.lane.b32.xlu0 %v2247_v13, %s6366_s18  ;;  %s3768_s0 = scalar_lea.vmem %s6287_s13, 64 }
 0x347   : > { %v1815_v37 = vadd.f32 %v5844_v20, %v1814_v53  ;;  %p3769_p13 = scmp.ne.s32.totalorder %s6287_s13, %s3768_s0 }
 0x348   : > { %v1852_v17 = vmax.f32 %v1820_v4, 0.0 }
 0x349   : > { %v1851_v19 = vmax.f32 %v1815_v37, 0.0  ;;  %v2570_v22 = vpop.permute.xlu1 %2569  ;;  %v2618_v2 = vpop.permute.xlu0 %2617  ;;  %p3770_p0 = pnand %p3769_p13, %p3963_p3 }
 0x34a   : > { %v2052_v5 = vsel %vm1962_vm13, %v1852_v17, 0.0  ;;  %v2752_v13 = vsel %vm1439_vm9, %v2736_v38, %v2570_v22  ;;  %2437 = vrot.lane.b32.xlu1 %v2244_v32, %s3867_s14  ;;  %2531 = vrot.lane.b32.xlu0 %v2050_v26, %s3869_s29 }
 0x34b   : > { %v2256_v30 = vrot.slane %v2052_v5, 1  ;;  %v2261_v60 = vrot.slane %v2052_v5, 2  ;;  %v2051_v20 = vsel %vm6096_vm10, %v1851_v19, 0.0  ;;  %v2768_v36 = vsel %vm6423_vm2, %v2752_v13, %v2618_v2  ;;  %p3771_p1 = pneg %p3770_p0 }
 0x34c   : > { %v2254_v31 = vrot.slane %v2051_v20, 1  ;;  %v2259_v21 = vrot.slane %v2051_v20, 2  ;;  %3541 = vmatmul.mubr.msk.f32.gmra.mrb[8].mxu1 %vm6419_vm8, %v2768_v36 }
 0x34d   : > { %v2284_v57 = vpop.permute.xlu1 %2283  ;;  %v2332_v15 = vpop.permute.xlu0 %2331 }
 0x34e   : > { %2485 = vrot.lane.b32.xlu1 %v2249_v11, %s6366_s18  ;;  %v2255_v32 = vsel %vm355_vm1, %v2253_v9, %v2254_v31  ;;  %v2260_v59 = vsel %vm426_vm0, %v2258_v18, %v2259_v21  ;;  %v2257_v40 = vsel %vm355_vm1, %v2254_v31, %v2256_v30  ;;  %v2262_v7 = vsel %vm426_vm0, %v2259_v21, %v2261_v60  ;;  %vm6424_vm0 = vmmov %vm6422_vm15  ;;  %s3219_s18 = scalar_lea.sflag [#allocation3], %s256_s19 }
 0x34f   : > { %2579 = vrot.lane.b32.xlu0 %v2255_v32, %s3870_s16  ;;  %v2657_v34 = vsel %vm1253_vm3, %v5730_v24, %v2284_v57  ;;  %vm6425_vm1 = vmmov %vm6423_vm2 }
 0x350   : > { %v2673_v4 = vsel %vm1284_vm4, %v2657_v34, %v2332_v15  ;;  %vm6427_vm11 = vmmov %vm6424_vm0 }
 0x351   : > { %v2286_v58 = vpop.permute.xlu1 %2285  ;;  %v2380_v11 = vpop.permute.xlu0 %2379  ;;  %vm6428_vm10 = vmmov %vm6425_vm1 }
 0x352   : > { %2533 = vrot.lane.b32.xlu1 %v2051_v20, %s3869_s29  ;;  %v2689_v42 = vsel %vm1315_vm5, %v2673_v4, %v2380_v11  ;;  %v2658_v17 = vsel %vm1253_vm3, %v5764_v6, %v2286_v58  ;;  %vm6430_vm13 = vmmov %vm6424_vm0 }
 0x353   : > { %2627 = vrot.lane.b32.xlu0 %v2260_v59, %s6377_s20  ;;  %vm6431_vm15 = vmmov %vm6425_vm1 }
 0x354   : > { %vm6432_vm2 = vmmov %vm6419_vm8 }
 0x355   : > { %v2334_v51 = vpop.permute.xlu1 %2333  ;;  %v2428_v23 = vpop.permute.xlu0 %2427  ;;  %vm6433_vm8 = vmmov %vm6424_vm0 }
 0x356   : > { %2581 = vrot.lane.b32.xlu1 %v2257_v40, %s3870_s16  ;;  %v2705_v16 = vsel %vm1346_vm6, %v2689_v42, %v2428_v23  ;;  %v2674_v38 = vsel %vm1284_vm4, %v2658_v17, %v2334_v51  ;;  %s3873_s16 = smov 124  }
 0x359   : > { %v2382_v63 = vpop.permute.xlu1 %2381  ;;  %v2476_v41 = vpop.permute.xlu0 %2475 }
 0x35a   : > { %2629 = vrot.lane.b32.xlu1 %v2262_v7, %s6377_s20  ;;  %v2721_v26 = vsel %vm1377_vm7, %v2705_v16, %v2476_v41  ;;  %v2690_v24 = vsel %vm1315_vm5, %v2674_v38, %v2382_v63 }
 0x35d   : > { %v2430_v3 = vpop.permute.xlu1 %2429  ;;  %v2524_v62 = vpop.permute.xlu0 %2523 }
 0x35e   : > { %v2737_v19 = vsel %vm6424_vm0, %v2721_v26, %v2524_v62  ;;  %v2706_v5 = vsel %vm1346_vm6, %v2690_v24, %v2430_v3  ;;  %vm6434_vm0 = vmmov %vm6425_vm1 }
 0x361   : > { %v2478_v1 = vpop.permute.xlu1 %2477 }
 0x362   : > { %v2722_v60 = vsel %vm1377_vm7, %v2706_v5, %v2478_v1 }
 0x368   : > { %v3530_v52 = vpop.f32.mrb[0].mxu1 }
 0x369   : > { %v2910_v55 = vadd.f32 %v3530_v52, %v6140_v29  ;;  %v2904_v47 = vpop.f32.mrb[1].mxu1 }
 0x36a   : > { %v2905_v35 = vadd.f32 %v6140_v29, %v2904_v47 }
 0x36b   : > { %3001 = vrot.lane.b32.xlu1 %v2910_v55, %s6376_s17 }
 0x36c   : > { %2999 = vrot.lane.b32.xlu0 %v2905_v35, %s6376_s17 }
 0x36e   : > { %v2526_v53 = vpop.permute.xlu1 %2525 }
 0x36f   : > { %v2738_v6 = vsel %vm6427_vm11, %v2722_v60, %v2526_v53  ;;  %vm6437_vm11 = vmmov %vm6434_vm0 }
 0x371   : > { %v2572_v37 = vpop.permute.xlu0 %2571 }
 0x372   : > { %v2753_v22 = vsel %vm1439_vm9, %v2737_v19, %v2572_v37  ;;  %v2574_v13 = vpop.permute.xlu1 %2573 }
 0x373   : > { %v2754_v20 = vsel %vm1439_vm9, %v2738_v6, %v2574_v13 }
 0x375   : > { %v2620_v2 = vpop.permute.xlu0 %2619 }
 0x376   : > { %v2769_v30 = vsel %vm6425_vm1, %v2753_v22, %v2620_v2  ;;  %v2288_v21 = vpop.permute.xlu1 %2287  ;;  %vm6435_vm1 = vmmov %vm6432_vm2 }
 0x377   : > { %3543 = vmatprep.mubr.msk.f32.mxu1 %vm6426_vm12, %v2769_v30  ;;  %v2659_v63 = vsel %vm1253_vm3, %v5858_v44, %v2288_v21  ;;  %vm6436_vm12 = vmmov %vm6433_vm8 }
 0x379   : > { %v2622_v36 = vpop.permute.xlu0 %2621 }
 0x37a   : > { %v2770_v9 = vsel %vm6428_vm10, %v2754_v20, %v2622_v36  ;;  %v2290_v32 = vpop.permute.xlu1 %2289  ;;  %vm6438_vm10 = vmmov %vm6435_vm1 }
 0x37b   : > { %3544 = vmatmul.mubr.msk.f32.gmra.mrb[10].mxu1 %vm6429_vm14, %v2770_v9  ;;  %v2660_v53 = vsel %vm1253_vm3, %v5856_v54, %v2290_v32  ;;  %vm6439_vm14 = vmmov %vm6433_vm8 }
 0x37d   : > { %v2336_v18 = vpop.permute.xlu0 %2335 }
 0x37e   : > { %v2338_v40 = vpop.permute.xlu1 %2337  ;;  %v2675_v23 = vsel %vm1284_vm4, %v2659_v63, %v2336_v18 }
 0x37f   : > { %v2676_v42 = vsel %vm1284_vm4, %v2660_v53, %v2338_v40 }
 0x381   : > { %v2384_v31 = vpop.permute.xlu0 %2383 }
 0x382   : > { %v2386_v3 = vpop.permute.xlu1 %2385  ;;  %v2691_v41 = vsel %vm1315_vm5, %v2675_v23, %v2384_v31 }
 0x383   : > { %v2692_v16 = vsel %vm1315_vm5, %v2676_v42, %v2386_v3 }
 0x385   : > { %v2432_v57 = vpop.permute.xlu0 %2431 }
 0x386   : > { %v2707_v55 = vsel %vm1346_vm6, %v2691_v41, %v2432_v57  ;;  %v2434_v62 = vpop.permute.xlu1 %2433 }
 0x387   : > { %v2708_v17 = vsel %vm1346_vm6, %v2692_v16, %v2434_v62 }
 0x389   : > { %v2480_v59 = vpop.permute.xlu0 %2479 }
 0x38a   : > { %v2723_v47 = vsel %vm1377_vm7, %v2707_v55, %v2480_v59  ;;  %v2482_v44 = vpop.permute.xlu1 %2481 }
 0x38b   : > { %v2724_v26 = vsel %vm1377_vm7, %v2708_v17, %v2482_v44 }
 0x38e   : > { %v3533_v7 = vpop.f32.mrb[2].mxu1 }
 0x38f   : > { %v2920_v58 = vadd.f32 %v3533_v7, %v6140_v29  ;;  %v2914_v15 = vpop.f32.mrb[3].mxu1 }
 0x390   : > { %v2915_v51 = vadd.f32 %v6140_v29, %v2914_v15  ;;  %v2530_v37 = vpop.permute.xlu1 %2529 }
 0x391   : > { %3005 = vrot.lane.b32.xlu1 %v2920_v58, %s6376_s17  ;;  %v2528_v11 = vpop.permute.xlu0 %2527  ;;  %v2740_v38 = vsel %vm6433_vm8, %v2724_v26, %v2530_v37 }
 0x392   : > { %3003 = vrot.lane.b32.xlu0 %v2915_v51, %s6376_s17  ;;  %v2739_v35 = vsel %vm6430_vm13, %v2723_v47, %v2528_v11  ;;  %vm6440_vm13 = vmmov %vm6434_vm0 }
 0x395   : > { %v2576_v52 = vpop.permute.xlu0 %2575 }
 0x396   : > { %v2755_v1 = vsel %vm1439_vm9, %v2739_v35, %v2576_v52 }
 0x399   : > { %v2624_v34 = vpop.permute.xlu0 %2623 }
 0x39a   : > { %v2771_v4 = vsel %vm6431_vm15, %v2755_v1, %v2624_v34  ;;  %vm6441_vm15 = vmmov %vm6435_vm1 }
 0x39b   : > { %3546 = vmatprep.mubr.msk.f32.mxu1 %vm6432_vm2, %v2771_v4 }
 0x3a8   : > { %v2578_v19 = vpop.permute.xlu1 %2577  ;;  %v2626_v24 = vpop.permute.xlu0 %2625 }
 0x3a9   : > { %v2756_v22 = vsel %vm1439_vm9, %v2740_v38, %v2578_v19 }
 0x3aa   : > { %v2772_v2 = vsel %vm6434_vm0, %v2756_v22, %v2626_v24 }
 0x3ab   : > { %3547 = vmatmul.mubr.msk.f32.gmra.mrb[12].mxu1 %vm6435_vm1, %v2772_v2 }
 0x3ac   : > { %v2292_v54 = vpop.permute.xlu1 %2291  ;;  %v2340_v5 = vpop.permute.xlu0 %2339 }
 0x3ad   : > { %v2661_v31 = vsel %vm1253_vm3, %v5942_v50, %v2292_v54 }
 0x3ae   : > { %v2677_v57 = vsel %vm1284_vm4, %v2661_v31, %v2340_v5 }
 0x3b0   : > { %v2294_v13 = vpop.permute.xlu1 %2293  ;;  %v2388_v30 = vpop.permute.xlu0 %2387 }
 0x3b1   : > { %v2693_v7 = vsel %vm1315_vm5, %v2677_v57, %v2388_v30  ;;  %v2662_v41 = vsel %vm1253_vm3, %v5961_v0, %v2294_v13 }
 0x3b4   : > { %v2342_v60 = vpop.permute.xlu1 %2341  ;;  %v2436_v6 = vpop.permute.xlu0 %2435 }
 0x3b5   : > { %v2709_v51 = vsel %vm1346_vm6, %v2693_v7, %v2436_v6  ;;  %v2678_v55 = vsel %vm1284_vm4, %v2662_v41, %v2342_v60  ;;  %v3872_v41 = vmov 0.0|0.0   ;;  %vm3874_vm4 = vmmov 0  }
 0x3b6   : > { %3603 = vmatprep.subr.bf16.mxu0 %v3872_v41 }
 0x3b8   : > { %v2390_v20 = vpop.permute.xlu1 %2389  ;;  %v2484_v36 = vpop.permute.xlu0 %2483 }
 0x3b9   : > { %v2725_v11 = vsel %vm1377_vm7, %v2709_v51, %v2484_v36  ;;  %v2694_v47 = vsel %vm1315_vm5, %v2678_v55, %v2390_v20  ;;  %vm6253_vm5 = vmpackc.low %vm1253_vm3, %vm1253_vm3 }
 0x3bc   : > { %v2438_v9 = vpop.permute.xlu1 %2437  ;;  %v2532_v18 = vpop.permute.xlu0 %2531 }
 0x3bd   : > { %v2741_v50 = vsel %vm6436_vm12, %v2725_v11, %v2532_v18  ;;  %v2710_v1 = vsel %vm1346_vm6, %v2694_v47, %v2438_v9 }
 0x3bf   : > { %v3536_v21 = vpop.f32.mrb[4].mxu1 }
 0x3c0   : > { %v2930_v32 = vadd.f32 %v3536_v21, %v6140_v29  ;;  %v2924_v59 = vpop.f32.mrb[5].mxu1  ;;  %v2486_v40 = vpop.permute.xlu1 %2485 }
 0x3c1   : > { %v2925_v58 = vadd.f32 %v6140_v29, %v2924_v59  ;;  %v2580_v15 = vpop.permute.xlu0 %2579  ;;  %v2726_v34 = vsel %vm1377_vm7, %v2710_v1, %v2486_v40 }
 0x3c2   : > { %3009 = vrot.lane.b32.xlu1 %v2930_v32, %s6376_s17  ;;  %v2757_v23 = vsel %vm1439_vm9, %v2741_v50, %v2580_v15 }
 0x3c3   : > { %3007 = vrot.lane.b32.xlu0 %v2925_v58, %s6376_s17 }
 0x3c4   : > { %v2534_v63 = vpop.permute.xlu1 %2533 }
 0x3c5   : > { %v2628_v3 = vpop.permute.xlu0 %2627  ;;  %v2742_v62 = vsel %vm6439_vm14, %v2726_v34, %v2534_v63 }
 0x3c6   : > { %v2773_v52 = vsel %vm6437_vm11, %v2757_v23, %v2628_v3 }
 0x3c7   : > { %3549 = vmatprep.mubr.msk.f32.mxu1 %vm6438_vm10, %v2773_v52 }
 0x3c8   : > { %v2582_v35 = vpop.permute.xlu1 %2581 }
 0x3c9   : > { %v2758_v4 = vsel %vm1439_vm9, %v2742_v62, %v2582_v35 }
 0x3cc   : > { %v2630_v44 = vpop.permute.xlu1 %2629 }
 0x3cd   : > { %v2774_v0 = vsel %vm6440_vm13, %v2758_v4, %v2630_v44  ;;  %v3875_v44 = vmov 0.0  }
 0x3ce   : > { %3550 = vmatmul.mubr.msk.f32.gmra.mrb[14].mxu1 %vm6441_vm15, %v2774_v0  ;;  %3584 = vmatprep.mubr.msk.f32.mxu0 %vm3874_vm4, %v3875_v44 }
 0x3dd   : > { %v3002_v53 = vpop.permute.xlu1 %3001 }
 0x3de   : > { %v3048_v42 = vadd.f32 %v3002_v53, %v5144_v45  ;;  %v3000_v37 = vpop.permute.xlu0 %2999 }
 0x3df   : > { %v3047_v16 = vadd.f32 %v3000_v37, %v5154_v25 }
 0x3e1   : > { %v3719_v17 = vpack.i.bf16 %v3048_v42, %v3047_v16 }
 0x3ee   : > { %v3539_v26 = vpop.f32.mrb[6].mxu1 }
 0x3ef   : > { %v2940_v38 = vadd.f32 %v3539_v26, %v6140_v29  ;;  %v2934_v19 = vpop.f32.mrb[7].mxu1 }
 0x3f0   : > { %v2935_v24 = vadd.f32 %v6140_v29, %v2934_v19 }
 0x3f1   : > { %3013 = vrot.lane.b32.xlu1 %v2940_v38, %s6376_s17 }
 0x3f2   : > { %3011 = vrot.lane.b32.xlu0 %v2935_v24, %s6376_s17 }
 0x403   : > { %v3006_v22 = vpop.permute.xlu1 %3005 }
 0x404   : > { %v3050_v2 = vadd.f32 %v3006_v22, %v5400_v56  ;;  %v3004_v54 = vpop.permute.xlu0 %3003 }
 0x405   : > { %v3049_v45 = vadd.f32 %v3004_v54, %v5290_v61 }
 0x407   : > { %v3724_v5 = vpack.i.bf16 %v3050_v2, %v3049_v45 }
 0x41f   : > { %v3542_v13 = vpop.f32.mrb[8].mxu1 }
 0x420   : > { %v2950_v25 = vadd.f32 %v3542_v13, %v6140_v29  ;;  %v2944_v30 = vpop.f32.mrb[9].mxu1 }
 0x421   : > { %v2945_v60 = vadd.f32 %v6140_v29, %v2944_v30 }
 0x422   : > { %3017 = vrot.lane.b32.xlu1 %v2950_v25, %s6376_s17 }
 0x423   : > { %3015 = vrot.lane.b32.xlu0 %v2945_v60, %s6376_s17 }
 0x434   : > { %v3010_v6 = vpop.permute.xlu1 %3009 }
 0x435   : > { %v3052_v20 = vadd.f32 %v3010_v6, %v5526_v48  ;;  %v3008_v36 = vpop.permute.xlu0 %3007 }
 0x436   : > { %v3051_v56 = vadd.f32 %v3008_v36, %v5538_v43 }
 0x438   : > { %v3729_v9 = vpack.i.bf16 %v3052_v20, %v3051_v56 }
 0x44e   : > { %v3545_v18 = vpop.f32.mrb[10].mxu1 }
 0x44f   : > { %v2960_v61 = vadd.f32 %v3545_v18, %v6140_v29  ;;  %v2954_v31 = vpop.f32.mrb[11].mxu1 }
 0x450   : > { %v2955_v21 = vadd.f32 %v6140_v29, %v2954_v31 }
 0x451   : > { %3021 = vrot.lane.b32.xlu1 %v2960_v61, %s6376_s17 }
 0x452   : > { %3019 = vrot.lane.b32.xlu0 %v2955_v21, %s6376_s17 }
 0x463   : > { %v3014_v57 = vpop.permute.xlu1 %3013 }
 0x464   : > { %v3054_v32 = vadd.f32 %v3014_v57, %v5690_v14  ;;  %v3012_v59 = vpop.permute.xlu0 %3011 }
 0x465   : > { %v3053_v48 = vadd.f32 %v3012_v59, %v5646_v27 }
 0x467   : > { %v3734_v40 = vpack.i.bf16 %v3054_v32, %v3053_v48 }
 0x47e   : > { %v3548_v7 = vpop.f32.mrb[12].mxu1 }
 0x47f   : > { %v2970_v43 = vadd.f32 %v3548_v7, %v6140_v29  ;;  %v2964_v58 = vpop.f32.mrb[13].mxu1 }
 0x480   : > { %v2965_v15 = vadd.f32 %v6140_v29, %v2964_v58 }
 0x481   : > { %3025 = vrot.lane.b32.xlu1 %v2970_v43, %s6376_s17 }
 0x482   : > { %3023 = vrot.lane.b32.xlu0 %v2965_v15, %s6376_s17 }
 0x494   : > { %v3018_v51 = vpop.permute.xlu1 %3017 }
 0x495   : > { %v3056_v11 = vadd.f32 %v3018_v51, %v5771_v33  ;;  %v3016_v50 = vpop.permute.xlu0 %3015 }
 0x496   : > { %v3055_v14 = vadd.f32 %v3016_v50, %v5774_v46 }
 0x498   : > { %v3739_v63 = vpack.i.bf16 %v3056_v11, %v3055_v14 }
 0x4a1   : > { %v3551_v23 = vpop.f32.mrb[14].mxu1 }
 0x4a2   : > { %v2980_v27 = vadd.f32 %v3551_v23, %v6140_v29  ;;  %v2974_v3 = vpop.f32.mrb[15].mxu1 }
 0x4a3   : > { %v2975_v52 = vadd.f32 %v6140_v29, %v2974_v3 }
 0x4a4   : > { %3029 = vrot.lane.b32.xlu1 %v2980_v27, %s6376_s17 }
 0x4a5   : > { %3027 = vrot.lane.b32.xlu0 %v2975_v52, %s6376_s17  ;;  %s3385_s17 = sshll.u32 %s3850_s25, 1 }
 0x4a6   : > { %s3230_s20 = sadd.s32 %s3846_s24, %s3385_s17  ;;  %s3876_s24 = smov [#allocation2]  }
 0x4a7   : > { %s3386_s9 = sshll.u32 %s3230_s20, 6  ;;  %s3772_s25 = sshll.u32 %s3876_s24, 4  ;;  %s3773_s25 = int_to_ptr.vmem [resolvable:$false] %s3772_s25 }
 0x4a8   : > { %3725 = vrot.lane.b32.xlu1 %v3724_v5, %s3873_s16  ;;  %s6292_s29 = scalar_lea.hbm %s6349_s6, %s3386_s9  ;;  %s3774_s12 = scalar_lea.vmem %s3773_s25, 128 }
 0x4a9   : > { %3720 = vrot.lane.b32.xlu0 %v3719_v17, %s3873_s16  ;;  %p3775_p2 = scmp.lt.s32.totalorder %s6287_s13, %s3773_s25  ;;  %p3776_p4 = scmp.lt.s32.totalorder %s3774_s12, %s3768_s0 }
 0x4ab   : > { %p3777_p5 = por %p3776_p4, %p3775_p2 }
 0x4ac   : > { %3735 = vrot.lane.b32.xlu1 %v3734_v40, %s3873_s16  ;;  %v3063_v40 = vld [vmem:[%s6348_s5] sm:$0xf] }
 0x4ad   : > { %3730 = vrot.lane.b32.xlu0 %v3729_v9, %s3873_s16  ;;  %p3778_p6 = pnand %p3777_p5, %p3771_p1 }
 0x4b1   : > { %3740 = vrot.lane.b32.xlu0 %v3739_v63, %s3873_s16 }
 0x4c3   : > { %v3022_v33 = vpop.permute.xlu1 %3021 }
 0x4c4   : > { %v3058_v46 = vadd.f32 %v3022_v33, %v5889_v8  ;;  %v3020_v55 = vpop.permute.xlu0 %3019 }
 0x4c5   : > { %v3057_v47 = vadd.f32 %v3020_v55, %v5867_v39 }
 0x4c7   : > { %v3744_v35 = vpack.i.bf16 %v3058_v46, %v3057_v47 }
 0x4c9   : > { %3745 = vrot.lane.b32.xlu1 %v3744_v35, %s3873_s16 }
 0x4f3   : > { %v3026_v1 = vpop.permute.xlu1 %3025 }
 0x4f4   : > { %v3060_v29 = vadd.f32 %v3026_v1, %v5968_v10  ;;  %v3024_v34 = vpop.permute.xlu0 %3023 }
 0x4f5   : > { %v3059_v62 = vadd.f32 %v3024_v34, %v5971_v49 }
 0x4f7   : > { %v3749_v4 = vpack.i.bf16 %v3060_v29, %v3059_v62 }
 0x4f9   : > { %3750 = vrot.lane.b32.xlu0 %v3749_v4, %s3873_s16 }
 0x516   : > { %v3030_v0 = vpop.permute.xlu1 %3029 }
 0x517   : > { %v3062_v53 = vadd.f32 %v3030_v0, %v6068_v28  ;;  %v3028_v8 = vpop.permute.xlu0 %3027 }
 0x518   : > { %v3061_v42 = vadd.f32 %v3028_v8, %v6056_v12 }
 0x51a   : > { %v3754_v39 = vpack.i.bf16 %v3062_v53, %v3061_v42  ;;  %v3726_v26 = vpop.permute.xlu1 %3725 }
 0x51b   : > { %v3721_v37 = vpop.permute.xlu0 %3720  ;;  %v3728_v28 = vunpack.i.h.bf16 %v3726_v26  ;;  %v3727_v12 = vunpack.i.l.bf16 %v3726_v26 }
 0x51c   : > { %v3723_v16 = vunpack.i.h.bf16 %v3721_v37  ;;  %v3722_v17 = vunpack.i.l.bf16 %v3721_v37  ;;  %3755 = vrot.lane.b32.xlu1 %v3754_v39, %s3873_s16 }
 0x51d   : > { %v3608_v38 = vpack.c.bf16 %v3728_v28, %v3727_v12 }
 0x51e   : > { %v3604_v49 = vpack.c.bf16 %v3723_v16, %v3722_v17  ;;  %v3736_v54 = vpop.permute.xlu1 %3735 }
 0x51f   : > { %v3731_v19 = vpop.permute.xlu0 %3730  ;;  %v3738_v45 = vunpack.i.h.bf16 %v3736_v54  ;;  %v3737_v5 = vunpack.i.l.bf16 %v3736_v54 }
 0x520   : > { %3606 = vmatpush3.bf16.xpose.msk.msra.mxu0 %vm6253_vm5, %v3604_v49  ;;  %v3733_v24 = vunpack.i.h.bf16 %v3731_v19  ;;  %v3732_v22 = vunpack.i.l.bf16 %v3731_v19 }
 0x521   : > { %3607 = vmatprep.subr.bf16.mxu0 %v3872_v41  ;;  %v3616_v13 = vpack.c.bf16 %v3738_v45, %v3737_v5 }
 0x522   : > { %v3612_v2 = vpack.c.bf16 %v3733_v24, %v3732_v22 }
 0x523   : > { %v3741_v25 = vpop.permute.xlu0 %3740 }
 0x524   : > { %v3743_v30 = vunpack.i.h.bf16 %v3741_v25  ;;  %v3742_v60 = vunpack.i.l.bf16 %v3741_v25 }
 0x526   : > { %v3620_v6 = vpack.c.bf16 %v3743_v30, %v3742_v60 }
 0x528   : > { %3610 = vmatpush3.bf16.xpose.msk.msra.mxu0 %vm6253_vm5, %v3608_v38 }
 0x529   : > { %3611 = vmatprep.subr.bf16.mxu0 %v3872_v41 }
 0x530   : > { %3614 = vmatpush3.bf16.xpose.msk.msra.mxu0 %vm6253_vm5, %v3612_v2 }
 0x531   : > { %3615 = vmatprep.subr.bf16.mxu0 %v3872_v41 }
 0x538   : > { %3618 = vmatpush3.bf16.xpose.msk.msra.mxu0 %vm6253_vm5, %v3616_v13 }
 0x539   : > { %3619 = vmatprep.subr.bf16.mxu0 %v3872_v41 }
 0x53b   : > { %v3746_v20 = vpop.permute.xlu1 %3745 }
 0x53c   : > { %v3748_v36 = vunpack.i.h.bf16 %v3746_v20  ;;  %v3747_v56 = vunpack.i.l.bf16 %v3746_v20 }
 0x53e   : > { %v3624_v9 = vpack.c.bf16 %v3748_v36, %v3747_v56 }
 0x540   : > { %3622 = vmatpush3.bf16.xpose.msk.msra.mxu0 %vm6253_vm5, %v3620_v6 }
 0x541   : > { %3623 = vmatprep.subr.bf16.mxu0 %v3872_v41 }
 0x548   : > { %3626 = vmatpush3.bf16.xpose.msk.msra.mxu0 %vm6253_vm5, %v3624_v9 }
 0x549   : > { %3627 = vmatprep.subr.bf16.mxu0 %v3872_v41 }
 0x56b   : > { %v3751_v18 = vpop.permute.xlu0 %3750 }
 0x56c   : > { %v3753_v61 = vunpack.i.h.bf16 %v3751_v18  ;;  %v3752_v31 = vunpack.i.l.bf16 %v3751_v18 }
 0x56e   : > { %v3628_v21 = vpack.c.bf16 %v3753_v61, %v3752_v31 }
 0x570   : > { %3630 = vmatpush3.bf16.xpose.msk.msra.mxu0 %vm6253_vm5, %v3628_v21 }
 0x571   : > { %3631 = vmatprep.subr.bf16.mxu0 %v3872_v41 }
 0x58e   : > { %v3756_v57 = vpop.permute.xlu1 %3755 }
 0x58f   : > { %v3758_v32 = vunpack.i.h.bf16 %v3756_v57  ;;  %v3757_v59 = vunpack.i.l.bf16 %v3756_v57 }
 0x591   : > { %v3632_v48 = vpack.c.bf16 %v3758_v32, %v3757_v59 }
 0x593   : > { %3634 = vmatpush3.bf16.xpose.msk.msra.mxu0 %vm6253_vm5, %v3632_v48 }
 0x59a   : > { %3585 = vmatmul.mubr.msk.f32.vlgmr.msra.gmra.mrb[30].mxu0 %vm1253_vm3, %v3063_v40 }
 0x66d   : > { %v3213_v7 = vpop.f32.mrb[30].mxu0 }
 0x66e   : > { %3217 = vst [vmem:[%s258_s30] sm:$0xf] %v3213_v7  ;;  %v3586_v43 = vpop.f32.mrb[31].mxu0 }
 0x66f   : > { %3781 = shalt.err (!%p3778_p6)
}
 0x670   : > { %s3782_s19 = scalar_lea.hbm %s6292_s29, 64  ;;  %s3786_s30 = scalar_lea.hbm %s6349_s6, 256 }
 0x671   : > { %p3783_p7 = scmp.ne.s32.totalorder %s6292_s29, %s3782_s19  ;;  %p3787_p11 = scmp.lt.u32.totalorder %s6292_s29, %s6349_s6 }
 0x672   : > { %p3788_p12 = scmp.lt.u32.totalorder %s3786_s30, %s3782_s19  ;;  %p3790_p0 = scmp.lt.u32.totalorder %s3782_s19, %s6292_s29 }
 0x673   : > { %p3784_p9 = pnand %p3783_p7, %p3963_p3 }
 0x674   : > { %p3789_p13 = por %p3788_p12, %p3787_p11 }
 0x675   : > { %p3785_p10 = pneg %p3784_p9 }
 0x676   : > { %p3791_p1 = por %p3790_p0, %p3789_p13 }
 0x678   : > { %p3792_p2 = pnand %p3791_p1, %p3785_p10 }
 0x67a   : > { %3795 = shalt.err (!%p3792_p2)
}
 0x67b   : > { %3636 = dma.vmem_to_hbm [thread:$0]  (%p3963_p3), %s6287_s13, 64, %s6292_s29, %s3219_s18  }
 0x67c PF: > { %p3642_p4 = scmp.ge.s32.totalorder %s3862_s28, 2  ;;  %s3246_s0 = sand.u32 1, %s3834_s21  }
 0x67d   : > { %s3247_s16 = scalar_lea.sflag [#allocation3], %s3246_s0 }
 0x67e   : > { %p3639_p5 = pnand %p3642_p4, %p3972_p8 }
 0x680   : > { %3829 = dma.done.wait (!%p3639_p5), %s3247_s16, 64  }
 0x681   : > { %3831 = vsyncadd (!%p3639_p5), %s3247_s16, 4294967232  ;;  %s19_s28 = sadd.s32 1, %s3862_s28   ;;  %s6444_s21 = smov %s3838_s22 }
 0x682   : > { %p16_p6 = scmp.ge.s32.totalorder %s19_s28, 6   ;;  %s6445_s22 = smov %s3842_s23 }
 0x683   : > { %s6446_s23 = smov %s3981_s15  ;;  %s6447_s24 = smov %s3854_s26 }
 0x684   : > { %s6448_s25 = smov %s3858_s27  ;;  %s6449_s26 = smov %s6452_s7 }
 0x685   : > { %s6450_s27 = smov %s6456_s8  ;;  %18 = sbr.rel (!%p16_p6) target bundleno = 7 (0x7), region = 80 }
 0x68c   :  { %3252 = vsyncpa [#allocation3], 1 }
 0x68d   :  { %3254 = vsyncpa [#allocation3 + $0x1], 1 }

// kernel: tpu_custom_call.1
= control target key start
LH: loop header
LB: loop body
LE: loop exit
PB: predicated region body
PF: predicated region fallthrough
CT: control target
= control target key end

     0   :  { %s9808_s0 = inlined_call_operand.vmem [shape: f32[2,20,26,4], index: 0, kind: input, shape index: {}]   ;;  %s9809_s1 = inlined_call_operand.vmem [shape: f32[36,8], index: 1, kind: input, shape index: {}]   ;;  %s9810_s2 = inlined_call_operand.vmem [shape: f32[1,8], index: 2, kind: input, shape index: {}]   ;;  %s9811_s3 = inlined_call_operand.vmem [shape: f32[36,4], index: 3, kind: input, shape index: {}]   ;;  %s9812_s4 = inlined_call_operand.vmem [shape: f32[1,4], index: 4, kind: input, shape index: {}]   ;;  %s9813_s5 = inlined_call_operand.vmem [shape: f32[4,4], index: 5, kind: input, shape index: {}]   ;;  %s9814_s6 = inlined_call_operand.hbm [shape: f32[2,4,256], index: 6, kind: output, shape index: {}]  }
   0x1   :  { %9898 = sst [smem:[#allocation34_spill]] %s9808_s0 }
   0x2   :  { %11 = vsyncpa [#allocation3], 0 }
   0x3   :  { %13 = vsyncpa [#allocation3 + $0x1], 0  ;;  %s7585_s21 = smov 0   ;;  %s7587_s22 = smov 0  }
   0x4   :  { %s7589_s23 = smov 0   ;;  %s7591_s24 = smov 0  }
   0x5   :  { %s7593_s25 = smov 0   ;;  %s7595_s26 = smov 0  }
   0x6   :  { %s7597_s27 = smov 0   ;;  %s7599_s28 = smov 0  }
   0x7 LB: > { %s5322_s29 = sadd.s32 4294967295, %s7542_s28   ;;  %s5323_s30 = sadd.s32 4294967294, %s7542_s28   ;;  %s7542_s28 = sphi %s7599_s28, %s19_s28   ;;  %s7538_s27 = sphi %s7597_s27, %s10083_s27   ;;  %s7534_s26 = sphi %s7595_s26, %s10082_s26   ;;  %s7530_s25 = sphi %s7593_s25, %s10081_s25   ;;  %s7526_s24 = sphi %s7591_s24, %s10080_s24   ;;  %s7522_s23 = sphi %s7589_s23, %s10079_s23   ;;  %s7518_s22 = sphi %s7587_s22, %s10078_s22   ;;  %s7514_s21 = sphi %s7585_s21, %s10077_s21  }
   0x8   : > { %s28_s7 = sadd.s32 1, %s7534_s26  ;;  %s31_s8 = sadd.s32 1, %s7538_s27 }
   0x9   : > { %p29_p0 = scmp.ge.s32.totalorder %s28_s7, 2  ;;  %p181_p1 = scmp.ne.s32.totalorder %s7522_s23, %s7518_s22 }
   0xa   : > { %p182_p2 = scmp.eq.s32.totalorder %s5322_s29, 3  ;;  %p187_p5 = scmp.ne.s32.totalorder %s7518_s22, %s7514_s21 }
   0xb   : > { %s10085_s7 = smov (%p29_p0, %s28_s7), 0  ;;  %s10087_s8 = smov (!%p29_p0, %s31_s8), %s7538_s27 }
   0xc   : > { %s167_s9 = ssub.s32 %s7534_s26, %s10085_s7  ;;  %p7636_p3 = por %p182_p2, %p181_p1 }
   0xd   : > { %p33_p4 = scmp.ge.s32.totalorder %s10087_s8, 2  ;;  %p188_p6 = scmp.eq.s32.totalorder %s5323_s30, 3 }
   0xe   : > { %p5326_p7 = scmp.ge.s32.totalorder %s7542_s28, 1  ;;  %p229_p9 = scmp.lt.s32.totalorder %s7542_s28, 5 }
   0xf   : > { %s10089_s8 = smov (%p33_p4, %s10087_s8), 0  ;;  %p7645_p8 = por %p188_p6, %p187_p5 }
  0x10   : > { %s166_s12 = ssub.s32 %s7538_s27, %s10089_s8  ;;  %s171_s13 = sadd.s32 1, %s7522_s23 }
  0x11   : > { %s168_s14 = sor.u32 %s167_s9, %s166_s12  ;;  %p230_p10 = pnand %p5326_p7, %p229_p9 }
  0x12   : > { %p169_p11 = scmp.eq.s32.totalorder %s168_s14, 0 }
  0x13   : > { %233 = sbr.rel (%p230_p10) target bundleno = 1652 (0x674), region = 44 }
  0x14   : > { %s7654_s15 = scalar_select %p169_p11, %s7522_s23, %s171_s13  }
  0x1a   : > { %v7659_v0 = vld [vmem:[%s9809_s1] sm:$0xff]  ;;  %vm601_vm0 = vcmask 1043456   ;;  %p259_p12 = scmp.lt.s32.totalorder %s7530_s25, 1  ;;  %v534_v1 = vld [vmem:[%s9809_s1 + $0x8] sm:$0xff]  ;;  %s5787_s30 = sshll.u32 %s7526_s24, 8  ;;  %vm540_vm1 = vcmask 31744  }
  0x1b   : > { %6284 = vmatprep.subr.msk.mxu0 %vm601_vm0, %v7659_v0  ;;  %s9901_s0 = sld [smem:[#allocation34_spill]]  ;;  %v1404_v3 = vrot.slane %v534_v1, 4  ;;  %vm9868_vm2 = vcmask 1045504   ;;  %v7735_v23 = vld [vmem:[%s9809_s1 + $0x10] sm:$0xff]  ;;  %vm355_vm3 = vcmask 1046528   ;;  %s5329_s12 = sshll.u32 %s7526_s24, 3 }
  0x1c   : > { %6285 = vmatpush3.msk.msra.mxu0 %vm601_vm0, %v7659_v0  ;;  %s260_s20 = scalar_select %p259_p12, %s7530_s25, 1 }
  0x1d   : > { %6331 = vmatprep.subr.msk.mxu0 %vm601_vm0, %v534_v1  ;;  %s7546_s16 = smov 124   ;;  %s256_s19 = sand.u32 1, %s7518_s22  }
  0x1e   : > { %s7331_s29 = smul.u32 640, %s260_s20  ;;  %s5327_s20 = sshll.u32 %s256_s19, 2 }
  0x1f   : > { %s258_s9 = scalar_lea.vmem [#allocation2], %s5327_s20  ;;  %s5233_s18 = scalar_lea.sflag [#allocation3], %s256_s19 }
  0x21   : > { %s263_s13 = scalar_lea.vmem %s9901_s0, %s7331_s29  ;;  %s5783_s29 = sshll.u32 %s7530_s25, 1 }
  0x22   : > { %s7675_s14 = scalar_lea.vmem %s263_s13, %s5787_s30  ;;  %s5244_s30 = sadd.s32 %s7526_s24, %s5783_s29 }
  0x23   : > { %v7678_v2 = vld [vmem:[%s7675_s14] sm:$0xff]  ;;  %v7681_v4 = vld [vmem:[%s7675_s14 + $0x8] sm:$0xff]  ;;  %v7684_v5 = vld [vmem:[%s7675_s14 + $0x10] sm:$0xff]  ;;  %s5784_s13 = sshll.u32 %s5244_s30, 6  ;;  %s7549_s24 = smov [#allocation2]  }
  0x24   : > { %6286 = vmatprep.mubr.msk.f32.mxu0 %vm540_vm1, %v7678_v2  ;;  %v7694_v6 = vld [vmem:[%s7675_s14 + $0x20] sm:$0xff]  ;;  %v427_v7 = vrot.slane %v7678_v2, 2  ;;  %v428_v8 = vrot.slane %v7681_v4, 2  ;;  %v7699_v9 = vld [vmem:[%s7675_s14 + $0x28] sm:$0xff]  ;;  %v7703_v10 = vld [vmem:[%s7675_s14 + $0x18] sm:$0x3]  ;;  %s9757_s17 = scalar_lea.hbm %s9814_s6, %s5784_s13 }
  0x25   : > { %6287 = vmatmul.mubr.msk.f32.vlgmr.msra.gmra.mrb[0].mxu0 %vm540_vm1, %v7681_v4  ;;  %v430_v11 = vrot.slane %v7684_v5, 2  ;;  %v7711_v12 = vld [vmem:[%s7675_s14 + $0x30] sm:$0xff]  ;;  %v432_v14 = vrot.slane %v7703_v10, 2  ;;  %v434_v15 = vrot.slane %v7694_v6, 2  ;;  %v435_v16 = vrot.slane %v7699_v9, 2  ;;  %v7727_v21 = vld [vmem:[%s7675_s14 + $0x40] sm:$0xff] }
  0x26   : > { %6332 = vmatpush3.msk.msra.mxu0 %vm601_vm0, %v534_v1  ;;  %6289 = vmatprep.mubr.msk.f32.mxu0 %vm540_vm1, %v7684_v5  ;;  %v429_v13 = vsel %vm9868_vm2, %v427_v7, %v428_v8  ;;  %v437_v18 = vrot.slane %v7711_v12, 2  ;;  %v7724_v20 = vld [vmem:[%s7675_s14 + $0x38] sm:$0x3]  ;;  %v7730_v22 = vld [vmem:[%s7675_s14 + $0x48] sm:$0xff]  ;;  %v441_v27 = vrot.slane %v7727_v21, 2  ;;  %v7750_v29 = vld [vmem:[%s7675_s14 + $0x50] sm:$0xff] }
  0x27   : > { %6378 = vmatprep.subr.msk.mxu0 %vm601_vm0, %v1404_v3  ;;  %v431_v17 = vsel %vm9868_vm2, %v428_v8, %v430_v11  ;;  %v433_v19 = vsel %vm9868_vm2, %v430_v11, %v432_v14  ;;  %v7741_v24 = vsel %vm9868_vm2, %v434_v15, %v435_v16  ;;  %v439_v25 = vrot.slane %v7724_v20, 2  ;;  %v7755_v30 = vld [vmem:[%s7675_s14 + $0x58] sm:$0x3]  ;;  %v7770_v35 = vld [vmem:[%s7675_s14 + $0x60] sm:$0xff]  ;;  %v7773_v36 = vld [vmem:[%s7675_s14 + $0x68] sm:$0xff]  ;;  %s7452_s25 = sshll.u32 %s7549_s24, 4  ;;  %s7453_s25 = int_to_ptr.vmem [resolvable:$false] %s7452_s25 }
  0x28   : > { %v7745_v26 = vsel %vm9868_vm2, %v435_v16, %v437_v18  ;;  %v442_v28 = vrot.slane %v7730_v22, 2  ;;  %v444_v32 = vrot.slane %v7750_v29, 2  ;;  %v446_v34 = vrot.slane %v7755_v30, 2  ;;  %9903 = vst [vmem:[#allocation6_spill] sm:$0xff] %v7770_v35  ;;  %9904 = vst [vmem:[#allocation7_spill] sm:$0xff] %v7773_v36  ;;  %v7776_v37 = vld [vmem:[%s7675_s14 + $0x70] sm:$0xff] }
  0x29   : > { %6290 = vmatmul.mubr.msk.f32.gmra.mrb[2].mxu0 %vm540_vm1, %v7694_v6  ;;  %v7762_v31 = vsel %vm9868_vm2, %v437_v18, %v439_v25  ;;  %9905 = vst [vmem:[#allocation8_spill] sm:$0xff] %v7776_v37  ;;  %v448_v39 = vrot.slane %v7770_v35, 2  ;;  %v449_v40 = vrot.slane %v7773_v36, 2  ;;  %v451_v42 = vrot.slane %v7776_v37, 2  ;;  %v7792_v43 = vld [vmem:[%s7675_s14 + $0x78] sm:$0x3] }
  0x2a   : > { %6292 = vmatprep.mubr.msk.f32.mxu0 %vm540_vm1, %v7699_v9  ;;  %v7766_v33 = vsel %vm9868_vm2, %v441_v27, %v442_v28  ;;  %v7783_v38 = vsel %vm9868_vm2, %v442_v28, %v444_v32  ;;  %v7788_v41 = vsel %vm9868_vm2, %v444_v32, %v446_v34  ;;  %v7795_v44 = vld [vmem:[%s7675_s14 + $0x80] sm:$0xff]  ;;  %v7798_v45 = vld [vmem:[%s7675_s14 + $0x88] sm:$0xff]  ;;  %v453_v47 = vrot.slane %v7792_v43, 2  ;;  %v7814_v51 = vld [vmem:[%s7675_s14 + $0x90] sm:$0xff]  ;;  %s7454_s20 = scalar_lea.vmem %s7453_s25, 128 }
  0x2b   : > { %9902 = vst [vmem:[#allocation5_spill] sm:$0xff] %v7766_v33  ;;  %9906 = vst [vmem:[#allocation9_spill] sm:$0xff] %v7783_v38  ;;  %v7805_v46 = vsel %vm9868_vm2, %v448_v39, %v449_v40  ;;  %v7809_v48 = vsel %vm9868_vm2, %v449_v40, %v451_v42  ;;  %v455_v49 = vrot.slane %v7795_v44, 2  ;;  %v456_v50 = vrot.slane %v7798_v45, 2  ;;  %v7817_v52 = vld [vmem:[%s7675_s14 + $0x98] sm:$0x3] }
  0x2c   : > { %9907 = vst [vmem:[#allocation10_spill] sm:$0xff] %v7788_v41  ;;  %9908 = vst [vmem:[#allocation11_spill] sm:$0xff] %v7798_v45  ;;  %v7824_v53 = vsel %vm9868_vm2, %v451_v42, %v453_v47  ;;  %v458_v54 = vrot.slane %v7814_v51, 2  ;;  %v460_v56 = vrot.slane %v7817_v52, 2  ;;  %v7832_v57 = vld [vmem:[%s7675_s14 + $0xa0] sm:$0xff]  ;;  %v7835_v58 = vld [vmem:[%s7675_s14 + $0xa8] sm:$0xff] }
  0x2d   : > { %6293 = vmatmul.mubr.msk.f32.gmra.mrb[4].mxu0 %vm540_vm1, %v7711_v12  ;;  %9909 = vst [vmem:[#allocation12_spill] sm:$0xff] %v7805_v46  ;;  %9910 = vst [vmem:[#allocation13_spill] sm:$0xff] %v7809_v48  ;;  %v7828_v55 = vsel %vm9868_vm2, %v455_v49, %v456_v50  ;;  %v7838_v59 = vld [vmem:[%s7675_s14 + $0xb0] sm:$0xff]  ;;  %v462_v61 = vrot.slane %v7832_v57, 2  ;;  %v463_v62 = vrot.slane %v7835_v58, 2  ;;  %v7857_v7 = vld [vmem:[%s7675_s14 + $0xc0] sm:$0xff] }
  0x2e   : > { %6333 = vmatprep.mubr.msk.f32.mxu0 %vm540_vm1, %v429_v13  ;;  %9911 = vst [vmem:[#allocation14_spill] sm:$0xff] %v7814_v51  ;;  %9912 = vst [vmem:[#allocation15_spill] sm:$0xff] %v7824_v53  ;;  %v7845_v60 = vsel %vm9868_vm2, %v456_v50, %v458_v54  ;;  %v7850_v63 = vsel %vm9868_vm2, %v458_v54, %v460_v56  ;;  %v465_v1 = vrot.slane %v7838_v59, 2  ;;  %v7860_v8 = vld [vmem:[%s7675_s14 + $0xc8] sm:$0xff]  ;;  %v469_v15 = vrot.slane %v7857_v7, 2  ;;  %v7894_v32 = vld [vmem:[%s7675_s14 + $0xe0] sm:$0xff] }
  0x2f   : > { %9913 = vst [vmem:[#allocation16_spill] sm:$0xff] %v7828_v55  ;;  %9914 = vst [vmem:[#allocation17_spill] sm:$0xff] %v7845_v60  ;;  %v7867_v11 = vsel %vm9868_vm2, %v462_v61, %v463_v62  ;;  %v470_v16 = vrot.slane %v7860_v8, 2  ;;  %v7879_v18 = vld [vmem:[%s7675_s14 + $0xd8] sm:$0x3]  ;;  %v7897_v34 = vld [vmem:[%s7675_s14 + $0xe8] sm:$0xff] }
  0x30   : > { %9915 = vst [vmem:[#allocation18_spill] sm:$0xff] %v7850_v63  ;;  %9916 = vst [vmem:[#allocation19_spill] sm:$0xff] %v7867_v11  ;;  %v7871_v14 = vsel %vm9868_vm2, %v463_v62, %v465_v1  ;;  %v474_v28 = vrot.slane %v7879_v18, 2  ;;  %v7900_v39 = vld [vmem:[%s7675_s14 + $0xf0] sm:$0xff]  ;;  %v476_v42 = vrot.slane %v7894_v32, 2  ;;  %v477_v47 = vrot.slane %v7897_v34, 2 }
  0x31   : > { %6334 = vmatmul.mubr.msk.f32.vlgmr.msra.gmra.mrb[0].mxu0 %vm540_vm1, %v431_v17  ;;  %9917 = vst [vmem:[#allocation20_spill] sm:$0xff] %v7871_v14  ;;  %v7876_v17 = vld [vmem:[%s7675_s14 + $0xd0] sm:$0xff]  ;;  %v7890_v27 = vsel %vm9868_vm2, %v469_v15, %v470_v16  ;;  %v479_v50 = vrot.slane %v7900_v39, 2  ;;  %v7916_v54 = vld [vmem:[%s7675_s14 + $0xf8] sm:$0x3]  ;;  %v7919_v56 = vld [vmem:[%s7675_s14 + $0x100] sm:$0xff] }
  0x32   : > { %6379 = vmatpush3.msk.msra.mxu0 %vm601_vm0, %v1404_v3  ;;  %6336 = vmatprep.mubr.msk.f32.mxu0 %vm540_vm1, %v433_v19  ;;  %v7854_v3 = vld [vmem:[%s7675_s14 + $0xb8] sm:$0x3]  ;;  %v472_v25 = vrot.slane %v7876_v17, 2  ;;  %9919 = vst [vmem:[#allocation22_spill] sm:$0xff] %v7890_v27  ;;  %v7922_v61 = vld [vmem:[%s7675_s14 + $0x108] sm:$0xff]  ;;  %v7929_v62 = vsel %vm9868_vm2, %v476_v42, %v477_v47  ;;  %v483_v15 = vrot.slane %v7919_v56, 2 }
  0x33   : > { %6425 = vmatprep.subr.msk.mxu0 %vm601_vm0, %v7735_v23  ;;  %v467_v13 = vrot.slane %v7854_v3, 2  ;;  %9922 = vst [vmem:[#allocation25_spill] sm:$0xff] %v7929_v62 }
  0x34   : > { %v7907_v40 = vsel %vm9868_vm2, %v470_v16, %v472_v25  ;;  %v7912_v49 = vsel %vm9868_vm2, %v472_v25, %v474_v28  ;;  %v484_v16 = vrot.slane %v7922_v61, 2  ;;  %v7938_v25 = vld [vmem:[%s7675_s14 + $0x110] sm:$0xff]  ;;  %v7941_v28 = vld [vmem:[%s7675_s14 + $0x118] sm:$0x3] }
  0x35   : > { %6337 = vmatmul.mubr.msk.f32.gmra.mrb[2].mxu0 %vm540_vm1, %v7741_v24  ;;  %v7886_v19 = vsel %vm9868_vm2, %v465_v1, %v467_v13  ;;  %9920 = vst [vmem:[#allocation23_spill] sm:$0xff] %v7907_v40  ;;  %9921 = vst [vmem:[#allocation24_spill] sm:$0xff] %v7912_v49  ;;  %v481_v1 = vrot.slane %v7916_v54, 2  ;;  %v7933_v13 = vsel %vm9868_vm2, %v477_v47, %v479_v50  ;;  %v486_v47 = vrot.slane %v7938_v25, 2 }
  0x36   : > { %6339 = vmatprep.mubr.msk.f32.mxu0 %vm540_vm1, %v7745_v26  ;;  %9918 = vst [vmem:[#allocation21_spill] sm:$0xff] %v7886_v19  ;;  %9923 = vst [vmem:[#allocation26_spill] sm:$0xff] %v7933_v13 }
  0x37   : > { %v7948_v42 = vsel %vm9868_vm2, %v479_v50, %v481_v1  ;;  %v7969_v50 = vsel %vm9868_vm2, %v484_v16, %v486_v47 }
  0x38   : > { %9924 = vst [vmem:[#allocation27_spill] sm:$0xff] %v7948_v42  ;;  %9926 = vst [vmem:[#allocation29_spill] sm:$0xff] %v7969_v50 }
  0x39   : > { %6340 = vmatmul.mubr.msk.f32.gmra.mrb[4].mxu0 %vm540_vm1, %v7762_v31 }
  0x3a   : > { %6342 = vmatprep.mubr.msk.f32.mxu0 %vm540_vm1, %v7766_v33 }
  0x3d   : > { %6343 = vmatmul.mubr.msk.f32.gmra.mrb[6].mxu0 %vm540_vm1, %v7783_v38 }
  0x3e   : > { %6345 = vmatprep.mubr.msk.f32.mxu0 %vm540_vm1, %v7788_v41 }
  0x41   : > { %6346 = vmatmul.mubr.msk.f32.gmra.mrb[8].mxu0 %vm540_vm1, %v7805_v46 }
  0x42   : > { %6348 = vmatprep.mubr.msk.f32.mxu0 %vm540_vm1, %v7809_v48 }
  0x45   : > { %6349 = vmatmul.mubr.msk.f32.gmra.mrb[10].mxu0 %vm540_vm1, %v7824_v53 }
  0x46   : > { %6351 = vmatprep.mubr.msk.f32.mxu0 %vm540_vm1, %v7828_v55 }
  0x49   : > { %6352 = vmatmul.mubr.msk.f32.gmra.mrb[12].mxu0 %vm540_vm1, %v7845_v60  ;;  %v357_v60 = vrot.slane %v7681_v4, 1  ;;  %v391_v4 = vrot.slane %v7832_v57, 1 }
  0x4a   : > { %6354 = vmatprep.mubr.msk.f32.mxu0 %vm540_vm1, %v7850_v63  ;;  %v378_v63 = vrot.slane %v7773_v36, 1 }
  0x4d   : > { %6355 = vmatmul.mubr.msk.f32.gmra.mrb[14].mxu0 %vm540_vm1, %v7867_v11  ;;  %v7978_v11 = vld [vmem:[%s7675_s14 + $0x138] sm:$0x3] }
  0x4e   : > { %6357 = vmatprep.mubr.msk.f32.mxu0 %vm540_vm1, %v7871_v14  ;;  %v7962_v14 = vld [vmem:[%s7675_s14 + $0x130] sm:$0xff] }
  0x51   : > { %6358 = vmatmul.mubr.msk.f32.gmra.mrb[16].mxu0 %vm540_vm1, %v7886_v19  ;;  %v7959_v19 = vld [vmem:[%s7675_s14 + $0x128] sm:$0xff] }
  0x52   : > { %6360 = vmatprep.mubr.msk.f32.mxu0 %vm540_vm1, %v7890_v27  ;;  %v7956_v27 = vld [vmem:[%s7675_s14 + $0x120] sm:$0xff] }
  0x53   : > { %v490_v1 = vrot.slane %v7956_v27, 2 }
  0x55   : > { %6361 = vmatmul.mubr.msk.f32.gmra.mrb[18].mxu0 %vm540_vm1, %v7907_v40  ;;  %v488_v40 = vrot.slane %v7941_v28, 2 }
  0x56   : > { %6363 = vmatprep.mubr.msk.f32.mxu0 %vm540_vm1, %v7912_v49  ;;  %v7952_v49 = vsel %vm9868_vm2, %v483_v15, %v484_v16  ;;  %v491_v15 = vrot.slane %v7959_v19, 2 }
  0x57   : > { %9925 = vst [vmem:[#allocation28_spill] sm:$0xff] %v7952_v49 }
  0x58   : > { %v7985_v16 = vsel %vm9868_vm2, %v490_v1, %v491_v15  ;;  %v8064_v1 = vld [vmem:[%s7675_s14 + $0x148] sm:$0xff] }
  0x59   : > { %6364 = vmatmul.mubr.msk.f32.gmra.mrb[20].mxu0 %vm540_vm1, %v7929_v62  ;;  %v493_v62 = vrot.slane %v7962_v14, 2  ;;  %9928 = vst [vmem:[#allocation31_spill] sm:$0xff] %v7985_v16 }
  0x5a   : > { %6366 = vmatprep.mubr.msk.f32.mxu0 %vm540_vm1, %v7933_v13  ;;  %v7974_v13 = vsel %vm9868_vm2, %v486_v47, %v488_v40  ;;  %v1912_v47 = vrot.slane %v7735_v23, 4 }
  0x5b   : > { %9927 = vst [vmem:[#allocation30_spill] sm:$0xff] %v7974_v13 }
  0x5d   : > { %6367 = vmatmul.mubr.msk.f32.gmra.mrb[22].mxu0 %vm540_vm1, %v7948_v42  ;;  %v7989_v42 = vsel %vm9868_vm2, %v491_v15, %v493_v62  ;;  %v366_v15 = vrot.slane %v7711_v12, 1 }
  0x5e   : > { %6369 = vmatprep.mubr.msk.f32.mxu0 %vm540_vm1, %v7952_v49  ;;  %v495_v49 = vrot.slane %v7978_v11, 2  ;;  %9929 = vst [vmem:[#allocation32_spill] sm:$0xff] %v7989_v42 }
  0x60   : > { %v7996_v40 = vsel %vm9868_vm2, %v493_v62, %v495_v49  ;;  %v363_v49 = vrot.slane %v7694_v6, 1  ;;  %v364_v62 = vrot.slane %v7699_v9, 1 }
  0x61   : > { %6370 = vmatmul.mubr.msk.f32.gmra.mrb[24].mxu0 %vm540_vm1, %v7969_v50  ;;  %9930 = vst [vmem:[#allocation33_spill] sm:$0xff] %v7996_v40  ;;  %v373_v50 = vrot.slane %v7750_v29, 1 }
  0x62   : > { %6372 = vmatprep.mubr.msk.f32.mxu0 %vm540_vm1, %v7974_v13 }
  0x65   : > { %6373 = vmatmul.mubr.msk.f32.gmra.mrb[26].mxu0 %vm540_vm1, %v7985_v16  ;;  %v368_v16 = vrot.slane %v7724_v20, 1 }
  0x66   : > { %6375 = vmatprep.mubr.msk.f32.mxu0 %vm540_vm1, %v7989_v42  ;;  %v365_v42 = vsel %vm355_vm3, %v363_v49, %v364_v62  ;;  %v8087_v49 = vld [vmem:[%s9809_s1 + $0x18] sm:$0xff] }
  0x67   : > { %v369_v13 = vsel %vm355_vm3, %v366_v15, %v368_v16 }
  0x69   : > { %6376 = vmatmul.mubr.msk.f32.gmra.mrb[28].mxu0 %vm540_vm1, %v7996_v40  ;;  %v8072_v40 = vld [vmem:[%s7675_s14 + $0x150] sm:$0xff] }
  0x6a   : > { %6380 = vmatprep.mubr.msk.f32.mxu0 %vm540_vm1, %v7694_v6  ;;  %v367_v6 = vsel %vm355_vm3, %v364_v62, %v366_v15  ;;  %v375_v62 = vrot.slane %v7755_v30, 1  ;;  %v377_v15 = vrot.slane %v7770_v35, 1  ;;  %v380_v30 = vrot.slane %v7776_v37, 1 }
  0x6d   : > { %6381 = vmatmul.mubr.msk.f32.vlgmr.msra.gmra.mrb[0].mxu0 %vm540_vm1, %v7699_v9  ;;  %v370_v9 = vrot.slane %v7727_v21, 1 }
  0x6e   : > { %6426 = vmatpush3.msk.msra.mxu0 %vm601_vm0, %v7735_v23  ;;  %6383 = vmatprep.mubr.msk.f32.mxu0 %vm540_vm1, %v7711_v12  ;;  %v8059_v23 = vld [vmem:[%s7675_s14 + $0x140] sm:$0xff]  ;;  %v371_v12 = vrot.slane %v7730_v22, 1 }
  0x6f   : > { %6472 = vmatprep.subr.msk.mxu0 %vm601_vm0, %v1912_v47 }
  0x70   : > { %v8093_v20 = vsel %vm355_vm3, %v370_v9, %v371_v12  ;;  %v8097_v16 = vsel %vm355_vm3, %v371_v12, %v373_v50  ;;  %v8112_v9 = vsel %vm355_vm3, %v377_v15, %v378_v63  ;;  %v382_v12 = vrot.slane %v7792_v43, 1 }
  0x71   : > { %6384 = vmatmul.mubr.msk.f32.gmra.mrb[2].mxu0 %vm540_vm1, %v7727_v21  ;;  %v385_v15 = vrot.slane %v7798_v45, 1  ;;  %v539_v43 = vrot.slane %v7659_v0, 4 }
  0x72   : > { %6386 = vmatprep.mubr.msk.f32.mxu0 %vm540_vm1, %v7730_v22 }
  0x73   : > { %6237 = vmatprep.subr.msk.mxu1 %vm601_vm0, %v539_v43 }
  0x74   : > { %6238 = vmatpush3.msk.msra.mxu1 %vm601_vm0, %v539_v43 }
  0x75   : > { %6387 = vmatmul.mubr.msk.f32.gmra.mrb[4].mxu0 %vm540_vm1, %v7750_v29  ;;  %6961 = vmatprep.subr.msk.mxu1 %vm601_vm0, %v7659_v0 }
  0x76   : > { %6389 = vmatprep.mubr.msk.f32.mxu0 %vm540_vm1, %v7770_v35  ;;  %v359_v35 = vrot.slane %v7684_v5, 1 }
  0x79   : > { %6390 = vmatmul.mubr.msk.f32.gmra.mrb[6].mxu0 %vm540_vm1, %v7773_v36  ;;  %v356_v36 = vrot.slane %v7678_v2, 1  ;;  %v387_v2 = vrot.slane %v7814_v51, 1 }
  0x7a   : > { %6392 = vmatprep.mubr.msk.f32.mxu0 %vm540_vm1, %v7776_v37  ;;  %v8127_v37 = vsel %vm355_vm3, %v380_v30, %v382_v12  ;;  %v360_v12 = vsel %vm355_vm3, %v357_v60, %v359_v35 }
  0x7d   : > { %6393 = vmatmul.mubr.msk.f32.gmra.mrb[8].mxu0 %vm540_vm1, %v7795_v44 }
  0x7e   : > { %6395 = vmatprep.mubr.msk.f32.mxu0 %vm540_vm1, %v7798_v45  ;;  %v392_v45 = vrot.slane %v7835_v58, 1 }
  0x81   : > { %6396 = vmatmul.mubr.msk.f32.gmra.mrb[10].mxu0 %vm540_vm1, %v7814_v51  ;;  %v8144_v51 = vsel %vm355_vm3, %v385_v15, %v387_v2 }
  0x82   : > { %6398 = vmatprep.mubr.msk.f32.mxu0 %vm540_vm1, %v7832_v57 }
  0x85   : > { %6399 = vmatmul.mubr.msk.f32.gmra.mrb[12].mxu0 %vm540_vm1, %v7835_v58 }
  0x86   : > { %6401 = vmatprep.mubr.msk.f32.mxu0 %vm540_vm1, %v7838_v59 }
  0x89   : > { %6402 = vmatmul.mubr.msk.f32.gmra.mrb[14].mxu0 %vm540_vm1, %v7857_v7 }
  0x8a   : > { %6404 = vmatprep.mubr.msk.f32.mxu0 %vm540_vm1, %v7860_v8 }
  0x8d   : > { %6405 = vmatmul.mubr.msk.f32.gmra.mrb[16].mxu0 %vm540_vm1, %v7876_v17 }
  0x8e   : > { %6407 = vmatprep.mubr.msk.f32.mxu0 %vm540_vm1, %v7894_v32 }
  0x91   : > { %6408 = vmatmul.mubr.msk.f32.gmra.mrb[18].mxu0 %vm540_vm1, %v7897_v34 }
  0x92   : > { %6410 = vmatprep.mubr.msk.f32.mxu0 %vm540_vm1, %v7900_v39 }
  0x95   : > { %6411 = vmatmul.mubr.msk.f32.gmra.mrb[20].mxu0 %vm540_vm1, %v7919_v56 }
  0x96   : > { %6413 = vmatprep.mubr.msk.f32.mxu0 %vm540_vm1, %v7922_v61 }
  0x99   : > { %6414 = vmatmul.mubr.msk.f32.gmra.mrb[22].mxu0 %vm540_vm1, %v7938_v25 }
  0x9a   : > { %6416 = vmatprep.mubr.msk.f32.mxu0 %vm540_vm1, %v7956_v27 }
  0x9d   : > { %6417 = vmatmul.mubr.msk.f32.gmra.mrb[24].mxu0 %vm540_vm1, %v7959_v19 }
  0x9e   : > { %6419 = vmatprep.mubr.msk.f32.mxu0 %vm540_vm1, %v7962_v14 }
  0xa1   : > { %6420 = vmatmul.mubr.msk.f32.gmra.mrb[26].mxu0 %vm540_vm1, %v8059_v23 }
  0xa2   : > { %6422 = vmatprep.mubr.msk.f32.mxu0 %vm540_vm1, %v8064_v1 }
  0xa5   : > { %6423 = vmatmul.mubr.msk.f32.gmra.mrb[28].mxu0 %vm540_vm1, %v8072_v40 }
  0xa6   : > { %6427 = vmatprep.mubr.msk.f32.mxu0 %vm540_vm1, %v365_v42 }
  0xa9   : > { %6428 = vmatmul.mubr.msk.f32.vlgmr.msra.gmra.mrb[0].mxu0 %vm540_vm1, %v367_v6 }
  0xaa   : > { %6473 = vmatpush3.msk.msra.mxu0 %vm601_vm0, %v1912_v47  ;;  %6430 = vmatprep.mubr.msk.f32.mxu0 %vm540_vm1, %v369_v13  ;;  %v8108_v47 = vsel %vm355_vm3, %v373_v50, %v375_v62  ;;  %v8122_v50 = vsel %vm355_vm3, %v378_v63, %v380_v30  ;;  %v384_v62 = vrot.slane %v7795_v44, 1  ;;  %v389_v63 = vrot.slane %v7817_v52, 1 }
  0xab   : > { %6519 = vmatprep.subr.msk.mxu0 %vm601_vm0, %v8087_v49  ;;  %v358_v30 = vsel %vm355_vm3, %v356_v36, %v357_v60  ;;  %v361_v52 = vrot.slane %v7703_v10, 1  ;;  %v394_v60 = vrot.slane %v7838_v59, 1  ;;  %v8166_v10 = vsel %vm355_vm3, %v391_v4, %v392_v45 }
  0xac   : > { %v8137_v5 = vsel %vm355_vm3, %v384_v62, %v385_v15  ;;  %6239 = vmatprep.mubr.msk.f32.mxu1 %vm540_vm1, %v358_v30  ;;  %v8161_v36 = vsel %vm355_vm3, %v387_v2, %v389_v63  ;;  %v396_v15 = vrot.slane %v7854_v3, 1  ;;  %v399_v2 = vrot.slane %v7860_v8, 1 }
  0xad   : > { %6431 = vmatmul.mubr.msk.f32.gmra.mrb[2].mxu0 %vm540_vm1, %v8093_v20  ;;  %6240 = vmatmul.mubr.msk.f32.vlgmr.msra.gmra.mrb[0].mxu1 %vm540_vm1, %v360_v12  ;;  %v362_v62 = vsel %vm355_vm3, %v359_v35, %v361_v52  ;;  %v398_v35 = vrot.slane %v7857_v7, 1  ;;  %v405_v63 = vrot.slane %v7894_v32, 1  ;;  %v408_v30 = vrot.slane %v7900_v39, 1 }
  0xae   : > { %6433 = vmatprep.mubr.msk.f32.mxu0 %vm540_vm1, %v8097_v16  ;;  %6962 = vmatpush3.msk.msra.mxu1 %vm601_vm0, %v7659_v0  ;;  %v8177_v0 = vsel %vm355_vm3, %v392_v45, %v394_v60  ;;  %v8182_v3 = vsel %vm355_vm3, %v394_v60, %v396_v15  ;;  %v410_v4 = vrot.slane %v7916_v54, 1  ;;  %v412_v60 = vrot.slane %v7919_v56, 1 }
  0xaf   : > { %6242 = vmatprep.mubr.msk.f32.mxu1 %vm540_vm1, %v362_v62  ;;  %v8193_v45 = vsel %vm355_vm3, %v398_v35, %v399_v2  ;;  %v413_v62 = vrot.slane %v7922_v61, 1  ;;  %v415_v15 = vrot.slane %v7938_v25, 1 }
  0xb0   : > { %v8231_v54 = vsel %vm355_vm3, %v408_v30, %v410_v4  ;;  %v424_v4 = vrot.slane %v7978_v11, 1  ;;  %v504_v11 = vrot.slane %v8072_v40, 1 }
  0xb1   : > { %6434 = vmatmul.mubr.msk.f32.gmra.mrb[4].mxu0 %vm540_vm1, %v8108_v47  ;;  %6243 = vmatmul.mubr.msk.f32.gmra.mrb[2].mxu1 %vm540_vm1, %v365_v42  ;;  %v401_v42 = vrot.slane %v7876_v17, 1  ;;  %v8243_v35 = vsel %vm355_vm3, %v412_v60, %v413_v62  ;;  %v501_v60 = vrot.slane %v8059_v23, 1 }
  0xb2   : > { %6436 = vmatprep.mubr.msk.f32.mxu0 %vm540_vm1, %v8112_v9  ;;  %6245 = vmatprep.mubr.msk.f32.mxu1 %vm540_vm1, %v367_v6  ;;  %v403_v6 = vrot.slane %v7879_v18, 1 }
  0xb3   : > { %v8197_v43 = vsel %vm355_vm3, %v399_v2, %v401_v42  ;;  %v417_v2 = vrot.slane %v7941_v28, 1 }
  0xb4   : > { %v8210_v18 = vsel %vm355_vm3, %v401_v42, %v403_v6  ;;  %v8247_v42 = vsel %vm355_vm3, %v413_v62, %v415_v15  ;;  %v419_v6 = vrot.slane %v7956_v27, 1  ;;  %v502_v62 = vrot.slane %v8064_v1, 1 }
  0xb5   : > { %6437 = vmatmul.mubr.msk.f32.gmra.mrb[6].mxu0 %vm540_vm1, %v8122_v50  ;;  %6246 = vmatmul.mubr.msk.f32.gmra.mrb[4].mxu1 %vm540_vm1, %v369_v13  ;;  %v406_v13 = vrot.slane %v7897_v34, 1  ;;  %v8260_v28 = vsel %vm355_vm3, %v415_v15, %v417_v2 }
  0xb6   : > { %6439 = vmatprep.mubr.msk.f32.mxu0 %vm540_vm1, %v8127_v37  ;;  %6248 = vmatprep.mubr.msk.f32.mxu1 %vm540_vm1, %v8093_v20 }
  0xb7   : > { %v8214_v12 = vsel %vm355_vm3, %v405_v63, %v406_v13  ;;  %v8226_v52 = vsel %vm355_vm3, %v406_v13, %v408_v30  ;;  %v420_v63 = vrot.slane %v7959_v19, 1  ;;  %v422_v13 = vrot.slane %v7962_v14, 1 }
  0xb9   : > { %6440 = vmatmul.mubr.msk.f32.gmra.mrb[8].mxu0 %vm540_vm1, %v8137_v5  ;;  %6249 = vmatmul.mubr.msk.f32.gmra.mrb[6].mxu1 %vm540_vm1, %v8097_v16  ;;  %v8264_v30 = vsel %vm355_vm3, %v419_v6, %v420_v63  ;;  %v8278_v15 = vsel %vm355_vm3, %v420_v63, %v422_v13  ;;  %v8282_v2 = vsel %vm355_vm3, %v422_v13, %v424_v4  ;;  %v8285_v6 = vld [vmem:[%s7675_s14 + $0x158] sm:$0x3] }
  0xba   : > { %6442 = vmatprep.mubr.msk.f32.mxu0 %vm540_vm1, %v8144_v51  ;;  %6251 = vmatprep.mubr.msk.f32.mxu1 %vm540_vm1, %v8108_v47  ;;  %v8296_v63 = vsel %vm355_vm3, %v501_v60, %v502_v62  ;;  %v506_v13 = vrot.slane %v8285_v6, 1  ;;  %v8300_v4 = vsel %vm355_vm3, %v502_v62, %v504_v11  ;;  %v9859_v62 = vrot.slane %v8087_v49, 4 }
  0xbc   : > { %v8311_v60 = vsel %vm355_vm3, %v504_v11, %v506_v13  ;;  %v9934_v11 = vld [vmem:[#allocation7_spill] sm:$0xff] }
  0xbd   : > { %6443 = vmatmul.mubr.msk.f32.gmra.mrb[10].mxu0 %vm540_vm1, %v8161_v36  ;;  %6252 = vmatmul.mubr.msk.f32.gmra.mrb[8].mxu1 %vm540_vm1, %v8112_v9  ;;  %v9935_v13 = vld [vmem:[#allocation19_spill] sm:$0xff] }
  0xbe   : > { %6445 = vmatprep.mubr.msk.f32.mxu0 %vm540_vm1, %v8166_v10  ;;  %6254 = vmatprep.mubr.msk.f32.mxu1 %vm540_vm1, %v8122_v50 }
  0xc1   : > { %6446 = vmatmul.mubr.msk.f32.gmra.mrb[12].mxu0 %vm540_vm1, %v8177_v0  ;;  %6255 = vmatmul.mubr.msk.f32.gmra.mrb[10].mxu1 %vm540_vm1, %v8127_v37 }
  0xc2   : > { %6448 = vmatprep.mubr.msk.f32.mxu0 %vm540_vm1, %v8182_v3  ;;  %6257 = vmatprep.mubr.msk.f32.mxu1 %vm540_vm1, %v8137_v5 }
  0xc5   : > { %6449 = vmatmul.mubr.msk.f32.gmra.mrb[14].mxu0 %vm540_vm1, %v8193_v45  ;;  %6258 = vmatmul.mubr.msk.f32.gmra.mrb[12].mxu1 %vm540_vm1, %v8144_v51 }
  0xc6   : > { %6451 = vmatprep.mubr.msk.f32.mxu0 %vm540_vm1, %v8197_v43  ;;  %6260 = vmatprep.mubr.msk.f32.mxu1 %vm540_vm1, %v8161_v36 }
  0xc9   : > { %6452 = vmatmul.mubr.msk.f32.gmra.mrb[16].mxu0 %vm540_vm1, %v8210_v18  ;;  %6261 = vmatmul.mubr.msk.f32.gmra.mrb[14].mxu1 %vm540_vm1, %v8166_v10 }
  0xca   : > { %6454 = vmatprep.mubr.msk.f32.mxu0 %vm540_vm1, %v8214_v12  ;;  %6263 = vmatprep.mubr.msk.f32.mxu1 %vm540_vm1, %v8177_v0 }
  0xcd   : > { %6455 = vmatmul.mubr.msk.f32.gmra.mrb[18].mxu0 %vm540_vm1, %v8226_v52  ;;  %6264 = vmatmul.mubr.msk.f32.gmra.mrb[16].mxu1 %vm540_vm1, %v8182_v3 }
  0xce   : > { %6457 = vmatprep.mubr.msk.f32.mxu0 %vm540_vm1, %v8231_v54  ;;  %6266 = vmatprep.mubr.msk.f32.mxu1 %vm540_vm1, %v8193_v45 }
  0xd1   : > { %6458 = vmatmul.mubr.msk.f32.gmra.mrb[20].mxu0 %vm540_vm1, %v8243_v35  ;;  %6267 = vmatmul.mubr.msk.f32.gmra.mrb[18].mxu1 %vm540_vm1, %v8197_v43 }
  0xd2   : > { %6460 = vmatprep.mubr.msk.f32.mxu0 %vm540_vm1, %v8247_v42  ;;  %6269 = vmatprep.mubr.msk.f32.mxu1 %vm540_vm1, %v8210_v18 }
  0xd5   : > { %6461 = vmatmul.mubr.msk.f32.gmra.mrb[22].mxu0 %vm540_vm1, %v8260_v28  ;;  %6270 = vmatmul.mubr.msk.f32.gmra.mrb[20].mxu1 %vm540_vm1, %v8214_v12 }
  0xd6   : > { %6463 = vmatprep.mubr.msk.f32.mxu0 %vm540_vm1, %v8264_v30  ;;  %6272 = vmatprep.mubr.msk.f32.mxu1 %vm540_vm1, %v8226_v52 }
  0xd9   : > { %6464 = vmatmul.mubr.msk.f32.gmra.mrb[24].mxu0 %vm540_vm1, %v8278_v15  ;;  %6273 = vmatmul.mubr.msk.f32.gmra.mrb[22].mxu1 %vm540_vm1, %v8231_v54 }
  0xda   : > { %6466 = vmatprep.mubr.msk.f32.mxu0 %vm540_vm1, %v8282_v2  ;;  %6275 = vmatprep.mubr.msk.f32.mxu1 %vm540_vm1, %v8243_v35 }
  0xdd   : > { %6467 = vmatmul.mubr.msk.f32.gmra.mrb[26].mxu0 %vm540_vm1, %v8296_v63  ;;  %6276 = vmatmul.mubr.msk.f32.gmra.mrb[24].mxu1 %vm540_vm1, %v8247_v42 }
  0xde   : > { %6469 = vmatprep.mubr.msk.f32.mxu0 %vm540_vm1, %v8300_v4  ;;  %6278 = vmatprep.mubr.msk.f32.mxu1 %vm540_vm1, %v8260_v28 }
  0xe1   : > { %6470 = vmatmul.mubr.msk.f32.gmra.mrb[28].mxu0 %vm540_vm1, %v8311_v60  ;;  %6279 = vmatmul.mubr.msk.f32.gmra.mrb[26].mxu1 %vm540_vm1, %v8264_v30 }
  0xe2   : > { %6474 = vmatprep.mubr.msk.f32.mxu0 %vm540_vm1, %v7741_v24  ;;  %6281 = vmatprep.mubr.msk.f32.mxu1 %vm540_vm1, %v8278_v15  ;;  %v9931_v24 = vld [vmem:[#allocation17_spill] sm:$0xff] }
  0xe5   : > { %6475 = vmatmul.mubr.msk.f32.vlgmr.msra.gmra.mrb[0].mxu0 %vm540_vm1, %v7745_v26  ;;  %6282 = vmatmul.mubr.msk.f32.gmra.mrb[28].mxu1 %vm540_vm1, %v8282_v2  ;;  %v9932_v26 = vld [vmem:[#allocation6_spill] sm:$0xff] }
  0xe6   : > { %6520 = vmatpush3.msk.msra.mxu0 %vm601_vm0, %v8087_v49  ;;  %6477 = vmatprep.mubr.msk.f32.mxu0 %vm540_vm1, %v7762_v31  ;;  %v9933_v31 = vld [vmem:[#allocation18_spill] sm:$0xff] }
  0xe7   : > { %6566 = vmatprep.subr.msk.mxu0 %vm601_vm0, %v9859_v62  ;;  %6295 = vmatprep.mubr.msk.f32.mxu1 %vm540_vm1, %v7727_v21  ;;  %v9936_v62 = vld [vmem:[#allocation8_spill] sm:$0xff] }
  0xe9   : > { %6478 = vmatmul.mubr.msk.f32.gmra.mrb[2].mxu0 %vm540_vm1, %v7766_v33  ;;  %6296 = vmatmul.mubr.msk.f32.vlgmr.msra.gmra.mrb[6].mxu1 %vm540_vm1, %v7730_v22  ;;  %v513_v33 = vrot.slane %v8285_v6, 2 }
  0xea   : > { %6480 = vmatprep.mubr.msk.f32.mxu0 %vm540_vm1, %v7783_v38  ;;  %6298 = vmatprep.mubr.msk.f32.mxu1 %vm540_vm1, %v7750_v29 }
  0xed   : > { %6481 = vmatmul.mubr.msk.f32.gmra.mrb[4].mxu0 %vm540_vm1, %v7788_v41  ;;  %6299 = vmatmul.mubr.msk.f32.gmra.mrb[8].mxu1 %vm540_vm1, %v9932_v26  ;;  %v511_v41 = vrot.slane %v8072_v40, 2 }
  0xee   : > { %6483 = vmatprep.mubr.msk.f32.mxu0 %vm540_vm1, %v7805_v46  ;;  %6301 = vmatprep.mubr.msk.f32.mxu1 %vm540_vm1, %v9934_v11  ;;  %v509_v46 = vrot.slane %v8064_v1, 2 }
  0xf1   : > { %6484 = vmatmul.mubr.msk.f32.gmra.mrb[6].mxu0 %vm540_vm1, %v7809_v48  ;;  %6302 = vmatmul.mubr.msk.f32.gmra.mrb[10].mxu1 %vm540_vm1, %v9936_v62  ;;  %v9941_v48 = vld [vmem:[#allocation14_spill] sm:$0xff] }
  0xf2   : > { %6486 = vmatprep.mubr.msk.f32.mxu0 %vm540_vm1, %v7824_v53  ;;  %6304 = vmatprep.mubr.msk.f32.mxu1 %vm540_vm1, %v7795_v44  ;;  %v9939_v53 = vld [vmem:[#allocation11_spill] sm:$0xff] }
  0xf5   : > { %6487 = vmatmul.mubr.msk.f32.gmra.mrb[8].mxu0 %vm540_vm1, %v7828_v55  ;;  %v9937_v55 = vld [vmem:[#allocation20_spill] sm:$0xff]  ;;  %6305 = vmatmul.mubr.msk.f32.gmra.mrb[12].mxu1 %vm540_vm1, %v9939_v53 }
  0xf6   : > { %6489 = vmatprep.mubr.msk.f32.mxu0 %vm540_vm1, %v9931_v24  ;;  %v9938_v24 = vld [vmem:[#allocation21_spill] sm:$0xff]  ;;  %6307 = vmatprep.mubr.msk.f32.mxu1 %vm540_vm1, %v9941_v48 }
  0xf9   : > { %6490 = vmatmul.mubr.msk.f32.gmra.mrb[10].mxu0 %vm540_vm1, %v9933_v31  ;;  %v9940_v31 = vld [vmem:[#allocation22_spill] sm:$0xff]  ;;  %6308 = vmatmul.mubr.msk.f32.gmra.mrb[14].mxu1 %vm540_vm1, %v7832_v57 }
  0xfa   : > { %6492 = vmatprep.mubr.msk.f32.mxu0 %vm540_vm1, %v9935_v13  ;;  %v9942_v13 = vld [vmem:[#allocation23_spill] sm:$0xff]  ;;  %6310 = vmatprep.mubr.msk.f32.mxu1 %vm540_vm1, %v7835_v58 }
  0xfd   : > { %6493 = vmatmul.mubr.msk.f32.gmra.mrb[12].mxu0 %vm540_vm1, %v9937_v55  ;;  %v9943_v55 = vld [vmem:[#allocation24_spill] sm:$0xff]  ;;  %6311 = vmatmul.mubr.msk.f32.gmra.mrb[16].mxu1 %vm540_vm1, %v7838_v59 }
  0xfe   : > { %6495 = vmatprep.mubr.msk.f32.mxu0 %vm540_vm1, %v9938_v24  ;;  %v9944_v24 = vld [vmem:[#allocation25_spill] sm:$0xff]  ;;  %6313 = vmatprep.mubr.msk.f32.mxu1 %vm540_vm1, %v7857_v7 }
 0x101   : > { %6496 = vmatmul.mubr.msk.f32.gmra.mrb[14].mxu0 %vm540_vm1, %v9940_v31  ;;  %v9945_v31 = vld [vmem:[#allocation26_spill] sm:$0xff]  ;;  %6314 = vmatmul.mubr.msk.f32.gmra.mrb[18].mxu1 %vm540_vm1, %v7860_v8 }
 0x102   : > { %6498 = vmatprep.mubr.msk.f32.mxu0 %vm540_vm1, %v9942_v13  ;;  %v9946_v13 = vld [vmem:[#allocation27_spill] sm:$0xff]  ;;  %6316 = vmatprep.mubr.msk.f32.mxu1 %vm540_vm1, %v7876_v17 }
 0x105   : > { %6499 = vmatmul.mubr.msk.f32.gmra.mrb[16].mxu0 %vm540_vm1, %v9943_v55  ;;  %v9947_v55 = vld [vmem:[#allocation28_spill] sm:$0xff]  ;;  %6317 = vmatmul.mubr.msk.f32.gmra.mrb[20].mxu1 %vm540_vm1, %v7894_v32 }
 0x106   : > { %6501 = vmatprep.mubr.msk.f32.mxu0 %vm540_vm1, %v9944_v24  ;;  %v9948_v24 = vld [vmem:[#allocation29_spill] sm:$0xff]  ;;  %6319 = vmatprep.mubr.msk.f32.mxu1 %vm540_vm1, %v7897_v34 }
 0x109   : > { %6502 = vmatmul.mubr.msk.f32.gmra.mrb[18].mxu0 %vm540_vm1, %v9945_v31  ;;  %v9949_v31 = vld [vmem:[#allocation30_spill] sm:$0xff]  ;;  %6320 = vmatmul.mubr.msk.f32.gmra.mrb[22].mxu1 %vm540_vm1, %v7900_v39 }
 0x10a   : > { %6504 = vmatprep.mubr.msk.f32.mxu0 %vm540_vm1, %v9946_v13  ;;  %v508_v13 = vrot.slane %v8059_v23, 2  ;;  %6322 = vmatprep.mubr.msk.f32.mxu1 %vm540_vm1, %v7919_v56 }
 0x10c   : > { %v8435_v38 = vsel %vm9868_vm2, %v508_v13, %v509_v46  ;;  %v8450_v13 = vsel %vm9868_vm2, %v511_v41, %v513_v33  ;;  %v9953_v33 = vrot.slane %v8087_v49, 4  ;;  %v9962_v49 = vld [vmem:[#allocation18_spill] sm:$0xff] }
 0x10d   : > { %6505 = vmatmul.mubr.msk.f32.gmra.mrb[20].mxu0 %vm540_vm1, %v9947_v55  ;;  %v9950_v55 = vld [vmem:[#allocation31_spill] sm:$0xff]  ;;  %6323 = vmatmul.mubr.msk.f32.gmra.mrb[24].mxu1 %vm540_vm1, %v7922_v61 }
 0x10e   : > { %6507 = vmatprep.mubr.msk.f32.mxu0 %vm540_vm1, %v9948_v24  ;;  %v9951_v24 = vld [vmem:[#allocation32_spill] sm:$0xff]  ;;  %6325 = vmatprep.mubr.msk.f32.mxu1 %vm540_vm1, %v7938_v25 }
 0x111   : > { %6508 = vmatmul.mubr.msk.f32.gmra.mrb[22].mxu0 %vm540_vm1, %v9949_v31  ;;  %v9952_v31 = vld [vmem:[#allocation33_spill] sm:$0xff]  ;;  %6326 = vmatmul.mubr.msk.f32.gmra.mrb[26].mxu1 %vm540_vm1, %v7956_v27 }
 0x112   : > { %6510 = vmatprep.mubr.msk.f32.mxu0 %vm540_vm1, %v9950_v55  ;;  %v8439_v55 = vsel %vm9868_vm2, %v509_v46, %v511_v41  ;;  %6328 = vmatprep.mubr.msk.f32.mxu1 %vm540_vm1, %v7959_v19  ;;  %v537_v46 = vld [vmem:[%s9809_s1 + $0x20] sm:$0xf] }
 0x113   : > { %v8537_v41 = vld [vmem:[%s9811_s3] sm:$0xff] }
 0x115   : > { %6511 = vmatmul.mubr.msk.f32.gmra.mrb[24].mxu0 %vm540_vm1, %v9951_v24  ;;  %6329 = vmatmul.mubr.msk.f32.gmra.mrb[28].mxu1 %vm540_vm1, %v7962_v14 }
 0x116   : > { %6513 = vmatprep.mubr.msk.f32.mxu0 %vm540_vm1, %v9952_v31 }
 0x119   : > { %6514 = vmatmul.mubr.msk.f32.gmra.mrb[26].mxu0 %vm540_vm1, %v8435_v38 }
 0x11a   : > { %6516 = vmatprep.mubr.msk.f32.mxu0 %vm540_vm1, %v8439_v55 }
 0x11d   : > { %6517 = vmatmul.mubr.msk.f32.gmra.mrb[28].mxu0 %vm540_vm1, %v8450_v13 }
 0x11e   : > { %6521 = vmatprep.mubr.msk.f32.mxu0 %vm540_vm1, %v7727_v21  ;;  %v8522_v21 = vld [vmem:[%s7675_s14 + $0x160] sm:$0xff] }
 0x121   : > { %6522 = vmatmul.mubr.msk.f32.vlgmr.msra.gmra.mrb[0].mxu0 %vm540_vm1, %v7730_v22  ;;  %v8525_v22 = vld [vmem:[%s7675_s14 + $0x168] sm:$0xff] }
 0x122   : > { %6567 = vmatpush3.msk.msra.mxu0 %vm601_vm0, %v9953_v33  ;;  %6524 = vmatprep.mubr.msk.f32.mxu0 %vm540_vm1, %v7750_v29  ;;  %v8532_v29 = vld [vmem:[%s7675_s14 + $0x170] sm:$0xff] }
 0x123   : > { %6613 = vmatprep.subr.msk.mxu0 %vm601_vm0, %v537_v46 }
 0x125   : > { %6525 = vmatmul.mubr.msk.f32.gmra.mrb[2].mxu0 %vm540_vm1, %v9932_v26 }
 0x126   : > { %6527 = vmatprep.mubr.msk.f32.mxu0 %vm540_vm1, %v9934_v11 }
 0x129   : > { %6528 = vmatmul.mubr.msk.f32.gmra.mrb[4].mxu0 %vm540_vm1, %v9936_v62 }
 0x12a   : > { %6530 = vmatprep.mubr.msk.f32.mxu0 %vm540_vm1, %v7795_v44  ;;  %v3411_v44 = vrot.slane %v8537_v41, 4 }
 0x12c   : > { %6660 = vmatprep.subr.msk.mxu1 %vm601_vm0, %v3411_v44 }
 0x12d   : > { %6531 = vmatmul.mubr.msk.f32.gmra.mrb[6].mxu0 %vm540_vm1, %v9939_v53  ;;  %6661 = vmatpush3.msk.msra.mxu1 %vm601_vm0, %v3411_v44  ;;  %v314_v53 = vld [vmem:[%s7675_s14 + $0x178] sm:$0x3]  ;;  %s7544_s14 = smov 4  }
 0x12e   : > { %6533 = vmatprep.mubr.msk.f32.mxu0 %vm540_vm1, %v9941_v48  ;;  %6686 = vmatprep.subr.msk.mxu1 %vm601_vm0, %v8537_v41  ;;  %v520_v48 = vrot.slane %v8525_v22, 1 }
 0x131   : > { %6534 = vmatmul.mubr.msk.f32.gmra.mrb[8].mxu0 %vm540_vm1, %v7832_v57 }
 0x132   : > { %6536 = vmatprep.mubr.msk.f32.mxu0 %vm540_vm1, %v7835_v58 }
 0x135   : > { %6537 = vmatmul.mubr.msk.f32.gmra.mrb[10].mxu0 %vm540_vm1, %v7838_v59 }
 0x136   : > { %6539 = vmatprep.mubr.msk.f32.mxu0 %vm540_vm1, %v7857_v7  ;;  %v524_v7 = vrot.slane %v314_v53, 1 }
 0x139   : > { %6540 = vmatmul.mubr.msk.f32.gmra.mrb[12].mxu0 %vm540_vm1, %v7860_v8 }
 0x13a   : > { %6542 = vmatprep.mubr.msk.f32.mxu0 %vm540_vm1, %v7876_v17 }
 0x13d   : > { %6543 = vmatmul.mubr.msk.f32.gmra.mrb[14].mxu0 %vm540_vm1, %v7894_v32 }
 0x13e   : > { %6545 = vmatprep.mubr.msk.f32.mxu0 %vm540_vm1, %v7897_v34  ;;  %v9954_v34 = vld [vmem:[#allocation5_spill] sm:$0xff] }
 0x141   : > { %6546 = vmatmul.mubr.msk.f32.gmra.mrb[16].mxu0 %vm540_vm1, %v7900_v39  ;;  %v9955_v39 = vld [vmem:[#allocation9_spill] sm:$0xff] }
 0x142   : > { %6548 = vmatprep.mubr.msk.f32.mxu0 %vm540_vm1, %v7919_v56  ;;  %v9956_v56 = vld [vmem:[#allocation10_spill] sm:$0xff] }
 0x145   : > { %6549 = vmatmul.mubr.msk.f32.gmra.mrb[18].mxu0 %vm540_vm1, %v7922_v61  ;;  %v9957_v61 = vld [vmem:[#allocation12_spill] sm:$0xff] }
 0x146   : > { %6551 = vmatprep.mubr.msk.f32.mxu0 %vm540_vm1, %v7938_v25  ;;  %v9958_v25 = vld [vmem:[#allocation13_spill] sm:$0xff] }
 0x149   : > { %6552 = vmatmul.mubr.msk.f32.gmra.mrb[20].mxu0 %vm540_vm1, %v7956_v27 }
 0x14a   : > { %6554 = vmatprep.mubr.msk.f32.mxu0 %vm540_vm1, %v7959_v19 }
 0x14d   : > { %6555 = vmatmul.mubr.msk.f32.gmra.mrb[22].mxu0 %vm540_vm1, %v7962_v14 }
 0x14e   : > { %6557 = vmatprep.mubr.msk.f32.mxu0 %vm540_vm1, %v8059_v23  ;;  %v9960_v23 = vld [vmem:[#allocation16_spill] sm:$0xff] }
 0x151   : > { %6558 = vmatmul.mubr.msk.f32.gmra.mrb[24].mxu0 %vm540_vm1, %v8064_v1  ;;  %v9961_v1 = vld [vmem:[#allocation17_spill] sm:$0xff] }
 0x152   : > { %6560 = vmatprep.mubr.msk.f32.mxu0 %vm540_vm1, %v8072_v40  ;;  %v9959_v40 = vld [vmem:[#allocation15_spill] sm:$0xff] }
 0x155   : > { %6561 = vmatmul.mubr.msk.f32.gmra.mrb[26].mxu0 %vm540_vm1, %v8522_v21 }
 0x156   : > { %6563 = vmatprep.mubr.msk.f32.mxu0 %vm540_vm1, %v8525_v22 }
 0x159   : > { %6564 = vmatmul.mubr.msk.f32.gmra.mrb[28].mxu0 %vm540_vm1, %v8532_v29 }
 0x15a   : > { %6568 = vmatprep.mubr.msk.f32.mxu0 %vm540_vm1, %v8093_v20  ;;  %v9963_v20 = vld [vmem:[#allocation19_spill] sm:$0xff] }
 0x15d   : > { %6569 = vmatmul.mubr.msk.f32.vlgmr.msra.gmra.mrb[0].mxu0 %vm540_vm1, %v8097_v16  ;;  %v9964_v16 = vld [vmem:[#allocation20_spill] sm:$0xff] }
 0x15e   : > { %6614 = vmatpush3.msk.msra.mxu0 %vm601_vm0, %v537_v46  ;;  %6571 = vmatprep.mubr.msk.f32.mxu0 %vm540_vm1, %v8108_v47  ;;  %v9965_v47 = vld [vmem:[#allocation21_spill] sm:$0xff] }
 0x161   : > { %6572 = vmatmul.mubr.msk.f32.gmra.mrb[2].mxu0 %vm540_vm1, %v8112_v9  ;;  %v9966_v9 = vld [vmem:[#allocation22_spill] sm:$0xff] }
 0x162   : > { %6574 = vmatprep.mubr.msk.f32.mxu0 %vm540_vm1, %v8122_v50  ;;  %v9967_v50 = vld [vmem:[#allocation23_spill] sm:$0xff] }
 0x165   : > { %6575 = vmatmul.mubr.msk.f32.gmra.mrb[4].mxu0 %vm540_vm1, %v8127_v37  ;;  %v519_v37 = vrot.slane %v8522_v21, 1 }
 0x166   : > { %6577 = vmatprep.mubr.msk.f32.mxu0 %vm540_vm1, %v8137_v5  ;;  %v9968_v5 = vld [vmem:[#allocation24_spill] sm:$0xff] }
 0x167   : > { %v521_v59 = vsel %vm355_vm3, %v519_v37, %v520_v48 }
 0x169   : > { %6578 = vmatmul.mubr.msk.f32.gmra.mrb[6].mxu0 %vm540_vm1, %v8144_v51  ;;  %v522_v51 = vrot.slane %v8532_v29, 1 }
 0x16a   : > { %6580 = vmatprep.mubr.msk.f32.mxu0 %vm540_vm1, %v8161_v36  ;;  %v9969_v36 = vld [vmem:[#allocation25_spill] sm:$0xff] }
 0x16b   : > { %v523_v8 = vsel %vm355_vm3, %v520_v48, %v522_v51  ;;  %v525_v19 = vsel %vm355_vm3, %v522_v51, %v524_v7 }
 0x16d   : > { %6581 = vmatmul.mubr.msk.f32.gmra.mrb[8].mxu0 %vm540_vm1, %v8166_v10  ;;  %v9970_v10 = vld [vmem:[#allocation26_spill] sm:$0xff] }
 0x16e   : > { %6583 = vmatprep.mubr.msk.f32.mxu0 %vm540_vm1, %v8177_v0  ;;  %v9971_v0 = vld [vmem:[#allocation27_spill] sm:$0xff] }
 0x171   : > { %6584 = vmatmul.mubr.msk.f32.gmra.mrb[10].mxu0 %vm540_vm1, %v8182_v3  ;;  %v9972_v3 = vld [vmem:[#allocation28_spill] sm:$0xff] }
 0x172   : > { %6586 = vmatprep.mubr.msk.f32.mxu0 %vm540_vm1, %v8193_v45  ;;  %v9973_v45 = vld [vmem:[#allocation29_spill] sm:$0xff] }
 0x175   : > { %6587 = vmatmul.mubr.msk.f32.gmra.mrb[12].mxu0 %vm540_vm1, %v8197_v43  ;;  %v9974_v43 = vld [vmem:[#allocation30_spill] sm:$0xff] }
 0x176   : > { %6589 = vmatprep.mubr.msk.f32.mxu0 %vm540_vm1, %v8210_v18  ;;  %v9975_v18 = vld [vmem:[#allocation31_spill] sm:$0xff] }
 0x179   : > { %6590 = vmatmul.mubr.msk.f32.gmra.mrb[14].mxu0 %vm540_vm1, %v8214_v12  ;;  %v526_v12 = vrot.slane %v8522_v21, 2 }
 0x17a   : > { %6592 = vmatprep.mubr.msk.f32.mxu0 %vm540_vm1, %v8226_v52  ;;  %v527_v52 = vrot.slane %v8525_v22, 2 }
 0x17d   : > { %6593 = vmatmul.mubr.msk.f32.gmra.mrb[16].mxu0 %vm540_vm1, %v8231_v54  ;;  %v529_v54 = vrot.slane %v8532_v29, 2 }
 0x17e   : > { %6595 = vmatprep.mubr.msk.f32.mxu0 %vm540_vm1, %v8243_v35 }
 0x180   : > { %v8601_v57 = vpop.f32.mrb[0].mxu1 }
 0x181   : > { %6596 = vmatmul.mubr.msk.f32.gmra.mrb[18].mxu0 %vm540_vm1, %v8247_v42  ;;  %v8603_v58 = vpop.f32.mrb[1].mxu1 }
 0x182   : > { %6598 = vmatprep.mubr.msk.f32.mxu0 %vm540_vm1, %v8260_v28  ;;  %v528_v28 = vsel %vm9868_vm2, %v526_v12, %v527_v52 }
 0x184   : > { %v8611_v14 = vpop.f32.mrb[2].mxu1 }
 0x185   : > { %6599 = vmatmul.mubr.msk.f32.gmra.mrb[20].mxu0 %vm540_vm1, %v8264_v30  ;;  %v8613_v17 = vpop.f32.mrb[3].mxu1  ;;  %v531_v30 = vrot.slane %v314_v53, 2 }
 0x186   : > { %6601 = vmatprep.mubr.msk.f32.mxu0 %vm540_vm1, %v8278_v15  ;;  %v530_v15 = vsel %vm9868_vm2, %v527_v52, %v529_v54 }
 0x187   : > { %v532_v6 = vsel %vm9868_vm2, %v529_v54, %v531_v30 }
 0x188   : > { %v8618_v27 = vpop.f32.mrb[4].mxu1 }
 0x189   : > { %6602 = vmatmul.mubr.msk.f32.gmra.mrb[22].mxu0 %vm540_vm1, %v8282_v2  ;;  %v8620_v32 = vpop.f32.mrb[5].mxu1 }
 0x18a   : > { %6604 = vmatprep.mubr.msk.f32.mxu0 %vm540_vm1, %v8296_v63 }
 0x18d   : > { %6605 = vmatmul.mubr.msk.f32.gmra.mrb[24].mxu0 %vm540_vm1, %v8300_v4 }
 0x18e   : > { %6607 = vmatprep.mubr.msk.f32.mxu0 %vm540_vm1, %v8311_v60 }
 0x191   : > { %6608 = vmatmul.mubr.msk.f32.gmra.mrb[26].mxu0 %vm540_vm1, %v521_v59  ;;  %v3005_v59 = vlaneseq }
 0x192   : > { %6610 = vmatprep.mubr.msk.f32.mxu0 %vm540_vm1, %v523_v8  ;;  %v8737_v8 = vstv %s5329_s12  ;;  %s5248_s12 = sshll.u32 %s258_s9, 4  ;;  %s9752_s12 = int_to_ptr.vmem [resolvable:$true] %s5248_s12 }
 0x193   : > { %v8735_v7 = vshrl.u32 %v3005_v59, 7  ;;  %vm3009_vm13 = vcmp.ge.s32.totalorder %v8737_v8, 1  ;;  %vm3019_vm14 = vcmp.lt.s32.totalorder %v8737_v8, 17  ;;  %s7448_s0 = scalar_lea.vmem %s9752_s12, 64  ;;  %p7455_p2 = scmp.lt.s32.totalorder %s9752_s12, %s7453_s25 }
 0x194   : > { %vm8778_vm15 = vmand %vm3009_vm13, %vm3019_vm14  ;;  %p7449_p13 = scmp.ne.s32.totalorder %s9752_s12, %s7448_s0  ;;  %p7456_p4 = scmp.lt.s32.totalorder %s7454_s20, %s7448_s0 }
 0x195   : > { %6611 = vmatmul.mubr.msk.f32.gmra.mrb[28].mxu0 %vm540_vm1, %v525_v19  ;;  %v8740_v19 = vadd.s32 16, %v8735_v7 }
 0x196   : > { %6615 = vmatprep.mubr.msk.f32.mxu0 %vm540_vm1, %v9954_v34  ;;  %v3003_v34 = vadd.s32 8, %v8737_v8  ;;  %p7450_p0 = pnand %p7449_p13, %p7636_p3  ;;  %p7457_p5 = por %p7456_p4, %p7455_p2 }
 0x197   : > { %vm3074_vm6 = vcmp.lt.s32.totalorder %v8740_v19, 17 }
 0x198   : > { %vm3017_vm4 = vcmp.ge.s32.totalorder %v3003_v34, 1  ;;  %vm3027_vm5 = vcmp.lt.s32.totalorder %v3003_v34, 17  ;;  %vm3077_vm14 = vmand %vm8778_vm15, %vm3074_vm6  ;;  %p7451_p1 = pneg %p7450_p0 }
 0x199   : > { %6616 = vmatmul.mubr.msk.f32.vlgmr.msra.gmra.mrb[0].mxu0 %vm540_vm1, %v9955_v39  ;;  %vm8744_vm7 = vmand %vm3017_vm4, %vm3027_vm5  ;;  %vm3039_vm4 = vcmp.ge.s32.totalorder %v8735_v7, 1 }
 0x19a   : > { %6618 = vmatprep.mubr.msk.f32.mxu0 %vm540_vm1, %v9956_v56  ;;  %v3004_v56 = vadd.s32 9, %v8737_v8  ;;  %vm8753_vm8 = vmand %vm8744_vm7, %vm3074_vm6  ;;  %p7458_p6 = pnand %p7457_p5, %p7451_p1 }
 0x19c   : > { %vm3018_vm9 = vcmp.ge.s32.totalorder %v3004_v56, 1  ;;  %vm3028_vm10 = vcmp.lt.s32.totalorder %v3004_v56, 17 }
 0x19d   : > { %6619 = vmatmul.mubr.msk.f32.gmra.mrb[2].mxu0 %vm540_vm1, %v9957_v61  ;;  %vm8757_vm11 = vmand %vm3018_vm9, %vm3028_vm10 }
 0x19e   : > { %6621 = vmatprep.mubr.msk.f32.mxu0 %vm540_vm1, %v9958_v25  ;;  %vm8765_vm12 = vmand %vm8757_vm11, %vm3074_vm6 }
 0x19f   : > { %vm3042_vm10 = vmand %vm8778_vm15, %vm3039_vm4 }
 0x1a1   : > { %6622 = vmatmul.mubr.msk.f32.gmra.mrb[4].mxu0 %vm540_vm1, %v9959_v40 }
 0x1a2   : > { %6624 = vmatprep.mubr.msk.f32.mxu0 %vm540_vm1, %v9960_v23 }
 0x1a5   : > { %6625 = vmatmul.mubr.msk.f32.gmra.mrb[6].mxu0 %vm540_vm1, %v9961_v1  ;;  %v8774_v1 = vld [vmem:[%s9810_s2] ss:$0 sm:$0xff] }
 0x1a6   : > { %6627 = vmatprep.mubr.msk.f32.mxu0 %vm540_vm1, %v9962_v49  ;;  %v2996_v49 = vadd.s32 1, %v8737_v8 }
 0x1a8   : > { %vm3010_vm5 = vcmp.ge.s32.totalorder %v2996_v49, 1  ;;  %vm3020_vm9 = vcmp.lt.s32.totalorder %v2996_v49, 17 }
 0x1a9   : > { %6628 = vmatmul.mubr.msk.f32.gmra.mrb[8].mxu0 %vm540_vm1, %v9963_v20  ;;  %vm8798_vm13 = vmand %vm3010_vm5, %vm3020_vm9 }
 0x1aa   : > { %6630 = vmatprep.mubr.msk.f32.mxu0 %vm540_vm1, %v9964_v16  ;;  %vm3045_vm5 = vmand %vm8798_vm13, %vm3039_vm4 }
 0x1ad   : > { %6631 = vmatmul.mubr.msk.f32.gmra.mrb[10].mxu0 %vm540_vm1, %v9965_v47 }
 0x1ae   : > { %6633 = vmatprep.mubr.msk.f32.mxu0 %vm540_vm1, %v9966_v9 }
 0x1b1   : > { %6634 = vmatmul.mubr.msk.f32.gmra.mrb[12].mxu0 %vm540_vm1, %v9967_v50 }
 0x1b2   : > { %6636 = vmatprep.mubr.msk.f32.mxu0 %vm540_vm1, %v9968_v5 }
 0x1b5   : > { %6637 = vmatmul.mubr.msk.f32.gmra.mrb[14].mxu0 %vm540_vm1, %v9969_v36 }
 0x1b6   : > { %6639 = vmatprep.mubr.msk.f32.mxu0 %vm540_vm1, %v9970_v10 }
 0x1b9   : > { %6640 = vmatmul.mubr.msk.f32.gmra.mrb[16].mxu0 %vm540_vm1, %v9971_v0 }
 0x1ba   : > { %6642 = vmatprep.mubr.msk.f32.mxu0 %vm540_vm1, %v9972_v3 }
 0x1bc   : > { %v8676_v35 = vpop.f32.mrb[6].mxu1 }
 0x1bd   : > { %6643 = vmatmul.mubr.msk.f32.gmra.mrb[18].mxu0 %vm540_vm1, %v9973_v45  ;;  %v8678_v42 = vpop.f32.mrb[7].mxu1  ;;  %v2997_v45 = vadd.s32 2, %v8737_v8 }
 0x1be   : > { %6645 = vmatprep.mubr.msk.f32.mxu0 %vm540_vm1, %v9974_v43 }
 0x1bf   : > { %vm3011_vm9 = vcmp.ge.s32.totalorder %v2997_v45, 1 }
 0x1c0   : > { %v8686_v2 = vpop.f32.mrb[8].mxu1 }
 0x1c1   : > { %6646 = vmatmul.mubr.msk.f32.gmra.mrb[20].mxu0 %vm540_vm1, %v9975_v18 }
 0x1c2   : > { %6648 = vmatprep.mubr.msk.f32.mxu0 %vm540_vm1, %v9951_v24 }
 0x1c5   : > { %6649 = vmatmul.mubr.msk.f32.gmra.mrb[22].mxu0 %vm540_vm1, %v9952_v31 }
 0x1c6   : > { %6651 = vmatprep.mubr.msk.f32.mxu0 %vm540_vm1, %v8435_v38  ;;  %v8688_v38 = vpop.f32.mrb[9].mxu1 }
 0x1c7   : > { %v8693_v63 = vpop.f32.mrb[10].mxu1 }
 0x1c9   : > { %6652 = vmatmul.mubr.msk.f32.gmra.mrb[24].mxu0 %vm540_vm1, %v8439_v55  ;;  %v8695_v55 = vpop.f32.mrb[11].mxu1 }
 0x1ca   : > { %6654 = vmatprep.mubr.msk.f32.mxu0 %vm540_vm1, %v8450_v13  ;;  %v8698_v4 = vpop.f32.mrb[12].mxu1 }
 0x1cb   : > { %v8700_v60 = vpop.f32.mrb[13].mxu1 }
 0x1cc   : > { %v8702_v62 = vpop.f32.mrb[14].mxu1 }
 0x1cd   : > { %6655 = vmatmul.mubr.msk.f32.gmra.mrb[26].mxu0 %vm540_vm1, %v528_v28  ;;  %v8704_v24 = vpop.f32.mrb[15].mxu1 }
 0x1ce   : > { %6657 = vmatprep.mubr.msk.f32.mxu0 %vm540_vm1, %v530_v15 }
 0x1d0   : > { %v8706_v26 = vpop.f32.mrb[16].mxu1 }
 0x1d1   : > { %6658 = vmatmul.mubr.msk.f32.gmra.mrb[28].mxu0 %vm540_vm1, %v532_v6  ;;  %v8708_v31 = vpop.f32.mrb[17].mxu1 }
 0x1d4   : > { %v8710_v11 = vpop.f32.mrb[18].mxu1 }
 0x1d5   : > { %v8712_v13 = vpop.f32.mrb[19].mxu1 }
 0x1d8   : > { %v8714_v46 = vpop.f32.mrb[20].mxu1 }
 0x1d9   : > { %v8716_v33 = vpop.f32.mrb[21].mxu1 }
 0x1dc   : > { %v8718_v21 = vpop.f32.mrb[22].mxu1 }
 0x1dd   : > { %v8720_v22 = vpop.f32.mrb[23].mxu1 }
 0x1e0   : > { %v8722_v29 = vpop.f32.mrb[24].mxu1 }
 0x1e1   : > { %v8724_v44 = vpop.f32.mrb[25].mxu1 }
 0x1e4   : > { %v8726_v37 = vpop.f32.mrb[26].mxu1 }
 0x1e5   : > { %v8728_v48 = vpop.f32.mrb[27].mxu1 }
 0x1e8   : > { %v8730_v51 = vpop.f32.mrb[28].mxu1 }
 0x1e9   : > { %v8732_v53 = vpop.f32.mrb[29].mxu1 }
 0x26c   : > { %v6617_v23 = vpop.f32.mrb[0].mxu0 }
 0x26d   : > { %v6963_v20 = vadd.f32 %v6617_v23, %v8601_v57  ;;  %v2749_v16 = vpop.f32.mrb[1].mxu0 }
 0x26e   : > { %v6964_v9 = vadd.f32 %v2749_v16, %v8603_v58 }
 0x26f   : > { %v2936_v50 = vadd.f32 %v6963_v20, %v8774_v1  ;;  %v2998_v20 = vadd.s32 3, %v8737_v8 }
 0x270   : > { %v2935_v5 = vadd.f32 %v6964_v9, %v8774_v1  ;;  %v6620_v36 = vpop.f32.mrb[2].mxu0 }
 0x271   : > { %v2966_v10 = vmax.f32 %v2936_v50, 0.0  ;;  %v6965_v57 = vadd.f32 %v6620_v36, %v8611_v14  ;;  %v2759_v0 = vpop.f32.mrb[3].mxu0 }
 0x272   : > { %v2965_v3 = vmax.f32 %v2935_v5, 0.0  ;;  %v6966_v58 = vadd.f32 %v2759_v0, %v8613_v17 }
 0x273   : > { %v8795_v43 = vsel %vm8778_vm15, %v2966_v10, 0.0  ;;  %v2938_v18 = vadd.f32 %v6965_v57, %v8774_v1  ;;  %vm3080_vm15 = vmand %vm8798_vm13, %vm3074_vm6 }
 0x274   : > { %v3300_v52 = vrot.slane %v8795_v43, 1  ;;  %v3340_v14 = vrot.slane %v8795_v43, 2  ;;  %v8804_v54 = vsel %vm3042_vm10, %v2965_v3, 0.0  ;;  %v2937_v17 = vadd.f32 %v6966_v58, %v8774_v1  ;;  %v6623_v28 = vpop.f32.mrb[4].mxu0 }
 0x275   : > { %v3299_v30 = vrot.slane %v8804_v54, 1  ;;  %v3339_v15 = vrot.slane %v8804_v54, 2  ;;  %v2968_v6 = vmax.f32 %v2938_v18, 0.0  ;;  %v2769_v59 = vpop.f32.mrb[5].mxu0  ;;  %v6967_v56 = vadd.f32 %v6623_v28, %v8618_v27 }
 0x276   : > { %v2967_v34 = vmax.f32 %v2937_v17, 0.0  ;;  %v6968_v23 = vadd.f32 %v2769_v59, %v8620_v32  ;;  %vm3021_vm10 = vcmp.lt.s32.totalorder %v2997_v45, 17  ;;  %v3219_v47 = vrot.slane %v2938_v18, 1 }
 0x277   : > { %v3301_v49 = vsel %vm355_vm3, %v3299_v30, %v3300_v52  ;;  %v8822_v16 = vsel %vm9868_vm2, %v3339_v15, %v3340_v14  ;;  %v2940_v50 = vadd.f32 %v6967_v56, %v8774_v1  ;;  %v8827_v27 = vsel %vm3045_vm5, %v2968_v6, 0.0  ;;  %v8842_v6 = vld [vmem:[%s9811_s3 + $0x8] sm:$0xff] }
 0x278   : > { %v3167_v9 = vsel %vm3077_vm14, %v2967_v34, 0.0  ;;  %v2939_v5 = vadd.f32 %v6968_v23, %v8774_v1  ;;  %v6626_v36 = vpop.f32.mrb[6].mxu0  ;;  %6662 = vmatprep.mubr.msk.f32.mxu1 %vm540_vm1, %v3301_v49  ;;  %vm8855_vm14 = vmand %vm3011_vm9, %vm3021_vm10  ;;  %vm3012_vm5 = vcmp.ge.s32.totalorder %v2998_v20, 1  ;;  %vm3022_vm9 = vcmp.lt.s32.totalorder %v2998_v20, 17 }
 0x279   : > { %v3302_v32 = vrot.slane %v3167_v9, 1  ;;  %v3342_v10 = vrot.slane %v3167_v9, 2  ;;  %v6969_v57 = vadd.f32 %v6626_v36, %v8676_v35  ;;  %v2779_v0 = vpop.f32.mrb[7].mxu0  ;;  %v2970_v3 = vmax.f32 %v2940_v50, 0.0  ;;  %vm3083_vm10 = vmand %vm8855_vm14, %vm3074_vm6 }
 0x27a   : > { %v3222_v58 = vrot.slane %v2940_v50, 1  ;;  %v2969_v18 = vmax.f32 %v2939_v5, 0.0  ;;  %v3220_v17 = vrot.slane %v2939_v5, 1  ;;  %v6970_v30 = vadd.f32 %v2779_v0, %v8678_v42 }
 0x27b   : > { %v8835_v28 = vadd.f32 %v6969_v57, %v8774_v1  ;;  %v3303_v15 = vsel %vm355_vm3, %v3300_v52, %v3302_v32  ;;  %v8845_v59 = vsel %vm9868_vm2, %v3340_v14, %v3342_v10  ;;  %v8847_v35 = vsel %vm3080_vm15, %v2970_v3, 0.0  ;;  %vm8913_vm15 = vmand %vm3012_vm5, %vm3022_vm9 }
 0x27c   : > { %v8851_v34 = vsel %vm8798_vm13, %v2969_v18, 0.0  ;;  %v6629_v52 = vpop.f32.mrb[8].mxu0  ;;  %6663 = vmatmul.mubr.msk.f32.vlgmr.msra.gmra.mrb[30].mxu1 %vm540_vm1, %v3303_v15  ;;  %v8861_v56 = vsel %vm355_vm3, %v3219_v47, %v3220_v17  ;;  %v8864_v14 = vsel %vm355_vm3, %v3220_v17, %v3222_v58  ;;  %v3307_v23 = vrot.slane %v8847_v35, 1  ;;  %vm3048_vm13 = vmand %vm8855_vm14, %vm3039_vm4 }
 0x27d   : > { %9990 = vst [vmem:[#allocation6_spill] sm:$0xff] %v8861_v56  ;;  %9991 = vst [vmem:[#allocation7_spill] sm:$0xff] %v8864_v14  ;;  %v2972_v12 = vmax.f32 %v8835_v28, 0.0  ;;  %v2789_v49 = vpop.f32.mrb[9].mxu0  ;;  %6687 = vmatpush3.msk.msra.mxu1 %vm601_vm0, %v8537_v41  ;;  %v8871_v45 = vadd.f32 %v6970_v30, %v8774_v1  ;;  %v6971_v9 = vadd.f32 %v6629_v52, %v8686_v2  ;;  %v3305_v47 = vrot.slane %v8851_v34, 1 }
 0x27e   : > { %v6972_v50 = vadd.f32 %v2789_v49, %v8688_v38  ;;  %6712 = vmatprep.subr.msk.mxu1 %vm601_vm0, %v8842_v6  ;;  %v3304_v41 = vrot.slane %v8827_v27, 1  ;;  %v2999_v32 = vadd.s32 4, %v8737_v8  ;;  %vm3086_vm5 = vmand %vm8913_vm15, %vm3074_vm6  ;;  %v10027_v40 = vrot.slane %v8835_v28, 1 }
 0x27f   : > { %v8880_v5 = vsel %vm8855_vm14, %v2972_v12, 0.0  ;;  %v2971_v2 = vmax.f32 %v8871_v45, 0.0  ;;  %v8893_v10 = vadd.f32 %v6971_v9, %v8774_v1  ;;  %v8904_v58 = vsel %vm355_vm3, %v3305_v47, %v3307_v23  ;;  %vm3051_vm9 = vmand %vm8913_vm15, %vm3039_vm4 }
 0x280   : > { %v8889_v38 = vadd.f32 %v6972_v50, %v8774_v1  ;;  %v6632_v36 = vpop.f32.mrb[10].mxu0  ;;  %v8901_v0 = vsel %vm355_vm3, %v3304_v41, %v3305_v47  ;;  %9993 = vst [vmem:[#allocation11_spill] sm:$0xff] %v8904_v58  ;;  %v3310_v30 = vrot.slane %v8880_v5, 1  ;;  %v9867_v23 = vrot.slane %v8835_v28, 1 }
 0x281   : > { %v6973_v57 = vadd.f32 %v6632_v36, %v8693_v63  ;;  %9992 = vst [vmem:[#allocation8_spill] sm:$0xff] %v8901_v0  ;;  %v2799_v3 = vpop.f32.mrb[11].mxu0  ;;  %v8906_v18 = vsel %vm3048_vm13, %v2971_v2, 0.0  ;;  %6665 = vmatprep.mubr.msk.f32.mxu1 %vm540_vm1, %v8901_v0  ;;  %vm3013_vm14 = vcmp.ge.s32.totalorder %v2999_v32, 1  ;;  %vm3023_vm13 = vcmp.lt.s32.totalorder %v2999_v32, 17 }
 0x282   : > { %v2973_v17 = vmax.f32 %v8889_v38, 0.0  ;;  %v6974_v42 = vadd.f32 %v2799_v3, %v8695_v55  ;;  %6666 = vmatmul.mubr.msk.f32.gmra.mrb[32].mxu1 %vm540_vm1, %v8904_v58  ;;  %v3309_v52 = vrot.slane %v8906_v18, 1  ;;  %v3224_v20 = vrot.slane %v8871_v45, 1 }
 0x283   : > { %v8918_v63 = vadd.f32 %v6973_v57, %v8774_v1  ;;  %v2974_v9 = vmax.f32 %v8893_v10, 0.0  ;;  %v3000_v57 = vadd.s32 5, %v8737_v8  ;;  %v10028_v25 = vrot.slane %v8842_v6, 4 }
 0x284   : > { %v8925_v12 = vsel %vm3083_vm10, %v2973_v17, 0.0  ;;  %v6635_v49 = vpop.f32.mrb[12].mxu0  ;;  %v8940_v41 = vadd.f32 %v6974_v42, %v8774_v1  ;;  %v8944_v2 = vsel %vm355_vm3, %v3309_v52, %v3310_v30  ;;  %vm8947_vm10 = vmand %vm3013_vm14, %vm3023_vm13 }
 0x285   : > { %v3312_v50 = vrot.slane %v8925_v12, 1  ;;  %v2976_v55 = vmax.f32 %v8918_v63, 0.0  ;;  %v2809_v47 = vpop.f32.mrb[13].mxu0  ;;  %v6975_v45 = vadd.f32 %v6635_v49, %v8698_v4  ;;  %9996 = vst [vmem:[#allocation14_spill] sm:$0xff] %v8944_v2  ;;  %6668 = vmatprep.mubr.msk.f32.mxu1 %vm540_vm1, %v8944_v2  ;;  %vm3054_vm14 = vmand %vm8947_vm10, %vm3039_vm4  ;;  %vm3024_vm13 = vcmp.lt.s32.totalorder %v3000_v57, 17 }
 0x286   : > { %v6976_v36 = vadd.f32 %v2809_v47, %v8700_v60  ;;  %v2975_v4 = vmax.f32 %v8940_v41, 0.0  ;;  %v8962_v60 = vsel %vm3051_vm9, %v2974_v9, 0.0 }
 0x287   : > { %v8955_v3 = vsel %vm355_vm3, %v3310_v30, %v3312_v50  ;;  %v8957_v17 = vsel %vm3086_vm5, %v2976_v55, 0.0  ;;  %v8965_v52 = vadd.f32 %v6975_v45, %v8774_v1  ;;  %v3001_v55 = vadd.s32 6, %v8737_v8  ;;  %vm3089_vm5 = vmand %vm8947_vm10, %vm3074_vm6 }
 0x288   : > { %9999 = vst [vmem:[#allocation32_spill] sm:$0xff] %v8955_v3  ;;  %10000 = vst [vmem:[#allocation33_spill] sm:$0xff] %v8957_v17  ;;  %v6638_v42 = vpop.f32.mrb[14].mxu0  ;;  %6669 = vmatmul.mubr.msk.f32.gmra.mrb[34].mxu1 %vm540_vm1, %v8955_v3  ;;  %v8968_v49 = vadd.f32 %v6976_v36, %v8774_v1  ;;  %v8973_v50 = vsel %vm8913_vm15, %v2975_v4, 0.0  ;;  %v8984_v45 = vsel %vm355_vm3, %v3224_v20, %v9867_v23  ;;  %vm3014_vm15 = vcmp.ge.s32.totalorder %v3000_v57, 1 }
 0x289   : > { %v6977_v47 = vadd.f32 %v6638_v42, %v8702_v62  ;;  %v2819_v30 = vpop.f32.mrb[15].mxu0  ;;  %10001 = vst [vmem:[#allocation5_spill] sm:$0xff] %v8984_v45  ;;  %v3317_v62 = vrot.slane %v8957_v17, 1  ;;  %v2978_v15 = vmax.f32 %v8965_v52, 0.0  ;;  %vm3015_vm9 = vcmp.ge.s32.totalorder %v3001_v55, 1  ;;  %vm9009_vm2 = vmand %vm3014_vm15, %vm3024_vm13 }
 0x28a   : > { %v6978_v9 = vadd.f32 %v2819_v30, %v8704_v24  ;;  %v2977_v36 = vmax.f32 %v8968_v49, 0.0  ;;  %v3314_v24 = vrot.slane %v8962_v60, 1  ;;  %v3315_v30 = vrot.slane %v8973_v50, 1  ;;  %vm9043_vm15 = vmand %vm9009_vm2, %vm3039_vm4 }
 0x28b   : > { %v8996_v20 = vsel %vm8947_vm10, %v2978_v15, 0.0  ;;  %v9001_v45 = vadd.f32 %v6977_v47, %v8774_v1  ;;  %vm3025_vm10 = vcmp.lt.s32.totalorder %v3001_v55, 17 }
 0x28c   : > { %v8990_v4 = vadd.f32 %v6978_v9, %v8774_v1  ;;  %v6641_v42 = vpop.f32.mrb[16].mxu0  ;;  %v8998_v23 = vsel %vm3054_vm14, %v2977_v36, 0.0  ;;  %v9017_v47 = vsel %vm355_vm3, %v3314_v24, %v3315_v30  ;;  %v9021_v32 = vsel %vm355_vm3, %v3315_v30, %v3317_v62  ;;  %vm3092_vm14 = vmand %vm9009_vm2, %vm3074_vm6 }
 0x28d   : > { %v6979_v57 = vadd.f32 %v6641_v42, %v8706_v26  ;;  %v2829_v9 = vpop.f32.mrb[17].mxu0  ;;  %10004 = vst [vmem:[#allocation9_spill] sm:$0xff] %v9017_v47  ;;  %10005 = vst [vmem:[#allocation10_spill] sm:$0xff] %v9021_v32  ;;  %6671 = vmatprep.mubr.msk.f32.mxu1 %vm540_vm1, %v9017_v47  ;;  %v3319_v3 = vrot.slane %v8998_v23, 1  ;;  %v2980_v2 = vmax.f32 %v9001_v45, 0.0  ;;  %v3002_v62 = vadd.s32 7, %v8737_v8 }
 0x28e   : > { %v2979_v14 = vmax.f32 %v8990_v4, 0.0  ;;  %v6980_v36 = vadd.f32 %v2829_v9, %v8708_v31  ;;  %6672 = vmatmul.mubr.msk.f32.gmra.mrb[36].mxu1 %vm540_vm1, %v9021_v32  ;;  %vm9057_vm13 = vmand %vm3015_vm9, %vm3025_vm10 }
 0x28f   : > { %v9014_v15 = vadd.f32 %v6979_v57, %v8774_v1  ;;  %v3320_v57 = vrot.slane %v8996_v20, 1  ;;  %vm3060_vm9 = vmand %vm9057_vm13, %vm3039_vm4  ;;  %vm3026_vm10 = vcmp.lt.s32.totalorder %v3002_v62, 17 }
 0x290   : > { %v9023_v26 = vsel %vm3089_vm5, %v2979_v14, 0.0  ;;  %v6644_v42 = vpop.f32.mrb[18].mxu0  ;;  %v9048_v9 = vadd.f32 %v6980_v36, %v8774_v1  ;;  %vm3016_vm5 = vcmp.ge.s32.totalorder %v3002_v62, 1 }
 0x291   : > { %10006 = vst [vmem:[#allocation12_spill] sm:$0xff] %v9023_v26  ;;  %v3322_v24 = vrot.slane %v9023_v26, 1  ;;  %v2982_v31 = vmax.f32 %v9014_v15, 0.0  ;;  %v2839_v14 = vpop.f32.mrb[19].mxu0  ;;  %v6981_v47 = vadd.f32 %v6644_v42, %v8710_v11  ;;  %v9052_v58 = vsel %vm355_vm3, %v3319_v3, %v3320_v57 }
 0x292   : > { %10009 = vst [vmem:[#allocation13_spill] sm:$0xff] %v9052_v58  ;;  %v6982_v32 = vadd.f32 %v2839_v14, %v8712_v13  ;;  %6674 = vmatprep.mubr.msk.f32.mxu1 %vm540_vm1, %v9052_v58  ;;  %v2981_v11 = vmax.f32 %v9048_v9, 0.0  ;;  %v3240_v61 = vrot.slane %v9048_v9, 1 }
 0x293   : > { %v9064_v0 = vsel %vm355_vm3, %v3320_v57, %v3322_v24  ;;  %v9066_v36 = vsel %vm3092_vm14, %v2982_v31, 0.0  ;;  %v9070_v42 = vadd.f32 %v6981_v47, %v8774_v1  ;;  %v9080_v57 = vsel %vm9043_vm15, %v2980_v2, 0.0  ;;  %vm9116_vm14 = vmand %vm3016_vm5, %vm3026_vm10 }
 0x294   : > { %10012 = vst [vmem:[#allocation15_spill] sm:$0xff] %v9064_v0  ;;  %10013 = vst [vmem:[#allocation16_spill] sm:$0xff] %v9066_v36  ;;  %v6647_v3 = vpop.f32.mrb[20].mxu0  ;;  %v9073_v13 = vadd.f32 %v6982_v32, %v8774_v1  ;;  %6675 = vmatmul.mubr.msk.f32.gmra.mrb[38].mxu1 %vm540_vm1, %v9064_v0  ;;  %v9084_v24 = vsel %vm9009_vm2, %v2981_v11, 0.0  ;;  %v3327_v47 = vrot.slane %v9066_v36, 1  ;;  %v3324_v0 = vrot.slane %v9080_v57, 1 }
 0x295   : > { %v6983_v55 = vadd.f32 %v6647_v3, %v8714_v46  ;;  %v2849_v14 = vpop.f32.mrb[21].mxu0  ;;  %v2984_v32 = vmax.f32 %v9070_v42, 0.0  ;;  %vm9104_vm2 = vmand %vm9057_vm13, %vm3074_vm6  ;;  %v3325_v11 = vrot.slane %v9084_v24, 1 }
 0x296   : > { %v6984_v46 = vadd.f32 %v2849_v14, %v8716_v33  ;;  %v2983_v31 = vmax.f32 %v9073_v13, 0.0  ;;  %vm9138_vm15 = vmand %vm9116_vm14, %vm3039_vm4 }
 0x297   : > { %v9095_v2 = vadd.f32 %v6983_v55, %v8774_v1  ;;  %v9111_v3 = vsel %vm9057_vm13, %v2984_v32, 0.0  ;;  %v9127_v8 = vsel %vm355_vm3, %v3324_v0, %v3325_v11  ;;  %v9131_v62 = vsel %vm355_vm3, %v3325_v11, %v3327_v47  ;;  %vm3098_vm13 = vmand %vm9116_vm14, %vm3074_vm6 }
 0x298   : > { %v9098_v56 = vadd.f32 %v6984_v46, %v8774_v1  ;;  %v6650_v33 = vpop.f32.mrb[22].mxu0  ;;  %v9113_v55 = vsel %vm3060_vm9, %v2983_v31, 0.0  ;;  %10018 = vst [vmem:[#allocation17_spill] sm:$0xff] %v9127_v8  ;;  %10019 = vst [vmem:[#allocation18_spill] sm:$0xff] %v9131_v62  ;;  %6677 = vmatprep.mubr.msk.f32.mxu1 %vm540_vm1, %v9127_v8 }
 0x299   : > { %v6985_v46 = vadd.f32 %v6650_v33, %v8718_v21  ;;  %v2859_v58 = vpop.f32.mrb[23].mxu0  ;;  %v2986_v31 = vmax.f32 %v9095_v2, 0.0  ;;  %v3329_v0 = vrot.slane %v9113_v55, 1  ;;  %6678 = vmatmul.mubr.msk.f32.gmra.mrb[40].mxu1 %vm540_vm1, %v9131_v62  ;;  %vm3066_vm6 = vmand %vm8744_vm7, %vm3039_vm4 }
 0x29a   : > { %v2985_v36 = vmax.f32 %v9098_v56, 0.0  ;;  %v6986_v32 = vadd.f32 %v2859_v58, %v8720_v22  ;;  %v3330_v58 = vrot.slane %v9111_v3, 1 }
 0x29b   : > { %v9124_v26 = vadd.f32 %v6985_v46, %v8774_v1  ;;  %v9173_v62 = vsel %vm9138_vm15, %v2986_v31, 0.0 }
 0x29c   : > { %v9144_v33 = vsel %vm9104_vm2, %v2985_v36, 0.0  ;;  %v6653_v22 = vpop.f32.mrb[24].mxu0  ;;  %v9159_v30 = vadd.f32 %v6986_v32, %v8774_v1  ;;  %v9163_v8 = vsel %vm355_vm3, %v3329_v0, %v3330_v58 }
 0x29d   : > { %10022 = vst [vmem:[#allocation19_spill] sm:$0xff] %v9144_v33  ;;  %v3332_v47 = vrot.slane %v9144_v33, 1  ;;  %v2988_v11 = vmax.f32 %v9124_v26, 0.0  ;;  %v2869_v36 = vpop.f32.mrb[25].mxu0  ;;  %v6987_v46 = vadd.f32 %v6653_v22, %v8722_v29  ;;  %10023 = vst [vmem:[#allocation20_spill] sm:$0xff] %v9163_v8  ;;  %6680 = vmatprep.mubr.msk.f32.mxu1 %vm540_vm1, %v9163_v8  ;;  %v3252_v9 = vrot.slane %v9124_v26, 1 }
 0x29e   : > { %v6988_v33 = vadd.f32 %v2869_v36, %v8724_v44  ;;  %v2987_v32 = vmax.f32 %v9159_v30, 0.0 }
 0x29f   : > { %v9169_v19 = vsel %vm355_vm3, %v3330_v58, %v3332_v47  ;;  %v9175_v17 = vsel %vm3098_vm13, %v2988_v11, 0.0  ;;  %v9179_v22 = vadd.f32 %v6987_v46, %v8774_v1  ;;  %v3334_v11 = vrot.slane %v9173_v62, 1 }
 0x2a0   : > { %10024 = vst [vmem:[#allocation21_spill] sm:$0xff] %v9169_v19  ;;  %10025 = vst [vmem:[#allocation22_spill] sm:$0xff] %v9175_v17  ;;  %v6656_v29 = vpop.f32.mrb[26].mxu0  ;;  %v9182_v44 = vadd.f32 %v6988_v33, %v8774_v1  ;;  %6681 = vmatmul.mubr.msk.f32.gmra.mrb[42].mxu1 %vm540_vm1, %v9169_v19  ;;  %v9189_v31 = vsel %vm9116_vm14, %v2987_v32, 0.0  ;;  %v3337_v47 = vrot.slane %v9175_v17, 1  ;;  %v3229_v32 = vrot.slane %v8893_v10, 1 }
 0x2a1   : > { %v6989_v0 = vadd.f32 %v6656_v29, %v8726_v37  ;;  %v2879_v58 = vpop.f32.mrb[27].mxu0  ;;  %v3335_v14 = vrot.slane %v9189_v31, 1 }
 0x2a2   : > { %v6990_v21 = vadd.f32 %v2879_v58, %v8728_v48  ;;  %v2989_v33 = vmax.f32 %v9182_v44, 0.0  ;;  %v3227_v48 = vrot.slane %v8889_v38, 1  ;;  %v3232_v58 = vrot.slane %v8918_v63, 1 }
 0x2a3   : > { %v2962_v37 = vadd.f32 %v6989_v0, %v8774_v1  ;;  %v3230_v0 = vrot.slane %v8940_v41, 1  ;;  %v9213_v10 = vsel %vm355_vm3, %v3334_v11, %v3335_v14  ;;  %v2990_v38 = vmax.f32 %v9179_v22, 0.0 }
 0x2a4   : > { %v9198_v46 = vadd.f32 %v6990_v21, %v8774_v1  ;;  %v6659_v29 = vpop.f32.mrb[28].mxu0  ;;  %v3235_v21 = vrot.slane %v8965_v52, 1  ;;  %10026 = vst [vmem:[#allocation23_spill] sm:$0xff] %v9213_v10  ;;  %6683 = vmatprep.mubr.msk.f32.mxu1 %vm540_vm1, %v9213_v10  ;;  %v3234_v41 = vrot.slane %v8968_v49, 1  ;;  %v3239_v52 = vrot.slane %v9001_v45, 1 }
 0x2a5   : > { %v6991_v19 = vadd.f32 %v6659_v29, %v8730_v51  ;;  %v2889_v8 = vpop.f32.mrb[29].mxu0  ;;  %v9221_v29 = vsel %vm355_vm3, %v3335_v14, %v3337_v47  ;;  %v3237_v10 = vrot.slane %v8990_v4, 1  ;;  %v2992_v17 = vmax.f32 %v2962_v37, 0.0 }
 0x2a6   : > { %v2991_v36 = vmax.f32 %v9198_v46, 0.0  ;;  %v6992_v51 = vadd.f32 %v2889_v8, %v8732_v53  ;;  %6684 = vmatmul.mubr.msk.f32.gmra.mrb[44].mxu1 %vm540_vm1, %v9221_v29  ;;  %v3242_v49 = vrot.slane %v9014_v15, 1  ;;  %v3245_v45 = vrot.slane %v9070_v42, 1 }
 0x2a7   : > { %v2964_v63 = vadd.f32 %v6991_v19, %v8774_v1  ;;  %v9231_v19 = vsel %vm3066_vm6, %v2989_v33, 0.0  ;;  %6688 = vmatprep.mubr.msk.f32.mxu1 %vm540_vm1, %v8804_v54  ;;  %v3244_v47 = vrot.slane %v9073_v13, 1  ;;  %v3249_v4 = vrot.slane %v9095_v2, 1 }
 0x2a8   : > { %v9227_v11 = vsel %vm8753_vm8, %v2991_v36, 0.0  ;;  %v2963_v8 = vadd.f32 %v6992_v51, %v8774_v1  ;;  %vm3069_vm8 = vmand %vm8757_vm11, %vm3039_vm4  ;;  %v9250_v54 = vsel %vm8744_vm7, %v2990_v38, 0.0  ;;  %v3247_v15 = vrot.slane %v9098_v56, 1 }
 0x2a9   : > { %v2994_v53 = vmax.f32 %v2964_v63, 0.0  ;;  %v9260_v7 = vsel %vm3069_vm8, %v2992_v17, 0.0  ;;  %v9269_v26 = vsel %vm355_vm3, %v10027_v40, %v3227_v48  ;;  %v9272_v2 = vsel %vm355_vm3, %v3229_v32, %v3230_v0 }
 0x2aa   : > { %v2993_v36 = vmax.f32 %v2963_v8, 0.0  ;;  %6689 = vmatmul.mubr.msk.f32.vlgmr.msra.gmra.mrb[30].mxu1 %vm540_vm1, %v8795_v43  ;;  %v3250_v43 = vrot.slane %v9159_v30, 1  ;;  %v3255_v56 = vrot.slane %v9179_v22, 1  ;;  %v3254_v33 = vrot.slane %v9182_v44, 1 }
 0x2ab   : > { %v3194_v1 = vsel %vm8765_vm12, %v2994_v53, 0.0  ;;  %6713 = vmatpush3.msk.msra.mxu1 %vm601_vm0, %v8842_v6  ;;  %6691 = vmatprep.mubr.msk.f32.mxu1 %vm540_vm1, %v8827_v27  ;;  %v3257_v17 = vrot.slane %v9198_v46, 1  ;;  %v3395_v28 = vrot.slane %v9260_v7, 1  ;;  %v3400_v37 = vrot.slane %v9260_v7, 2 }
 0x2ac   : > { %v3398_v42 = vrot.slane %v3194_v1, 1  ;;  %v3403_v13 = vrot.slane %v3194_v1, 2  ;;  %v9264_v39 = vsel %vm8757_vm11, %v2993_v36, 0.0  ;;  %6738 = vmatprep.subr.msk.mxu1 %vm601_vm0, %v10028_v25  ;;  %v9288_v30 = vsel %vm355_vm3, %v3230_v0, %v3232_v58 }
 0x2ad   : > { %v3396_v14 = vrot.slane %v9264_v39, 1  ;;  %v3401_v32 = vrot.slane %v9264_v39, 2  ;;  %v9291_v22 = vsel %vm355_vm3, %v3234_v41, %v3235_v21  ;;  %v9294_v44 = vsel %vm355_vm3, %v3235_v21, %v3237_v10 }
 0x2ae   : > { %6692 = vmatmul.mubr.msk.f32.gmra.mrb[32].mxu1 %vm540_vm1, %v8851_v34  ;;  %v9297_v46 = vsel %vm355_vm3, %v3239_v52, %v3240_v61  ;;  %vm10029_vm7 = vcmask 1045504   ;;  %v9314_v21 = vsel %vm355_vm3, %v3240_v61, %v3242_v49  ;;  %v9317_v10 = vsel %vm355_vm3, %v3244_v47, %v3245_v45 }
 0x2af   : > { %6694 = vmatprep.mubr.msk.f32.mxu1 %vm540_vm1, %v8906_v18  ;;  %v9302_v48 = vsel %vm355_vm3, %v3395_v28, %v3396_v14  ;;  %v9305_v38 = vsel %vm355_vm3, %v3396_v14, %v3398_v42  ;;  %v9308_v58 = vsel %vm10029_vm7, %v3400_v37, %v3401_v32  ;;  %vm10030_vm11 = vmmov %vm10029_vm7  ;;  %v9320_v63 = vsel %vm355_vm3, %v3245_v45, %v3247_v15  ;;  %v9364_v45 = vld [vmem:[%s9811_s3 + $0x10] sm:$0xff]  ;;  %v10044_v14 = vld [vmem:[#allocation16_spill] sm:$0xff] }
 0x2b0   : > { %v9311_v0 = vsel %vm10030_vm11, %v3401_v32, %v3403_v13  ;;  %v9323_v51 = vsel %vm355_vm3, %v3249_v4, %v3250_v43  ;;  %v9326_v41 = vsel %vm355_vm3, %v3250_v43, %v3252_v9  ;;  %v9329_v52 = vsel %vm355_vm3, %v3254_v33, %v3255_v56  ;;  %vm10034_vm12 = vmmov %vm10029_vm7  ;;  %v10038_v9 = vld [vmem:[#allocation33_spill] sm:$0xff] }
 0x2b1   : > { %10031 = vst [vmem:[#allocation24_spill] sm:$0xff] %v9326_v41  ;;  %10032 = vst [vmem:[#allocation25_spill] sm:$0xff] %v9329_v52  ;;  %v9332_v53 = vsel %vm355_vm3, %v3255_v56, %v3257_v17  ;;  %v3345_v8 = vrot.slane %v8851_v34, 2  ;;  %v3344_v49 = vrot.slane %v8827_v27, 2  ;;  %v3347_v61 = vrot.slane %v8847_v35, 2  ;;  %v10041_v56 = vld [vmem:[#allocation12_spill] sm:$0xff] }
 0x2b2   : > { %10033 = vst [vmem:[#allocation26_spill] sm:$0xff] %v9332_v53  ;;  %6695 = vmatmul.mubr.msk.f32.gmra.mrb[34].mxu1 %vm540_vm1, %v8880_v5  ;;  %v3349_v4 = vrot.slane %v8906_v18, 2  ;;  %v3350_v1 = vrot.slane %v8880_v5, 2  ;;  %v3352_v35 = vrot.slane %v8925_v12, 2  ;;  %vm10036_vm4 = vmmov %vm10029_vm7  ;;  %v3355_v6 = vrot.slane %v8973_v50, 2 }
 0x2b3   : > { %6697 = vmatprep.mubr.msk.f32.mxu1 %vm540_vm1, %v8962_v60  ;;  %v9369_v47 = vsel %vm10034_vm12, %v3344_v49, %v3345_v8  ;;  %vm10037_vm5 = vmmov %vm10036_vm4  ;;  %v3354_v15 = vrot.slane %v8962_v60, 2  ;;  %v3357_v42 = vrot.slane %v10038_v9, 2  ;;  %v3359_v40 = vrot.slane %v8998_v23, 2 }
 0x2b4   : > { %v9387_v36 = vsel %vm10037_vm5, %v3349_v4, %v3350_v1  ;;  %vm10039_vm9 = vmmov %vm10036_vm4  ;;  %v3360_v43 = vrot.slane %v8996_v20, 2  ;;  %v3362_v33 = vrot.slane %v10041_v56, 2  ;;  %v3365_v28 = vrot.slane %v9084_v24, 2 }
 0x2b5   : > { %v9395_v12 = vsel %vm10039_vm9, %v3350_v1, %v3352_v35  ;;  %vm10040_vm10 = vmmov %vm10036_vm4  ;;  %v3364_v37 = vrot.slane %v9080_v57, 2  ;;  %v3367_v32 = vrot.slane %v10044_v14, 2  ;;  %v3370_v4 = vrot.slane %v9111_v3, 2  ;;  %v10047_v1 = vld [vmem:[#allocation19_spill] sm:$0xff]  ;;  %v10057_v14 = vld [vmem:[#allocation32_spill] sm:$0xff] }
 0x2b6   : > { %6698 = vmatmul.mubr.msk.f32.gmra.mrb[36].mxu1 %vm540_vm1, %v8973_v50  ;;  %v9400_v13 = vsel %vm10040_vm10, %v3354_v15, %v3355_v6  ;;  %vm10042_vm2 = vmmov %vm10036_vm4  ;;  %v3375_v15 = vrot.slane %v9189_v31, 2  ;;  %v3374_v9 = vrot.slane %v9173_v62, 2 }
 0x2b7   : > { %6700 = vmatprep.mubr.msk.f32.mxu1 %vm540_vm1, %v8998_v23  ;;  %v9408_v17 = vsel %vm10042_vm2, %v3355_v6, %v3357_v42  ;;  %vm10043_vm14 = vmmov %vm10042_vm2  ;;  %v10050_v42 = vld [vmem:[#allocation22_spill] sm:$0xff] }
 0x2b8   : > { %vm10045_vm15 = vmmov %vm10042_vm2 }
 0x2b9   : > { %vm10046_vm13 = vmmov %vm10042_vm2 }
 0x2ba   : > { %6701 = vmatmul.mubr.msk.f32.gmra.mrb[38].mxu1 %vm540_vm1, %v8996_v20  ;;  %v9426_v49 = vsel %vm10046_vm13, %v3364_v37, %v3365_v28  ;;  %vm10048_vm6 = vmmov %vm10042_vm2  ;;  %v10056_v37 = vld [vmem:[#allocation14_spill] sm:$0xff] }
 0x2bb   : > { %6703 = vmatprep.mubr.msk.f32.mxu1 %vm540_vm1, %v9080_v57  ;;  %v9434_v35 = vsel %vm10048_vm6, %v3365_v28, %v3367_v32  ;;  %vm10049_vm8 = vmmov %vm10042_vm2  ;;  %v4302_v28 = vrot.slane %v9364_v45, 4  ;;  %v10058_v32 = vld [vmem:[#allocation9_spill] sm:$0xff] }
 0x2bc   : > { %vm10051_vm7 = vmmov %vm10042_vm2 }
 0x2bd   : > { %vm10052_vm11 = vmmov %vm10042_vm2 }
 0x2be   : > { %6704 = vmatmul.mubr.msk.f32.gmra.mrb[40].mxu1 %vm540_vm1, %v9084_v24  ;;  %v9452_v56 = vsel %vm10052_vm11, %v3374_v9, %v3375_v15  ;;  %vm10053_vm12 = vmmov %vm10042_vm2  ;;  %v10064_v9 = vld [vmem:[#allocation20_spill] sm:$0xff] }
 0x2bf   : > { %6706 = vmatprep.mubr.msk.f32.mxu1 %vm540_vm1, %v9113_v55  ;;  %vm9718_vm5 = vmpackc.low %vm540_vm1, %vm540_vm1 }
 0x2c2   : > { %6707 = vmatmul.mubr.msk.f32.gmra.mrb[42].mxu1 %vm540_vm1, %v9111_v3 }
 0x2c3   : > { %6709 = vmatprep.mubr.msk.f32.mxu1 %vm540_vm1, %v9173_v62 }
 0x2c6   : > { %6710 = vmatmul.mubr.msk.f32.gmra.mrb[44].mxu1 %vm540_vm1, %v9189_v31 }
 0x2c7   : > { %6714 = vmatprep.mubr.msk.f32.mxu1 %vm540_vm1, %v8822_v16  ;;  %v10035_v16 = vmov %v10028_v25  ;;  %v9413_v25 = vsel %vm10043_vm14, %v3359_v40, %v3360_v43  ;;  %v3377_v40 = vrot.slane %v10050_v42, 2  ;;  %v3382_v42 = vrot.slane %v9231_v19, 1 }
 0x2ca   : > { %6715 = vmatmul.mubr.msk.f32.vlgmr.msra.gmra.mrb[30].mxu1 %vm540_vm1, %v8845_v59  ;;  %v9382_v59 = vsel %vm10036_vm4, %v3345_v8, %v3347_v61  ;;  %v9421_v8 = vsel %vm10045_vm15, %v3360_v43, %v3362_v33  ;;  %v3369_v61 = vrot.slane %v9113_v55, 2  ;;  %v9457_v33 = vsel %vm10053_vm12, %v3375_v15, %v3377_v40  ;;  %v10063_v15 = vld [vmem:[#allocation18_spill] sm:$0xff]  ;;  %vm10068_vm4 = vmmov %vm10042_vm2 }
 0x2cb   : > { %6739 = vmatpush3.msk.msra.mxu1 %vm601_vm0, %v10035_v16  ;;  %6717 = vmatprep.mubr.msk.f32.mxu1 %vm540_vm1, %v9369_v47  ;;  %v3372_v16 = vrot.slane %v10047_v1, 2  ;;  %v10061_v1 = vld [vmem:[#allocation15_spill] sm:$0xff]  ;;  %v3383_v40 = vrot.slane %v9250_v54, 1 }
 0x2cc   : > { %6764 = vmatprep.subr.msk.mxu1 %vm601_vm0, %v9364_v45  ;;  %v9439_v6 = vsel %vm10049_vm8, %v3369_v61, %v3370_v4  ;;  %v10059_v61 = vld [vmem:[#allocation10_spill] sm:$0xff] }
 0x2cd   : > { %v9447_v43 = vsel %vm10051_vm7, %v3370_v4, %v3372_v16  ;;  %v10060_v4 = vld [vmem:[#allocation13_spill] sm:$0xff]  ;;  %v3384_v53 = vsel %vm355_vm3, %v3382_v42, %v3383_v40 }
 0x2ce   : > { %6718 = vmatmul.mubr.msk.f32.gmra.mrb[32].mxu1 %vm540_vm1, %v9382_v59  ;;  %v10062_v16 = vld [vmem:[#allocation17_spill] sm:$0xff] }
 0x2cf   : > { %6720 = vmatprep.mubr.msk.f32.mxu1 %vm540_vm1, %v9387_v36 }
 0x2d2   : > { %6721 = vmatmul.mubr.msk.f32.gmra.mrb[34].mxu1 %vm540_vm1, %v9395_v12 }
 0x2d3   : > { %6723 = vmatprep.mubr.msk.f32.mxu1 %vm540_vm1, %v9400_v13 }
 0x2d6   : > { %6724 = vmatmul.mubr.msk.f32.gmra.mrb[36].mxu1 %vm540_vm1, %v9408_v17 }
 0x2d7   : > { %6726 = vmatprep.mubr.msk.f32.mxu1 %vm540_vm1, %v9413_v25 }
 0x2da   : > { %6727 = vmatmul.mubr.msk.f32.gmra.mrb[38].mxu1 %vm540_vm1, %v9421_v8 }
 0x2db   : > { %6729 = vmatprep.mubr.msk.f32.mxu1 %vm540_vm1, %v9426_v49 }
 0x2de   : > { %6730 = vmatmul.mubr.msk.f32.gmra.mrb[40].mxu1 %vm540_vm1, %v9434_v35 }
 0x2df   : > { %6732 = vmatprep.mubr.msk.f32.mxu1 %vm540_vm1, %v9439_v6 }
 0x2e2   : > { %6733 = vmatmul.mubr.msk.f32.gmra.mrb[42].mxu1 %vm540_vm1, %v9447_v43 }
 0x2e3   : > { %6735 = vmatprep.mubr.msk.f32.mxu1 %vm540_vm1, %v9452_v56 }
 0x2e6   : > { %6736 = vmatmul.mubr.msk.f32.gmra.mrb[44].mxu1 %vm540_vm1, %v9457_v33 }
 0x2e7   : > { %6740 = vmatprep.mubr.msk.f32.mxu1 %vm540_vm1, %v8827_v27  ;;  %v10054_v27 = vld [vmem:[#allocation8_spill] sm:$0xff] }
 0x2ea   : > { %6741 = vmatmul.mubr.msk.f32.vlgmr.msra.gmra.mrb[30].mxu1 %vm540_vm1, %v8851_v34  ;;  %v3408_v34 = vld [vmem:[%s9811_s3 + $0x18] sm:$0xff] }
 0x2eb   : > { %6765 = vmatpush3.msk.msra.mxu1 %vm601_vm0, %v9364_v45  ;;  %6743 = vmatprep.mubr.msk.f32.mxu1 %vm540_vm1, %v8906_v18  ;;  %v10055_v45 = vld [vmem:[#allocation11_spill] sm:$0xff]  ;;  %v4638_v41 = vrot.slane %v3408_v34, 4 }
 0x2ec   : > { %6790 = vmatprep.subr.msk.mxu1 %vm601_vm0, %v4302_v28 }
 0x2ee   : > { %6744 = vmatmul.mubr.msk.f32.gmra.mrb[32].mxu1 %vm540_vm1, %v8880_v5 }
 0x2ef   : > { %6746 = vmatprep.mubr.msk.f32.mxu1 %vm540_vm1, %v8962_v60 }
 0x2f2   : > { %6747 = vmatmul.mubr.msk.f32.gmra.mrb[34].mxu1 %vm540_vm1, %v8973_v50 }
 0x2f3   : > { %6749 = vmatprep.mubr.msk.f32.mxu1 %vm540_vm1, %v8998_v23 }
 0x2f6   : > { %6750 = vmatmul.mubr.msk.f32.gmra.mrb[36].mxu1 %vm540_vm1, %v8996_v20 }
 0x2f7   : > { %6752 = vmatprep.mubr.msk.f32.mxu1 %vm540_vm1, %v9080_v57 }
 0x2fa   : > { %6753 = vmatmul.mubr.msk.f32.gmra.mrb[38].mxu1 %vm540_vm1, %v9084_v24 }
 0x2fb   : > { %6755 = vmatprep.mubr.msk.f32.mxu1 %vm540_vm1, %v9113_v55 }
 0x2fe   : > { %6756 = vmatmul.mubr.msk.f32.gmra.mrb[40].mxu1 %vm540_vm1, %v9111_v3 }
 0x2ff   : > { %6758 = vmatprep.mubr.msk.f32.mxu1 %vm540_vm1, %v9173_v62 }
 0x302   : > { %6759 = vmatmul.mubr.msk.f32.gmra.mrb[42].mxu1 %vm540_vm1, %v9189_v31 }
 0x303   : > { %6761 = vmatprep.mubr.msk.f32.mxu1 %vm540_vm1, %v9231_v19 }
 0x306   : > { %6762 = vmatmul.mubr.msk.f32.gmra.mrb[44].mxu1 %vm540_vm1, %v9250_v54 }
 0x307   : > { %6766 = vmatprep.mubr.msk.f32.mxu1 %vm540_vm1, %v10054_v27  ;;  %v10066_v27 = vld [vmem:[#allocation23_spill] sm:$0xff] }
 0x30a   : > { %6767 = vmatmul.mubr.msk.f32.vlgmr.msra.gmra.mrb[30].mxu1 %vm540_vm1, %v10055_v45  ;;  %v3385_v45 = vrot.slane %v9227_v11, 1 }
 0x30b   : > { %6791 = vmatpush3.msk.msra.mxu1 %vm601_vm0, %v4302_v28  ;;  %6769 = vmatprep.mubr.msk.f32.mxu1 %vm540_vm1, %v10056_v37  ;;  %v10065_v28 = vld [vmem:[#allocation21_spill] sm:$0xff] }
 0x30c   : > { %6816 = vmatprep.subr.msk.mxu1 %vm601_vm0, %v3408_v34  ;;  %v3386_v52 = vsel %vm355_vm3, %v3383_v40, %v3385_v45  ;;  %vm10067_vm3 = vmmov %vm10042_vm2  ;;  %v3409_v45 = vld [vmem:[%s9811_s3 + $0x20] sm:$0xf] }
 0x30e   : > { %6770 = vmatmul.mubr.msk.f32.gmra.mrb[32].mxu1 %vm540_vm1, %v10057_v14 }
 0x30f   : > { %6772 = vmatprep.mubr.msk.f32.mxu1 %vm540_vm1, %v10058_v32 }
 0x312   : > { %6773 = vmatmul.mubr.msk.f32.gmra.mrb[34].mxu1 %vm540_vm1, %v10059_v61 }
 0x313   : > { %6775 = vmatprep.mubr.msk.f32.mxu1 %vm540_vm1, %v10060_v4 }
 0x316   : > { %6776 = vmatmul.mubr.msk.f32.gmra.mrb[36].mxu1 %vm540_vm1, %v10061_v1 }
 0x317   : > { %6778 = vmatprep.mubr.msk.f32.mxu1 %vm540_vm1, %v10062_v16 }
 0x31a   : > { %6779 = vmatmul.mubr.msk.f32.gmra.mrb[38].mxu1 %vm540_vm1, %v10063_v15 }
 0x31b   : > { %6781 = vmatprep.mubr.msk.f32.mxu1 %vm540_vm1, %v10064_v9 }
 0x31e   : > { %6782 = vmatmul.mubr.msk.f32.gmra.mrb[40].mxu1 %vm540_vm1, %v10065_v28 }
 0x31f   : > { %6784 = vmatprep.mubr.msk.f32.mxu1 %vm540_vm1, %v10066_v27 }
 0x322   : > { %6785 = vmatmul.mubr.msk.f32.gmra.mrb[42].mxu1 %vm540_vm1, %v9221_v29 }
 0x323   : > { %6787 = vmatprep.mubr.msk.f32.mxu1 %vm540_vm1, %v3384_v53 }
 0x326   : > { %6788 = vmatmul.mubr.msk.f32.gmra.mrb[44].mxu1 %vm540_vm1, %v3386_v52 }
 0x327   : > { %6792 = vmatprep.mubr.msk.f32.mxu1 %vm540_vm1, %v9369_v47  ;;  %v3387_v47 = vrot.slane %v9231_v19, 2 }
 0x32a   : > { %6793 = vmatmul.mubr.msk.f32.vlgmr.msra.gmra.mrb[30].mxu1 %vm540_vm1, %v9382_v59  ;;  %v3388_v59 = vrot.slane %v9250_v54, 2 }
 0x32b   : > { %6817 = vmatpush3.msk.msra.mxu1 %vm601_vm0, %v3408_v34  ;;  %6795 = vmatprep.mubr.msk.f32.mxu1 %vm540_vm1, %v9387_v36  ;;  %v3390_v34 = vrot.slane %v9227_v11, 2 }
 0x32c   : > { %6842 = vmatprep.subr.msk.mxu1 %vm601_vm0, %v4638_v41  ;;  %v3389_v42 = vsel %vm10067_vm3, %v3387_v47, %v3388_v59 }
 0x32d   : > { %v3391_v40 = vsel %vm10068_vm4, %v3388_v59, %v3390_v34 }
 0x32e   : > { %6796 = vmatmul.mubr.msk.f32.gmra.mrb[32].mxu1 %vm540_vm1, %v9395_v12 }
 0x32f   : > { %6798 = vmatprep.mubr.msk.f32.mxu1 %vm540_vm1, %v9400_v13 }
 0x332   : > { %6799 = vmatmul.mubr.msk.f32.gmra.mrb[34].mxu1 %vm540_vm1, %v9408_v17 }
 0x333   : > { %6801 = vmatprep.mubr.msk.f32.mxu1 %vm540_vm1, %v9413_v25 }
 0x336   : > { %6802 = vmatmul.mubr.msk.f32.gmra.mrb[36].mxu1 %vm540_vm1, %v9421_v8 }
 0x337   : > { %6804 = vmatprep.mubr.msk.f32.mxu1 %vm540_vm1, %v9426_v49 }
 0x33a   : > { %6805 = vmatmul.mubr.msk.f32.gmra.mrb[38].mxu1 %vm540_vm1, %v9434_v35 }
 0x33b   : > { %6807 = vmatprep.mubr.msk.f32.mxu1 %vm540_vm1, %v9439_v6 }
 0x33e   : > { %6808 = vmatmul.mubr.msk.f32.gmra.mrb[40].mxu1 %vm540_vm1, %v9447_v43 }
 0x33f   : > { %6810 = vmatprep.mubr.msk.f32.mxu1 %vm540_vm1, %v9452_v56 }
 0x342   : > { %6811 = vmatmul.mubr.msk.f32.gmra.mrb[42].mxu1 %vm540_vm1, %v9457_v33 }
 0x343   : > { %6813 = vmatprep.mubr.msk.f32.mxu1 %vm540_vm1, %v3389_v42 }
 0x346   : > { %6814 = vmatmul.mubr.msk.f32.gmra.mrb[44].mxu1 %vm540_vm1, %v3391_v40 }
 0x347   : > { %6818 = vmatprep.mubr.msk.f32.mxu1 %vm540_vm1, %v8906_v18 }
 0x34a   : > { %6819 = vmatmul.mubr.msk.f32.vlgmr.msra.gmra.mrb[30].mxu1 %vm540_vm1, %v8880_v5  ;;  %v5764_v5 = vld [vmem:[%s9812_s4] ss:$0 sm:$0xff] }
 0x34b   : > { %6843 = vmatpush3.msk.msra.mxu1 %vm601_vm0, %v4638_v41  ;;  %6821 = vmatprep.mubr.msk.f32.mxu1 %vm540_vm1, %v8962_v60 }
 0x34c   : > { %6868 = vmatprep.subr.msk.mxu1 %vm601_vm0, %v3409_v45 }
 0x34e   : > { %6822 = vmatmul.mubr.msk.f32.gmra.mrb[32].mxu1 %vm540_vm1, %v8973_v50 }
 0x34f   : > { %6824 = vmatprep.mubr.msk.f32.mxu1 %vm540_vm1, %v8998_v23 }
 0x352   : > { %6825 = vmatmul.mubr.msk.f32.gmra.mrb[34].mxu1 %vm540_vm1, %v8996_v20 }
 0x353   : > { %6827 = vmatprep.mubr.msk.f32.mxu1 %vm540_vm1, %v9080_v57 }
 0x356   : > { %6828 = vmatmul.mubr.msk.f32.gmra.mrb[36].mxu1 %vm540_vm1, %v9084_v24 }
 0x357   : > { %6830 = vmatprep.mubr.msk.f32.mxu1 %vm540_vm1, %v9113_v55 }
 0x35a   : > { %6831 = vmatmul.mubr.msk.f32.gmra.mrb[38].mxu1 %vm540_vm1, %v9111_v3 }
 0x35b   : > { %6833 = vmatprep.mubr.msk.f32.mxu1 %vm540_vm1, %v9173_v62 }
 0x35e   : > { %6834 = vmatmul.mubr.msk.f32.gmra.mrb[40].mxu1 %vm540_vm1, %v9189_v31 }
 0x35f   : > { %6836 = vmatprep.mubr.msk.f32.mxu1 %vm540_vm1, %v9231_v19 }
 0x362   : > { %6837 = vmatmul.mubr.msk.f32.gmra.mrb[42].mxu1 %vm540_vm1, %v9250_v54 }
 0x363   : > { %6839 = vmatprep.mubr.msk.f32.mxu1 %vm540_vm1, %v9260_v7 }
 0x366   : > { %6840 = vmatmul.mubr.msk.f32.gmra.mrb[44].mxu1 %vm540_vm1, %v9264_v39 }
 0x367   : > { %6844 = vmatprep.mubr.msk.f32.mxu1 %vm540_vm1, %v10056_v37  ;;  %v10069_v37 = vld [vmem:[#allocation6_spill] sm:$0xff] }
 0x36a   : > { %6845 = vmatmul.mubr.msk.f32.vlgmr.msra.gmra.mrb[30].mxu1 %vm540_vm1, %v10057_v14 }
 0x36b   : > { %6869 = vmatpush3.msk.msra.mxu1 %vm601_vm0, %v3409_v45  ;;  %6847 = vmatprep.mubr.msk.f32.mxu1 %vm540_vm1, %v10058_v32  ;;  %v10070_v32 = vld [vmem:[#allocation7_spill] sm:$0xff]  ;;  %vm7547_vm0 = vmmov 0  }
 0x36e   : > { %6848 = vmatmul.mubr.msk.f32.gmra.mrb[32].mxu1 %vm540_vm1, %v10059_v61 }
 0x36f   : > { %6850 = vmatprep.mubr.msk.f32.mxu1 %vm540_vm1, %v10060_v4 }
 0x372   : > { %6851 = vmatmul.mubr.msk.f32.gmra.mrb[34].mxu1 %vm540_vm1, %v10061_v1 }
 0x373   : > { %6853 = vmatprep.mubr.msk.f32.mxu1 %vm540_vm1, %v10062_v16 }
 0x376   : > { %6854 = vmatmul.mubr.msk.f32.gmra.mrb[36].mxu1 %vm540_vm1, %v10063_v15  ;;  %v10071_v15 = vld [vmem:[#allocation5_spill] sm:$0xff] }
 0x377   : > { %6856 = vmatprep.mubr.msk.f32.mxu1 %vm540_vm1, %v10064_v9 }
 0x37a   : > { %6857 = vmatmul.mubr.msk.f32.gmra.mrb[38].mxu1 %vm540_vm1, %v10065_v28 }
 0x37b   : > { %6859 = vmatprep.mubr.msk.f32.mxu1 %vm540_vm1, %v10066_v27 }
 0x37e   : > { %6860 = vmatmul.mubr.msk.f32.gmra.mrb[40].mxu1 %vm540_vm1, %v9221_v29 }
 0x37f   : > { %6862 = vmatprep.mubr.msk.f32.mxu1 %vm540_vm1, %v3384_v53 }
 0x382   : > { %6863 = vmatmul.mubr.msk.f32.gmra.mrb[42].mxu1 %vm540_vm1, %v3386_v52 }
 0x383   : > { %6865 = vmatprep.mubr.msk.f32.mxu1 %vm540_vm1, %v9302_v48 }
 0x386   : > { %6866 = vmatmul.mubr.msk.f32.gmra.mrb[44].mxu1 %vm540_vm1, %v9305_v38 }
 0x387   : > { %6870 = vmatprep.mubr.msk.f32.mxu1 %vm540_vm1, %v9387_v36 }
 0x38a   : > { %6871 = vmatmul.mubr.msk.f32.vlgmr.msra.gmra.mrb[30].mxu1 %vm540_vm1, %v9395_v12 }
 0x38b   : > { %6873 = vmatprep.mubr.msk.f32.mxu1 %vm540_vm1, %v9400_v13 }
 0x38e   : > { %6874 = vmatmul.mubr.msk.f32.gmra.mrb[32].mxu1 %vm540_vm1, %v9408_v17 }
 0x38f   : > { %6876 = vmatprep.mubr.msk.f32.mxu1 %vm540_vm1, %v9413_v25 }
 0x392   : > { %6877 = vmatmul.mubr.msk.f32.gmra.mrb[34].mxu1 %vm540_vm1, %v9421_v8 }
 0x393   : > { %6879 = vmatprep.mubr.msk.f32.mxu1 %vm540_vm1, %v9426_v49 }
 0x396   : > { %6880 = vmatmul.mubr.msk.f32.gmra.mrb[36].mxu1 %vm540_vm1, %v9434_v35 }
 0x397   : > { %6882 = vmatprep.mubr.msk.f32.mxu1 %vm540_vm1, %v9439_v6  ;;  %v7545_v6 = vmov 0.0|0.0  }
 0x398   : > { %6929 = vmatprep.subr.bf16.mxu1 %v7545_v6 }
 0x39a   : > { %6883 = vmatmul.mubr.msk.f32.gmra.mrb[38].mxu1 %vm540_vm1, %v9447_v43 }
 0x39b   : > { %6885 = vmatprep.mubr.msk.f32.mxu1 %vm540_vm1, %v9452_v56 }
 0x39e   : > { %6886 = vmatmul.mubr.msk.f32.gmra.mrb[40].mxu1 %vm540_vm1, %v9457_v33 }
 0x39f   : > { %6888 = vmatprep.mubr.msk.f32.mxu1 %vm540_vm1, %v3389_v42 }
 0x3a2   : > { %6889 = vmatmul.mubr.msk.f32.gmra.mrb[42].mxu1 %vm540_vm1, %v3391_v40 }
 0x3a3   : > { %6891 = vmatprep.mubr.msk.f32.mxu1 %vm540_vm1, %v9308_v58 }
 0x3a6   : > { %6892 = vmatmul.mubr.msk.f32.gmra.mrb[44].mxu1 %vm540_vm1, %v9311_v0 }
 0x45d   : > { %v6872_v18 = vpop.f32.mrb[30].mxu1 }
 0x45e   : > { %v4879_v23 = vpop.f32.mrb[31].mxu1  ;;  %v4982_v57 = vadd.f32 %v6872_v18, %v5764_v5 }
 0x45f   : > { %v4981_v60 = vadd.f32 %v5764_v5, %v4879_v23 }
 0x461   : > { %5013 = vrot.lane.b32.xlu0 %v4981_v60, %s7544_s14  ;;  %v6875_v50 = vpop.f32.mrb[32].mxu1 }
 0x462   : > { %v4889_v20 = vpop.f32.mrb[33].mxu1  ;;  %v4984_v62 = vadd.f32 %v6875_v50, %v5764_v5 }
 0x463   : > { %v4983_v24 = vadd.f32 %v5764_v5, %v4889_v20 }
 0x465   : > { %5015 = vrot.lane.b32.xlu0 %v4982_v57, %s7544_s14  ;;  %5017 = vrot.lane.b32.xlu1 %v4983_v24, %s7544_s14  ;;  %v6878_v3 = vpop.f32.mrb[34].mxu1 }
 0x466   : > { %v4899_v55 = vpop.f32.mrb[35].mxu1  ;;  %v4986_v19 = vadd.f32 %v6878_v3, %v5764_v5 }
 0x467   : > { %v4985_v31 = vadd.f32 %v5764_v5, %v4899_v55 }
 0x469   : > { %5019 = vrot.lane.b32.xlu1 %v4984_v62, %s7544_s14  ;;  %5021 = vrot.lane.b32.xlu0 %v4985_v31, %s7544_s14  ;;  %v6881_v29 = vpop.f32.mrb[36].mxu1  ;;  %v10072_v31 = vld [vmem:[#allocation24_spill] sm:$0xff] }
 0x46a   : > { %v4909_v11 = vpop.f32.mrb[37].mxu1  ;;  %v4988_v48 = vadd.f32 %v6881_v29, %v5764_v5 }
 0x46b   : > { %v4987_v54 = vadd.f32 %v5764_v5, %v4909_v11 }
 0x46d   : > { %5023 = vrot.lane.b32.xlu1 %v4986_v19, %s7544_s14  ;;  %5025 = vrot.lane.b32.xlu0 %v4987_v54, %s7544_s14  ;;  %v6884_v7 = vpop.f32.mrb[38].mxu1  ;;  %v10073_v19 = vld [vmem:[#allocation25_spill] sm:$0xff] }
 0x46e   : > { %v4919_v39 = vpop.f32.mrb[39].mxu1  ;;  %v4990_v41 = vadd.f32 %v6884_v7, %v5764_v5  ;;  %v10074_v7 = vld [vmem:[#allocation26_spill] sm:$0xff] }
 0x46f   : > { %v4989_v38 = vadd.f32 %v5764_v5, %v4919_v39 }
 0x471   : > { %5027 = vrot.lane.b32.xlu1 %v4988_v48, %s7544_s14  ;;  %5029 = vrot.lane.b32.xlu0 %v4989_v38, %s7544_s14  ;;  %v6887_v58 = vpop.f32.mrb[40].mxu1 }
 0x472   : > { %v4929_v0 = vpop.f32.mrb[41].mxu1  ;;  %v4992_v12 = vadd.f32 %v6887_v58, %v5764_v5 }
 0x473   : > { %v4991_v52 = vadd.f32 %v5764_v5, %v4929_v0 }
 0x475   : > { %5031 = vrot.lane.b32.xlu1 %v4990_v41, %s7544_s14  ;;  %5033 = vrot.lane.b32.xlu0 %v4991_v52, %s7544_s14  ;;  %v6890_v53 = vpop.f32.mrb[42].mxu1 }
 0x476   : > { %v4939_v36 = vpop.f32.mrb[43].mxu1  ;;  %v4994_v8 = vadd.f32 %v6890_v53, %v5764_v5 }
 0x477   : > { %v4993_v13 = vadd.f32 %v5764_v5, %v4939_v36 }
 0x479   : > { %5035 = vrot.lane.b32.xlu1 %v4992_v12, %s7544_s14  ;;  %5037 = vrot.lane.b32.xlu0 %v4993_v13, %s7544_s14  ;;  %v6893_v17 = vpop.f32.mrb[44].mxu1 }
 0x47a   : > { %v4949_v25 = vpop.f32.mrb[45].mxu1  ;;  %v4996_v35 = vadd.f32 %v6893_v17, %v5764_v5 }
 0x47b   : > { %v4995_v49 = vadd.f32 %v5764_v5, %v4949_v25 }
 0x47d   : > { %5039 = vrot.lane.b32.xlu1 %v4994_v8, %s7544_s14  ;;  %5041 = vrot.lane.b32.xlu0 %v4995_v49, %s7544_s14 }
 0x481   : > { %5043 = vrot.lane.b32.xlu1 %v4996_v35, %s7544_s14 }
 0x4d3   : > { %v5014_v43 = vpop.permute.xlu0 %5013 }
 0x4d4   : > { %v5061_v14 = vadd.f32 %v5014_v43, %v10069_v37 }
 0x4d7   : > { %v5016_v56 = vpop.permute.xlu0 %5015  ;;  %v5018_v33 = vpop.permute.xlu1 %5017 }
 0x4d8   : > { %v5062_v61 = vadd.f32 %v5016_v56, %v10070_v32  ;;  %v5063_v9 = vadd.f32 %v5018_v33, %v10071_v15 }
 0x4da   : > { %v7408_v4 = vpack.i.bf16 %v5062_v61, %v5061_v14 }
 0x4db   : > { %v5020_v1 = vpop.permute.xlu1 %5019  ;;  %v5022_v16 = vpop.permute.xlu0 %5021 }
 0x4dc   : > { %v5064_v28 = vadd.f32 %v5020_v1, %v9269_v26  ;;  %7409 = vrot.lane.b32.xlu0 %v7408_v4, %s7546_s16  ;;  %v5065_v34 = vadd.f32 %v5022_v16, %v9272_v2 }
 0x4de   : > { %v7413_v27 = vpack.i.bf16 %v5064_v28, %v5063_v9 }
 0x4df   : > { %v5024_v47 = vpop.permute.xlu1 %5023  ;;  %v5026_v59 = vpop.permute.xlu0 %5025 }
 0x4e0   : > { %v5066_v42 = vadd.f32 %v5024_v47, %v9288_v30  ;;  %7414 = vrot.lane.b32.xlu1 %v7413_v27, %s7546_s16  ;;  %v5067_v18 = vadd.f32 %v5026_v59, %v9291_v22 }
 0x4e2   : > { %v7418_v40 = vpack.i.bf16 %v5066_v42, %v5065_v34  ;;  %v5077_v42 = vld [vmem:[%s9813_s5] sm:$0xf] }
 0x4e3   : > { %v5028_v45 = vpop.permute.xlu1 %5027  ;;  %v5030_v5 = vpop.permute.xlu0 %5029 }
 0x4e4   : > { %v5068_v23 = vadd.f32 %v5028_v45, %v9294_v44  ;;  %7419 = vrot.lane.b32.xlu0 %v7418_v40, %s7546_s16  ;;  %v5069_v20 = vadd.f32 %v5030_v5, %v9297_v46 }
 0x4e6   : > { %v7423_v26 = vpack.i.bf16 %v5068_v23, %v5067_v18 }
 0x4e7   : > { %v5032_v60 = vpop.permute.xlu1 %5031  ;;  %v5034_v50 = vpop.permute.xlu0 %5033 }
 0x4e8   : > { %v5070_v2 = vadd.f32 %v5032_v60, %v9314_v21  ;;  %7424 = vrot.lane.b32.xlu1 %v7423_v26, %s7546_s16  ;;  %v5071_v3 = vadd.f32 %v5034_v50, %v9317_v10 }
 0x4ea   : > { %v7428_v30 = vpack.i.bf16 %v5070_v2, %v5069_v20 }
 0x4eb   : > { %v5036_v57 = vpop.permute.xlu1 %5035  ;;  %v5038_v24 = vpop.permute.xlu0 %5037 }
 0x4ec   : > { %v5072_v22 = vadd.f32 %v5036_v57, %v9320_v63  ;;  %7429 = vrot.lane.b32.xlu0 %v7428_v30, %s7546_s16  ;;  %v5073_v62 = vadd.f32 %v5038_v24, %v9323_v51  ;;  %v7548_v63 = vmov 0.0  }
 0x4ed   : > { %6926 = vmatprep.mubr.msk.f32.mxu1 %vm7547_vm0, %v7548_v63 }
 0x4ee   : > { %v7433_v44 = vpack.i.bf16 %v5072_v22, %v5071_v3 }
 0x4ef   : > { %v5040_v55 = vpop.permute.xlu1 %5039  ;;  %v5042_v46 = vpop.permute.xlu0 %5041 }
 0x4f0   : > { %v5074_v29 = vadd.f32 %v5040_v55, %v10072_v31  ;;  %7434 = vrot.lane.b32.xlu1 %v7433_v44, %s7546_s16  ;;  %v5075_v54 = vadd.f32 %v5042_v46, %v10073_v19 }
 0x4f2   : > { %v7438_v21 = vpack.i.bf16 %v5074_v29, %v5073_v62 }
 0x4f3   : > { %v5044_v11 = vpop.permute.xlu1 %5043 }
 0x4f4   : > { %v5076_v39 = vadd.f32 %v5044_v11, %v10074_v7  ;;  %7439 = vrot.lane.b32.xlu0 %v7438_v21, %s7546_s16 }
 0x4f6   : > { %v7443_v10 = vpack.i.bf16 %v5076_v39, %v5075_v54 }
 0x4f8   : > { %7444 = vrot.lane.b32.xlu1 %v7443_v10, %s7546_s16 }
 0x54e   : > { %v7410_v51 = vpop.permute.xlu0 %7409 }
 0x54f   : > { %v7412_v48 = vunpack.i.h.bf16 %v7410_v51  ;;  %v7411_v38 = vunpack.i.l.bf16 %v7410_v51 }
 0x551   : > { %v6930_v0 = vpack.c.bf16 %v7412_v48, %v7411_v38 }
 0x552   : > { %v7415_v41 = vpop.permute.xlu1 %7414 }
 0x553   : > { %6932 = vmatpush3.bf16.xpose.msk.msra.mxu1 %vm9718_vm5, %v6930_v0  ;;  %v7417_v52 = vunpack.i.h.bf16 %v7415_v41  ;;  %v7416_v53 = vunpack.i.l.bf16 %v7415_v41 }
 0x554   : > { %6933 = vmatprep.subr.bf16.mxu1 %v7545_v6 }
 0x555   : > { %v6934_v36 = vpack.c.bf16 %v7417_v52, %v7416_v53 }
 0x556   : > { %v7420_v12 = vpop.permute.xlu0 %7419 }
 0x557   : > { %v7422_v13 = vunpack.i.h.bf16 %v7420_v12  ;;  %v7421_v17 = vunpack.i.l.bf16 %v7420_v12 }
 0x559   : > { %v6938_v25 = vpack.c.bf16 %v7422_v13, %v7421_v17 }
 0x55a   : > { %v7425_v8 = vpop.permute.xlu1 %7424 }
 0x55b   : > { %6936 = vmatpush3.bf16.xpose.msk.msra.mxu1 %vm9718_vm5, %v6934_v36  ;;  %v7427_v49 = vunpack.i.h.bf16 %v7425_v8  ;;  %v7426_v35 = vunpack.i.l.bf16 %v7425_v8 }
 0x55c   : > { %6937 = vmatprep.subr.bf16.mxu1 %v7545_v6 }
 0x55d   : > { %v6942_v43 = vpack.c.bf16 %v7427_v49, %v7426_v35 }
 0x55e   : > { %v7430_v56 = vpop.permute.xlu0 %7429 }
 0x55f   : > { %v7432_v33 = vunpack.i.h.bf16 %v7430_v56  ;;  %v7431_v37 = vunpack.i.l.bf16 %v7430_v56 }
 0x561   : > { %v6946_v14 = vpack.c.bf16 %v7432_v33, %v7431_v37 }
 0x562   : > { %v7435_v32 = vpop.permute.xlu1 %7434 }
 0x563   : > { %6940 = vmatpush3.bf16.xpose.msk.msra.mxu1 %vm9718_vm5, %v6938_v25  ;;  %v7437_v61 = vunpack.i.h.bf16 %v7435_v32  ;;  %v7436_v4 = vunpack.i.l.bf16 %v7435_v32 }
 0x564   : > { %6941 = vmatprep.subr.bf16.mxu1 %v7545_v6 }
 0x565   : > { %v6950_v1 = vpack.c.bf16 %v7437_v61, %v7436_v4 }
 0x566   : > { %v7440_v16 = vpop.permute.xlu0 %7439 }
 0x567   : > { %v7442_v15 = vunpack.i.h.bf16 %v7440_v16  ;;  %v7441_v9 = vunpack.i.l.bf16 %v7440_v16 }
 0x569   : > { %v6954_v28 = vpack.c.bf16 %v7442_v15, %v7441_v9 }
 0x56a   : > { %v7445_v27 = vpop.permute.xlu1 %7444 }
 0x56b   : > { %6944 = vmatpush3.bf16.xpose.msk.msra.mxu1 %vm9718_vm5, %v6942_v43  ;;  %v7447_v47 = vunpack.i.h.bf16 %v7445_v27  ;;  %v7446_v59 = vunpack.i.l.bf16 %v7445_v27 }
 0x56c   : > { %6945 = vmatprep.subr.bf16.mxu1 %v7545_v6 }
 0x56d   : > { %v6958_v34 = vpack.c.bf16 %v7447_v47, %v7446_v59 }
 0x573   : > { %6948 = vmatpush3.bf16.xpose.msk.msra.mxu1 %vm9718_vm5, %v6946_v14 }
 0x574   : > { %6949 = vmatprep.subr.bf16.mxu1 %v7545_v6 }
 0x57b   : > { %6952 = vmatpush3.bf16.xpose.msk.msra.mxu1 %vm9718_vm5, %v6950_v1 }
 0x57c   : > { %6953 = vmatprep.subr.bf16.mxu1 %v7545_v6 }
 0x583   : > { %6956 = vmatpush3.bf16.xpose.msk.msra.mxu1 %vm9718_vm5, %v6954_v28 }
 0x584   : > { %6957 = vmatprep.subr.bf16.mxu1 %v7545_v6 }
 0x58b   : > { %6960 = vmatpush3.bf16.xpose.msk.msra.mxu1 %vm9718_vm5, %v6958_v34 }
 0x592   : > { %6927 = vmatmul.mubr.msk.f32.vlgmr.msra.gmra.mrb[46].mxu1 %vm540_vm1, %v5077_v42 }
 0x665   : > { %v5227_v6 = vpop.f32.mrb[46].mxu1 }
 0x666   : > { %5231 = vst [vmem:[%s258_s9] sm:$0xf] %v5227_v6  ;;  %v6928_v40 = vpop.f32.mrb[47].mxu1 }
 0x667   : > { %7461 = shalt.err (!%p7458_p6)
}
 0x668   : > { %s7462_s19 = scalar_lea.hbm %s9757_s17, 64  ;;  %s7466_s9 = scalar_lea.hbm %s9814_s6, 256 }
 0x669   : > { %p7463_p7 = scmp.ne.s32.totalorder %s9757_s17, %s7462_s19  ;;  %p7467_p11 = scmp.lt.u32.totalorder %s9757_s17, %s9814_s6 }
 0x66a   : > { %p7468_p12 = scmp.lt.u32.totalorder %s7466_s9, %s7462_s19  ;;  %p7470_p0 = scmp.lt.u32.totalorder %s7462_s19, %s9757_s17 }
 0x66b   : > { %p7464_p9 = pnand %p7463_p7, %p7636_p3 }
 0x66c   : > { %p7469_p13 = por %p7468_p12, %p7467_p11 }
 0x66d   : > { %p7465_p10 = pneg %p7464_p9 }
 0x66e   : > { %p7471_p1 = por %p7470_p0, %p7469_p13 }
 0x670   : > { %p7472_p2 = pnand %p7471_p1, %p7465_p10 }
 0x672   : > { %7475 = shalt.err (!%p7472_p2)
}
 0x673   : > { %7332 = dma.vmem_to_hbm [thread:$0]  (%p7636_p3), %s9752_s12, 64, %s9757_s17, %s5233_s18  }
 0x674 PF: > { %p7338_p4 = scmp.ge.s32.totalorder %s7542_s28, 2  ;;  %s5260_s0 = sand.u32 1, %s7514_s21  }
 0x675   : > { %s5261_s16 = scalar_lea.sflag [#allocation3], %s5260_s0 }
 0x676   : > { %p7335_p5 = pnand %p7338_p4, %p7645_p8 }
 0x678   : > { %7509 = dma.done.wait (!%p7335_p5), %s5261_s16, 64  }
 0x679   : > { %7511 = vsyncadd (!%p7335_p5), %s5261_s16, 4294967232  ;;  %s19_s28 = sadd.s32 1, %s7542_s28   ;;  %s10077_s21 = smov %s7518_s22 }
 0x67a   : > { %p16_p6 = scmp.ge.s32.totalorder %s19_s28, 6   ;;  %s10078_s22 = smov %s7522_s23 }
 0x67b   : > { %s10079_s23 = smov %s7654_s15  ;;  %s10080_s24 = smov %s7534_s26 }
 0x67c   : > { %s10081_s25 = smov %s7538_s27  ;;  %s10082_s26 = smov %s10085_s7 }
 0x67d   : > { %s10083_s27 = smov %s10089_s8  ;;  %18 = sbr.rel (!%p16_p6) target bundleno = 7 (0x7), region = 80 }
 0x684   :  { %5266 = vsyncpa [#allocation3], 1 }
 0x685   :  { %5268 = vsyncpa [#allocation3 + $0x1], 1 }

</bundles_post_ra>
